<compile_context>
chip_gen: v6e
topology: v6e:2x2x1
jax: 0.10.0
libtpu: 0.0.40
codegen_flags: <defaults>
</compile_context>

<pallas_src>
import functools

import jax
import jax.numpy as jnp
from jax.experimental import pallas as pl
from jax.experimental.pallas import tpu as pltpu


# ---------------------------------------------------------------------------
# chip-aware knobs
# ---------------------------------------------------------------------------
def _is_v7x():
    try:
        return "v7" in jax.devices()[0].device_kind.lower()
    except Exception:
        return True  # be conservative (smallest VMEM) if detection fails


def _vmem_limit_bytes():
    # v7x: 64 MiB physical VMEM -> stay well under; v5e/v6e: 128 MiB physical.
    return (48 if _is_v7x() else 100) * 1024 * 1024


def _tile_caps():
    # (tm_cap, tk_cap): reduction axis gets the bigger tile (long contiguous A rows,
    # fewer 0.35us grid steps).  int8 A tile @ caps is only a few MiB double-buffered.
    return (1024, 2048) if _is_v7x() else (1024, 4096)


def _round_up(x, m):
    return ((x + m - 1) // m) * m


def _choose_padding(n):
    """Pad node count so tiles stay in the efficient >=256 regime (never tile=N)."""
    _, tk_cap = _tile_caps()
    n_pad = _round_up(n, 256)
    if n_pad > tk_cap:
        n_pad = _round_up(n_pad, 1024)
    return n_pad


def _largest_tile(n_pad, cap):
    """Largest multiple of 128 that divides n_pad, capped."""
    best, t = 128, 128
    while t <= min(n_pad, cap):
        if n_pad % t == 0:
            best = t
        t += 128
    return best


def _choose_tiles(n_pad):
    tm_cap, tk_cap = _tile_caps()
    return _largest_tile(n_pad, tm_cap), _largest_tile(n_pad, tk_cap)


# ---------------------------------------------------------------------------
# shared SAGE aggregation kernel (both layers)
# ---------------------------------------------------------------------------
def sage_aggregate_kernel(a_ref, xw_ref, root_ref, invdeg_ref, *rest, apply_act):
    if apply_act:
        mask_ref, out_ref, acc_ref = rest
    else:
        out_ref, acc_ref = rest

    k = pl.program_id(1)

    @pl.when(k == 0)
    def _():
        acc_ref[...] = jnp.zeros_like(acc_ref)

    # int8 edge counts (exact) -> bf16 for the MXU; f32 accumulation.
    a = a_ref[...].astype(xw_ref.dtype)
    acc_ref[...] += jnp.dot(a, xw_ref[...], preferred_element_type=jnp.float32)

    @pl.when(k == pl.num_programs(1) - 1)
    def _():
        # mean = inv_deg * sum; add precomputed root term (X @ W_r + b), f32 epilogue.
        out = invdeg_ref[...] * acc_ref[...] + root_ref[...]
        if apply_act:
            # relu + training-mode dropout (mask already scaled by 1/(1-p), bf16-exact)
            out = jnp.maximum(out, 0.0) * mask_ref[...].astype(jnp.float32)
        out_ref[...] = out.astype(out_ref.dtype)


def _sage_aggregate(a_i8, xw, root, inv_deg, *, mask, apply_act, out_dtype, tm, tk):
    n = a_i8.shape[0]
    f_out = xw.shape[1]
    assert n % tm == 0 and n % tk == 0 and f_out % 128 == 0

    in_specs = [
        pl.BlockSpec((tm, tk), lambda i, k: (i, k)),       # adjacency counts (int8)
        pl.BlockSpec((tk, f_out), lambda i, k: (k, 0)),    # X @ W_l       (bf16)
        pl.BlockSpec((tm, f_out), lambda i, k: (i, 0)),    # X @ W_r + b   (f32)
        pl.BlockSpec((tm, 1), lambda i, k: (i, 0)),        # 1 / in-degree (f32)
    ]
    args = [a_i8, xw, root, inv_deg]
    if apply_act:
        in_specs.append(pl.BlockSpec((tm, f_out), lambda i, k: (i, 0)))  # dropout mask
        args.append(mask)

    return pl.pallas_call(
        functools.partial(sage_aggregate_kernel, apply_act=apply_act),
        out_shape=jax.ShapeDtypeStruct((n, f_out), out_dtype),
        grid=(n // tm, n // tk),
        in_specs=in_specs,
        out_specs=pl.BlockSpec((tm, f_out), lambda i, k: (i, 0)),
        scratch_shapes=[pltpu.VMEM((tm, f_out), jnp.float32)],
        compiler_params=pltpu.CompilerParams(
            dimension_semantics=("parallel", "arbitrary"),
            vmem_limit_bytes=_vmem_limit_bytes(),
        ),
    )(*args)


# ---------------------------------------------------------------------------
# full GraphSAGE forward (2 layers)
# ---------------------------------------------------------------------------
@functools.partial(jax.jit, static_argnames=("tm", "tk"))
def graphsage_forward(a_counts_i8, inv_deg, x, wl1, wr1, b1, wl2, wr2, b2,
                      dropout_mask, *, tm=None, tk=None):
    """a_counts_i8: (n_pad, n_pad) int8 edge counts; inv_deg: (n_pad, 1) f32."""
    n_pad = a_counts_i8.shape[0]
    n = x.shape[0]
    pad = n_pad - n
    if tm is None or tk is None:
        tm, tk = _choose_tiles(n_pad)

    bf16 = jnp.bfloat16

    # ---- layer 1: per-node transforms in XLA (O(N F^2), negligible) --------------
    xwl1 = jnp.pad(jnp.dot(x, wl1), ((0, pad), (0, 0))).astype(bf16)
    root1 = jnp.pad(jnp.dot(x, wr1) + b1, ((0, pad), (0, 0)))
    mask = jnp.pad(dropout_mask, ((0, pad), (0, 0))).astype(bf16)  # 0.0/2.0 exact
    h = _sage_aggregate(a_counts_i8, xwl1, root1, inv_deg,
                        mask=mask, apply_act=True,
                        out_dtype=jnp.float32, tm=tm, tk=tk)

    # ---- layer 2: pad output dim to a full lane group (128), slice afterwards ----
    out_dim = wl2.shape[1]
    dpad = (-out_dim) % 128
    wl2p = jnp.pad(wl2, ((0, 0), (0, dpad)))
    wr2p = jnp.pad(wr2, ((0, 0), (0, dpad)))
    b2p = jnp.pad(b2, ((0, 0), (0, dpad)))
    xwl2 = jnp.dot(h, wl2p).astype(bf16)      # h already row-padded
    root2 = jnp.dot(h, wr2p) + b2p
    out = _sage_aggregate(a_counts_i8, xwl2, root2, inv_deg,
                          mask=None, apply_act=False,
                          out_dtype=jnp.float32, tm=tm, tk=tk)
    return out[:n, :out_dim]


# ---------------------------------------------------------------------------
# glue: dense adjacency counts + inverse degree (plain JAX, built once)
# ---------------------------------------------------------------------------
def build_adjacency(edge_index, num_nodes, num_nodes_padded):
    """counts[i, j] = #edges j->i; inv_deg[i] = 1/max(in_deg(i), 1) (scatter-mean)."""
    src, dst = edge_index[0], edge_index[1]
    counts = jnp.zeros((num_nodes, num_nodes), jnp.float32).at[dst, src].add(1.0)
    deg = counts.sum(axis=1, keepdims=True)
    inv_deg = 1.0 / jnp.maximum(deg, 1.0)     # zero-in-degree rows aggregate to 0
    pad = num_nodes_padded - num_nodes
    # TODO(synk): int8 assumes per-edge multiplicity < 128 (always true for simple graphs).
    a_counts = jnp.pad(counts, ((0, pad), (0, pad))).astype(jnp.int8)
    inv_deg = jnp.pad(inv_deg, ((0, pad), (0, 0)))
    return a_counts, inv_deg


if __name__ == "__main__":
    N = 512            # number of graph nodes
    INPUT_DIM = 64
    HIDDEN_DIM = 128   # lane-dense hidden width
    OUTPUT_DIM = 16    # e.g. number of communities
    NUM_EDGES = 2048
    DROPOUT_P = 0.5

    key = jax.random.PRNGKey(0)
    k_x, k_e, k_wl1, k_wr1, k_wl2, k_wr2, k_drop = jax.random.split(key, 7)

    # deterministic inputs
    x = jax.random.normal(k_x, (N, INPUT_DIM), jnp.float32)
    edge_index = jax.random.randint(k_e, (2, NUM_EDGES), 0, N, jnp.int32)

    n_pad = _choose_padding(N)
    a_counts, inv_deg = build_adjacency(edge_index, N, n_pad)

    # deterministic parameters (Glorot-ish scale), math layout [in, out]
    def glorot(k, shape):
        return jax.random.normal(k, shape, jnp.float32) / jnp.sqrt(shape[0])

    wl1 = glorot(k_wl1, (INPUT_DIM, HIDDEN_DIM))
    wr1 = glorot(k_wr1, (INPUT_DIM, HIDDEN_DIM))
    b1 = jnp.zeros((1, HIDDEN_DIM), jnp.float32)
    wl2 = glorot(k_wl2, (HIDDEN_DIM, OUTPUT_DIM))
    wr2 = glorot(k_wr2, (HIDDEN_DIM, OUTPUT_DIM))
    b2 = jnp.zeros((1, OUTPUT_DIM), jnp.float32)

    # training-mode dropout: one precomputed keep-mask scaled by 1/(1-p)
    # (deterministic realization of F.dropout(training=True); not fresh-per-call RNG)
    keep = jax.random.bernoulli(k_drop, 1.0 - DROPOUT_P, (N, HIDDEN_DIM))
    dropout_mask = keep.astype(jnp.float32) / (1.0 - DROPOUT_P)

    # auto-tiled run: demo graph fits, so the reduction grid collapses to one resident
    # A pass per layer (no forced 128 tiles / pure-overhead 4x4 pipeline).
    out = graphsage_forward(a_counts, inv_deg, x, wl1, wr1, b1, wl2, wr2, b2,
                            dropout_mask)
    jax.block_until_ready(out)

    # also exercise the multi-step accumulator pipeline with explicit smaller tiles
    out_tiled = graphsage_forward(a_counts, inv_deg, x, wl1, wr1, b1, wl2, wr2, b2,
                                  dropout_mask, tm=256, tk=256)
    jax.block_until_ready(out_tiled)

    # pure-JAX reference mirroring the kernel's exact-int8 / bf16-MXU / f32-epilogue path
    bf16 = jnp.bfloat16
    a_b = a_counts[:N, :N].astype(bf16)         # small integer counts: exact in bf16
    inv = inv_deg[:N]
    xwl1_r = jnp.dot(x, wl1).astype(bf16)
    root1_r = jnp.dot(x, wr1) + b1
    agg1 = jnp.dot(a_b, xwl1_r, preferred_element_type=jnp.float32)
    h_ref = jnp.maximum(inv * agg1 + root1_r, 0.0) * dropout_mask
    xwl2_r = jnp.dot(h_ref, wl2).astype(bf16)
    root2_r = jnp.dot(h_ref, wr2) + b2
    agg2 = jnp.dot(a_b, xwl2_r, preferred_element_type=jnp.float32)
    out_ref = inv * agg2 + root2_r

    assert out.shape == (N, OUTPUT_DIM)
    assert out_tiled.shape == (N, OUTPUT_DIM)
    err1 = float(jnp.max(jnp.abs(out - out_ref)))
    err2 = float(jnp.max(jnp.abs(out_tiled - out_ref)))
    assert jnp.allclose(out, out_ref, atol=3e-2, rtol=3e-2), err1
    assert jnp.allclose(out_tiled, out_ref, atol=3e-2, rtol=3e-2), err2

    print("KERNEL_OK")
</pallas_src>

<mosaic_0001>
module attributes {stable_mosaic.version = 11 : i64} {
  func.func @sage_aggregate_kernel(%arg0: i32, %arg1: i32, %arg2: memref<512x512xi8, #tpu.memory_space<vmem>>, %arg3: memref<512x128xbf16, #tpu.memory_space<vmem>>, %arg4: memref<512x128xf32, #tpu.memory_space<vmem>>, %arg5: memref<512x1xf32, #tpu.memory_space<vmem>>, %arg6: memref<512x128xbf16, #tpu.memory_space<vmem>>, %arg7: memref<512x128xf32, #tpu.memory_space<vmem>>, %arg8: memref<512x128xf32, #tpu.memory_space<vmem>>) attributes {dimension_semantics = [#tpu.dimension_semantics<parallel>, #tpu.dimension_semantics<arbitrary>], iteration_bounds = array<i64: 1, 1>, scalar_prefetch = 0 : i64, scratch_operands = 1 : i64, tpu.core_type = #tpu.core_type<tc>, window_params = [{transform_indices = @transform_0, window_bounds = array<i64: 512, 512>}, {transform_indices = @transform_1, window_bounds = array<i64: 512, 128>}, {transform_indices = @transform_2, window_bounds = array<i64: 512, 128>}, {transform_indices = @transform_3, window_bounds = array<i64: 512, 1>}, {transform_indices = @transform_4, window_bounds = array<i64: 512, 128>}, {transform_indices = @transform_5, window_bounds = array<i64: 512, 128>}]} {
    %c0_i32 = arith.constant 0 : i32
    %0 = arith.cmpi eq, %arg1, %c0_i32 : i32
    %1 = arith.extui %0 : i1 to i32
    %c0_i32_0 = arith.constant 0 : i32
    %2 = arith.cmpi ne, %1, %c0_i32_0 : i32
    scf.if %2 {
      %cst_10 = arith.constant 0.000000e+00 : f32
      %13 = vector.broadcast %cst_10 : f32 to vector<512x128xf32>
      %c0_11 = arith.constant 0 : index
      %c0_12 = arith.constant 0 : index
      %14 = vector.load %arg8[%c0_11, %c0_12] : memref<512x128xf32, #tpu.memory_space<vmem>>, vector<512x128xf32>
      tpu.vector_store %arg8[%c0_11, %c0_12], %13 {strides = array<i32>} : memref<512x128xf32, #tpu.memory_space<vmem>>, vector<512x128xf32>,
    } else {
    }
    %c0 = arith.constant 0 : index
    %c0_1 = arith.constant 0 : index
    %3 = vector.load %arg2[%c0, %c0_1] : memref<512x512xi8, #tpu.memory_space<vmem>>, vector<512x512xi8>
    %4 = arith.sitofp %3 : vector<512x512xi8> to vector<512x512xbf16>
    %c0_2 = arith.constant 0 : index
    %c0_3 = arith.constant 0 : index
    %5 = vector.load %arg8[%c0_2, %c0_3] : memref<512x128xf32, #tpu.memory_space<vmem>>, vector<512x128xf32>
    %c0_4 = arith.constant 0 : index
    %c0_5 = arith.constant 0 : index
    %6 = vector.load %arg3[%c0_4, %c0_5] : memref<512x128xbf16, #tpu.memory_space<vmem>>, vector<512x128xbf16>
    %cst = arith.constant dense<0.000000e+00> : vector<512x128xf32>
    %7 = tpu.matmul %4, %6, %cst {dimension_numbers = #tpu.dot_dimension_numbers<[1], [0], [0], [1], [0, 0, 1, 1], [], []>} : vector<512x512xbf16>, vector<512x128xbf16>, vector<512x128xf32> -> vector<512x128xf32>
    %8 = arith.addf %5, %7 : vector<512x128xf32>
    %c0_6 = arith.constant 0 : index
    %c0_7 = arith.constant 0 : index
    %9 = vector.load %arg8[%c0_6, %c0_7] : memref<512x128xf32, #tpu.memory_space<vmem>>, vector<512x128xf32>
    tpu.vector_store %arg8[%c0_6, %c0_7], %8 {strides = array<i32>} : memref<512x128xf32, #tpu.memory_space<vmem>>, vector<512x128xf32>,
    %c0_i32_8 = arith.constant 0 : i32
    %10 = arith.cmpi eq, %arg1, %c0_i32_8 : i32
    %11 = arith.extui %10 : i1 to i32
    %c0_i32_9 = arith.constant 0 : i32
    %12 = arith.cmpi ne, %11, %c0_i32_9 : i32
    scf.if %12 {
      %c0_10 = arith.constant 0 : index
      %c0_11 = arith.constant 0 : index
      %13 = vector.load %arg5[%c0_10, %c0_11] : memref<512x1xf32, #tpu.memory_space<vmem>>, vector<512x1xf32>
      %c0_12 = arith.constant 0 : index
      %c0_13 = arith.constant 0 : index
      %14 = vector.load %arg8[%c0_12, %c0_13] : memref<512x128xf32, #tpu.memory_space<vmem>>, vector<512x128xf32>
      %15 = vector.broadcast %13 : vector<512x1xf32> to vector<512x128xf32>
      %16 = arith.mulf %15, %14 : vector<512x128xf32>
      %c0_14 = arith.constant 0 : index
      %c0_15 = arith.constant 0 : index
      %17 = vector.load %arg4[%c0_14, %c0_15] : memref<512x128xf32, #tpu.memory_space<vmem>>, vector<512x128xf32>
      %18 = arith.addf %16, %17 : vector<512x128xf32>
      %cst_16 = arith.constant 0.000000e+00 : f32
      %19 = vector.broadcast %cst_16 : f32 to vector<512x128xf32>
      %20 = arith.maximumf %18, %19 : vector<512x128xf32>
      %c0_17 = arith.constant 0 : index
      %c0_18 = arith.constant 0 : index
      %21 = vector.load %arg6[%c0_17, %c0_18] : memref<512x128xbf16, #tpu.memory_space<vmem>>, vector<512x128xbf16>
      %22 = arith.extf %21 : vector<512x128xbf16> to vector<512x128xf32>
      %23 = arith.mulf %20, %22 : vector<512x128xf32>
      %c0_19 = arith.constant 0 : index
      %c0_20 = arith.constant 0 : index
      %24 = vector.load %arg7[%c0_19, %c0_20] : memref<512x128xf32, #tpu.memory_space<vmem>>, vector<512x128xf32>
      tpu.vector_store %arg7[%c0_19, %c0_20], %23 {strides = array<i32>} : memref<512x128xf32, #tpu.memory_space<vmem>>, vector<512x128xf32>,
    } else {
    }
    return
  }
  func.func @transform_0(%arg0: i32, %arg1: i32) -> (i32, i32) {
    %c0_i32 = arith.constant 0 : i32
    return %arg0, %arg1 : i32, i32
  }
  func.func @transform_1(%arg0: i32, %arg1: i32) -> (i32, i32) {
    %c0_i32 = arith.constant 0 : i32
    %c0_i32_0 = arith.constant 0 : i32
    return %arg1, %c0_i32 : i32, i32
  }
  func.func @transform_2(%arg0: i32, %arg1: i32) -> (i32, i32) {
    %c0_i32 = arith.constant 0 : i32
    %c0_i32_0 = arith.constant 0 : i32
    return %arg0, %c0_i32 : i32, i32
  }
  func.func @transform_3(%arg0: i32, %arg1: i32) -> (i32, i32) {
    %c0_i32 = arith.constant 0 : i32
    %c0_i32_0 = arith.constant 0 : i32
    return %arg0, %c0_i32 : i32, i32
  }
  func.func @transform_4(%arg0: i32, %arg1: i32) -> (i32, i32) {
    %c0_i32 = arith.constant 0 : i32
    %c0_i32_0 = arith.constant 0 : i32
    return %arg0, %c0_i32 : i32, i32
  }
  func.func @transform_5(%arg0: i32, %arg1: i32) -> (i32, i32) {
    %c0_i32 = arith.constant 0 : i32
    %c0_i32_0 = arith.constant 0 : i32
    return %arg0, %c0_i32 : i32, i32
  }
}

module attributes {stable_mosaic.version = 11 : i64} {
  func.func @sage_aggregate_kernel(%arg0: i32, %arg1: i32, %arg2: memref<512x512xi8, #tpu.memory_space<vmem>>, %arg3: memref<512x128xbf16, #tpu.memory_space<vmem>>, %arg4: memref<512x128xf32, #tpu.memory_space<vmem>>, %arg5: memref<512x1xf32, #tpu.memory_space<vmem>>, %arg6: memref<512x128xf32, #tpu.memory_space<vmem>>, %arg7: memref<512x128xf32, #tpu.memory_space<vmem>>) attributes {dimension_semantics = [#tpu.dimension_semantics<parallel>, #tpu.dimension_semantics<arbitrary>], iteration_bounds = array<i64: 1, 1>, scalar_prefetch = 0 : i64, scratch_operands = 1 : i64, tpu.core_type = #tpu.core_type<tc>, window_params = [{transform_indices = @transform_0, window_bounds = array<i64: 512, 512>}, {transform_indices = @transform_1, window_bounds = array<i64: 512, 128>}, {transform_indices = @transform_2, window_bounds = array<i64: 512, 128>}, {transform_indices = @transform_3, window_bounds = array<i64: 512, 1>}, {transform_indices = @transform_4, window_bounds = array<i64: 512, 128>}]} {
    %c0_i32 = arith.constant 0 : i32
    %0 = arith.cmpi eq, %arg1, %c0_i32 : i32
    %1 = arith.extui %0 : i1 to i32
    %c0_i32_0 = arith.constant 0 : i32
    %2 = arith.cmpi ne, %1, %c0_i32_0 : i32
    scf.if %2 {
      %cst_10 = arith.constant 0.000000e+00 : f32
      %13 = vector.broadcast %cst_10 : f32 to vector<512x128xf32>
      %c0_11 = arith.constant 0 : index
      %c0_12 = arith.constant 0 : index
      %14 = vector.load %arg7[%c0_11, %c0_12] : memref<512x128xf32, #tpu.memory_space<vmem>>, vector<512x128xf32>
      tpu.vector_store %arg7[%c0_11, %c0_12], %13 {strides = array<i32>} : memref<512x128xf32, #tpu.memory_space<vmem>>, vector<512x128xf32>,
    } else {
    }
    %c0 = arith.constant 0 : index
    %c0_1 = arith.constant 0 : index
    %3 = vector.load %arg2[%c0, %c0_1] : memref<512x512xi8, #tpu.memory_space<vmem>>, vector<512x512xi8>
    %4 = arith.sitofp %3 : vector<512x512xi8> to vector<512x512xbf16>
    %c0_2 = arith.constant 0 : index
    %c0_3 = arith.constant 0 : index
    %5 = vector.load %arg7[%c0_2, %c0_3] : memref<512x128xf32, #tpu.memory_space<vmem>>, vector<512x128xf32>
    %c0_4 = arith.constant 0 : index
    %c0_5 = arith.constant 0 : index
    %6 = vector.load %arg3[%c0_4, %c0_5] : memref<512x128xbf16, #tpu.memory_space<vmem>>, vector<512x128xbf16>
    %cst = arith.constant dense<0.000000e+00> : vector<512x128xf32>
    %7 = tpu.matmul %4, %6, %cst {dimension_numbers = #tpu.dot_dimension_numbers<[1], [0], [0], [1], [0, 0, 1, 1], [], []>} : vector<512x512xbf16>, vector<512x128xbf16>, vector<512x128xf32> -> vector<512x128xf32>
    %8 = arith.addf %5, %7 : vector<512x128xf32>
    %c0_6 = arith.constant 0 : index
    %c0_7 = arith.constant 0 : index
    %9 = vector.load %arg7[%c0_6, %c0_7] : memref<512x128xf32, #tpu.memory_space<vmem>>, vector<512x128xf32>
    tpu.vector_store %arg7[%c0_6, %c0_7], %8 {strides = array<i32>} : memref<512x128xf32, #tpu.memory_space<vmem>>, vector<512x128xf32>,
    %c0_i32_8 = arith.constant 0 : i32
    %10 = arith.cmpi eq, %arg1, %c0_i32_8 : i32
    %11 = arith.extui %10 : i1 to i32
    %c0_i32_9 = arith.constant 0 : i32
    %12 = arith.cmpi ne, %11, %c0_i32_9 : i32
    scf.if %12 {
      %c0_10 = arith.constant 0 : index
      %c0_11 = arith.constant 0 : index
      %13 = vector.load %arg5[%c0_10, %c0_11] : memref<512x1xf32, #tpu.memory_space<vmem>>, vector<512x1xf32>
      %c0_12 = arith.constant 0 : index
      %c0_13 = arith.constant 0 : index
      %14 = vector.load %arg7[%c0_12, %c0_13] : memref<512x128xf32, #tpu.memory_space<vmem>>, vector<512x128xf32>
      %15 = vector.broadcast %13 : vector<512x1xf32> to vector<512x128xf32>
      %16 = arith.mulf %15, %14 : vector<512x128xf32>
      %c0_14 = arith.constant 0 : index
      %c0_15 = arith.constant 0 : index
      %17 = vector.load %arg4[%c0_14, %c0_15] : memref<512x128xf32, #tpu.memory_space<vmem>>, vector<512x128xf32>
      %18 = arith.addf %16, %17 : vector<512x128xf32>
      %c0_16 = arith.constant 0 : index
      %c0_17 = arith.constant 0 : index
      %19 = vector.load %arg6[%c0_16, %c0_17] : memref<512x128xf32, #tpu.memory_space<vmem>>, vector<512x128xf32>
      tpu.vector_store %arg6[%c0_16, %c0_17], %18 {strides = array<i32>} : memref<512x128xf32, #tpu.memory_space<vmem>>, vector<512x128xf32>,
    } else {
    }
    return
  }
  func.func @transform_0(%arg0: i32, %arg1: i32) -> (i32, i32) {
    %c0_i32 = arith.constant 0 : i32
    return %arg0, %arg1 : i32, i32
  }
  func.func @transform_1(%arg0: i32, %arg1: i32) -> (i32, i32) {
    %c0_i32 = arith.constant 0 : i32
    %c0_i32_0 = arith.constant 0 : i32
    return %arg1, %c0_i32 : i32, i32
  }
  func.func @transform_2(%arg0: i32, %arg1: i32) -> (i32, i32) {
    %c0_i32 = arith.constant 0 : i32
    %c0_i32_0 = arith.constant 0 : i32
    return %arg0, %c0_i32 : i32, i32
  }
  func.func @transform_3(%arg0: i32, %arg1: i32) -> (i32, i32) {
    %c0_i32 = arith.constant 0 : i32
    %c0_i32_0 = arith.constant 0 : i32
    return %arg0, %c0_i32 : i32, i32
  }
  func.func @transform_4(%arg0: i32, %arg1: i32) -> (i32, i32) {
    %c0_i32 = arith.constant 0 : i32
    %c0_i32_0 = arith.constant 0 : i32
    return %arg0, %c0_i32 : i32, i32
  }
}

</mosaic_0001>

<bundles_post_ra>
// kernel: graphsage_forward.3
= control target key start
LH: loop header
LB: loop body
LE: loop exit
PB: predicated region body
PF: predicated region fallthrough
CT: control target
= control target key end

     0   :  { %v2082_v0 = vmov 0   ;;  %s3014_s1 = inlined_call_operand.vmem [shape: bf16[512,128], index: 1, kind: input, shape index: {}]   ;;  %s3015_s0 = inlined_call_operand.vmem [shape: s8[512,512], index: 0, kind: input, shape index: {}]   ;;  %s3016_s3 = inlined_call_operand.vmem [shape: f32[512,1], index: 3, kind: input, shape index: {}]   ;;  %s3017_s2 = inlined_call_operand.vmem [shape: f32[512,128], index: 2, kind: input, shape index: {}]   ;;  %s3018_s4 = inlined_call_operand.vmem [shape: f32[512,128], index: 4, kind: output, shape index: {}]  }
   0x1   :  { %598 = vmatprep.subr.bf16.mxu0 %v2082_v0  ;;  %887 = vmatprep.subr.bf16.mxu1 %v2082_v0  ;;  %v2050_v1 = vld [vmem:[%s3014_s1 + $0x38] sm:$0xff]   ;;  %v2052_v3 = vld [vmem:[%s3014_s1 + $0x30] sm:$0xff]   ;;  %v2054_v5 = vld [vmem:[%s3014_s1 + $0x28] sm:$0xff]  }
   0x2   :  { %v2051_v2 = vld [vmem:[%s3014_s1 + $0xb8] sm:$0xff]   ;;  %2048 = vset.pattern.permute.xlu0 %v2082_v0  ;;  %2049 = vset.pattern.permute.xlu1 %v2082_v0  ;;  %v2053_v4 = vld [vmem:[%s3014_s1 + $0xb0] sm:$0xff]   ;;  %v2055_v6 = vld [vmem:[%s3014_s1 + $0xa8] sm:$0xff]  }
   0x3   :  { %599 = vmatpush1.bf16.msra.mxu0 %v2050_v1  ;;  %888 = vmatpush1.bf16.msra.mxu1 %v2051_v2  ;;  %v2056_v7 = vld [vmem:[%s3014_s1 + $0x20] sm:$0xff]   ;;  %v2058_v9 = vld [vmem:[%s3014_s1 + $0x18] sm:$0xff]   ;;  %v2060_v11 = vld [vmem:[%s3014_s1 + $0x10] sm:$0xff]  }
   0x4   :  { %600 = vmatprep.subr.bf16.mxu0 %v2082_v0  ;;  %889 = vmatprep.subr.bf16.mxu1 %v2082_v0  ;;  %v2057_v8 = vld [vmem:[%s3014_s1 + $0xa0] sm:$0xff]   ;;  %v2059_v10 = vld [vmem:[%s3014_s1 + $0x98] sm:$0xff]   ;;  %v2061_v12 = vld [vmem:[%s3014_s1 + $0x90] sm:$0xff]  }
   0x5   :  { %v2062_v13 = vld [vmem:[%s3014_s1 + $0x8] sm:$0xff]   ;;  %v2064_v15 = vld [vmem:[%s3014_s1] sm:$0xff]   ;;  %v2066_v17 = vld [vmem:[%s3014_s1 + $0x78] sm:$0xff]  }
   0x6   :  { %v2063_v14 = vld [vmem:[%s3014_s1 + $0x88] sm:$0xff]   ;;  %v2065_v16 = vld [vmem:[%s3014_s1 + $0x80] sm:$0xff]   ;;  %v2067_v18 = vld [vmem:[%s3014_s1 + $0xf8] sm:$0xff]  }
   0x7   :  { %601 = vmatpush1.bf16.msra.mxu0 %v2052_v3  ;;  %890 = vmatpush1.bf16.msra.mxu1 %v2053_v4  ;;  %v2185_v19 = vld [vmem:[%s3015_s0 + $0x8] sm:$0xff]  ;;  %v2190_v20 = vld [vmem:[%s3015_s0 + $0x18] sm:$0xff]  ;;  %v2068_v23 = vld [vmem:[%s3014_s1 + $0x70] sm:$0xff]  }
   0x8   :  { %602 = vmatprep.subr.bf16.mxu0 %v2082_v0  ;;  %891 = vmatprep.subr.bf16.mxu1 %v2082_v0  ;;  %v151_v21 = vunpack.c.l.s8.bf16 %v2185_v19  ;;  %v153_v22 = vunpack.c.l.s8.bf16 %v2190_v20  ;;  %v2069_v24 = vld [vmem:[%s3014_s1 + $0xf0] sm:$0xff]   ;;  %v2070_v25 = vld [vmem:[%s3014_s1 + $0x68] sm:$0xff]   ;;  %v1307_v26 = vld [vmem:[%s3016_s3] sm:$0xff]  ;;  %v155_v53 = vunpack.c.h.s8.bf16 %v2185_v19  ;;  %v157_v56 = vunpack.c.h.s8.bf16 %v2190_v20 }
   0x9   :  { %v2071_v27 = vld [vmem:[%s3014_s1 + $0xe8] sm:$0xff]   ;;  %v1309_v28 = vld [vmem:[%s3016_s3 + $0x10] sm:$0xff]  ;;  %1437 = vperm.xlu0 %2048, %v1307_v26   ;;  %v2072_v30 = vld [vmem:[%s3014_s1 + $0x60] sm:$0xff]  }
   0xa   :  { %630 = vmatprep.mubr.bf16.mxu0 %v151_v21  ;;  %919 = vmatprep.mubr.bf16.mxu1 %v153_v22  ;;  %v1308_v29 = vld [vmem:[%s3016_s3 + $0x8] sm:$0xff]  ;;  %v1310_v31 = vld [vmem:[%s3016_s3 + $0x18] sm:$0xff]  ;;  %v2073_v32 = vld [vmem:[%s3014_s1 + $0xe0] sm:$0xff]  }
   0xb   :  { %603 = vmatpush1.bf16.msra.mxu0 %v2054_v5  ;;  %892 = vmatpush1.bf16.msra.mxu1 %v2055_v6  ;;  %v1311_v33 = vld [vmem:[%s3016_s3 + $0x20] sm:$0xff]  ;;  %v2074_v34 = vld [vmem:[%s3014_s1 + $0x58] sm:$0xff]   ;;  %v1312_v35 = vld [vmem:[%s3016_s3 + $0x28] sm:$0xff] }
   0xc   :  { %604 = vmatprep.subr.bf16.mxu0 %v2082_v0  ;;  %893 = vmatprep.subr.bf16.mxu1 %v2082_v0  ;;  %v2075_v36 = vld [vmem:[%s3014_s1 + $0xd8] sm:$0xff]   ;;  %v1313_v37 = vld [vmem:[%s3016_s3 + $0x30] sm:$0xff]  ;;  %v1315_v41 = vld [vmem:[%s3016_s3 + $0x40] sm:$0xff] }
   0xd   :  { %1447 = vperm.xlu1 %2049, %v1309_v28   ;;  %1442 = vperm.xlu0 %2048, %v1308_v29   ;;  %v2076_v38 = vld [vmem:[%s3014_s1 + $0x50] sm:$0xff]   ;;  %v1314_v39 = vld [vmem:[%s3016_s3 + $0x38] sm:$0xff]  ;;  %v2078_v42 = vld [vmem:[%s3014_s1 + $0x48] sm:$0xff]  }
   0xe   :  { %v2077_v40 = vld [vmem:[%s3014_s1 + $0xd0] sm:$0xff]   ;;  %v1316_v43 = vld [vmem:[%s3016_s3 + $0x48] sm:$0xff]  ;;  %v2080_v46 = vld [vmem:[%s3014_s1 + $0x40] sm:$0xff]  }
   0xf   :  { %605 = vmatpush1.bf16.msra.mxu0 %v2056_v7  ;;  %894 = vmatpush1.bf16.msra.mxu1 %v2057_v8  ;;  %v2079_v44 = vld [vmem:[%s3014_s1 + $0xc8] sm:$0xff]   ;;  %v1317_v45 = vld [vmem:[%s3016_s3 + $0x50] sm:$0xff]  ;;  %v86_v47 = vld [vmem:[%s3015_s0] sm:$0xff] }
  0x10   :  { %606 = vmatprep.subr.bf16.mxu0 %v2082_v0  ;;  %895 = vmatprep.subr.bf16.mxu1 %v2082_v0  ;;  %v1318_v48 = vld [vmem:[%s3016_s3 + $0x58] sm:$0xff]  ;;  %v2081_v49 = vld [vmem:[%s3014_s1 + $0xc0] sm:$0xff]   ;;  %v88_v50 = vld [vmem:[%s3015_s0 + $0x10] sm:$0xff]  ;;  %v150_v51 = vunpack.c.l.s8.bf16 %v86_v47  ;;  %v154_v61 = vunpack.c.h.s8.bf16 %v86_v47 }
  0x11   :  { %1452 = vperm.xlu1 %2049, %v1310_v31   ;;  %1457 = vperm.xlu0 %2048, %v1311_v33   ;;  %v1319_v52 = vld [vmem:[%s3016_s3 + $0x60] sm:$0xff]  ;;  %v152_v54 = vunpack.c.l.s8.bf16 %v88_v50  ;;  %v1320_v55 = vld [vmem:[%s3016_s3 + $0x68] sm:$0xff]  ;;  %v1321_v57 = vld [vmem:[%s3016_s3 + $0x70] sm:$0xff]  ;;  %v156_v63 = vunpack.c.h.s8.bf16 %v88_v50 }
  0x12   :  { %v1322_v58 = vld [vmem:[%s3016_s3 + $0x78] sm:$0xff]  ;;  %v91_v59 = vld [vmem:[%s3015_s0 + $0x28] sm:$0xff]  ;;  %v1323_v62 = vld [vmem:[%s3016_s3 + $0x80] sm:$0xff] }
  0x13   :  { %607 = vmatpush1.bf16.msra.mxu0 %v2058_v9  ;;  %896 = vmatpush1.bf16.msra.mxu1 %v2059_v10  ;;  %v93_v60 = vld [vmem:[%s3015_s0 + $0x38] sm:$0xff]  ;;  %v1324_v1 = vld [vmem:[%s3016_s3 + $0x88] sm:$0xff]  ;;  %v1325_v3 = vld [vmem:[%s3016_s3 + $0x90] sm:$0xff]  ;;  %v163_v10 = vunpack.c.h.s8.bf16 %v91_v59 }
  0x14   :  { %608 = vmatprep.subr.bf16.mxu0 %v2082_v0  ;;  %897 = vmatprep.subr.bf16.mxu1 %v2082_v0  ;;  %v161_v2 = vunpack.c.l.s8.bf16 %v93_v60  ;;  %v90_v4 = vld [vmem:[%s3015_s0 + $0x20] sm:$0xff]  ;;  %v1326_v5 = vld [vmem:[%s3016_s3 + $0x98] sm:$0xff]  ;;  %v92_v6 = vld [vmem:[%s3015_s0 + $0x30] sm:$0xff] }
  0x15   :  { %1462 = vperm.xlu1 %2049, %v1312_v35   ;;  %1467 = vperm.xlu0 %2048, %v1313_v37   ;;  %v158_v7 = vunpack.c.l.s8.bf16 %v90_v4  ;;  %v1327_v8 = vld [vmem:[%s3016_s3 + $0xa0] sm:$0xff]  ;;  %v160_v9 = vunpack.c.l.s8.bf16 %v92_v6  ;;  %v164_v19 = vunpack.c.h.s8.bf16 %v92_v6  ;;  %v1332_v21 = vld [vmem:[%s3016_s3 + $0xc8] sm:$0xff]  ;;  %v96_v26 = vld [vmem:[%s3015_s0 + $0x50] sm:$0xff] }
  0x16   :  { %v1335_v28 = vld [vmem:[%s3016_s3 + $0xe0] sm:$0xff]  ;;  %v168_v29 = vunpack.c.l.s8.bf16 %v96_v26  ;;  %v1336_v31 = vld [vmem:[%s3016_s3 + $0xe8] sm:$0xff]  ;;  %v1337_v33 = vld [vmem:[%s3016_s3 + $0xf0] sm:$0xff] }
  0x17   :  { %609 = vmatpush1.bf16.msra.mxu0 %v2060_v11  ;;  %898 = vmatpush1.bf16.msra.mxu1 %v2061_v12  ;;  %v1328_v11 = vld [vmem:[%s3016_s3 + $0xa8] sm:$0xff]  ;;  %v165_v12 = vunpack.c.h.s8.bf16 %v93_v60 }
  0x18   :  { %610 = vmatprep.subr.bf16.mxu0 %v2082_v0  ;;  %899 = vmatprep.subr.bf16.mxu1 %v2082_v0  ;;  %v99_v35 = vld [vmem:[%s3015_s0 + $0x68] sm:$0xff] }
  0x19   :  { %1472 = vperm.xlu1 %2049, %v1314_v39   ;;  %1477 = vperm.xlu0 %2048, %v1315_v41   ;;  %v172_v39 = vunpack.c.h.s8.bf16 %v96_v26  ;;  %v1340_v41 = vld [vmem:[%s3016_s3 + $0x108] sm:$0xff]  ;;  %v179_v50 = vunpack.c.h.s8.bf16 %v99_v35 }
  0x1b   :  { %611 = vmatpush1.bf16.msra.mxu0 %v2062_v13  ;;  %900 = vmatpush1.bf16.msra.mxu1 %v2063_v14  ;;  %v1329_v13 = vld [vmem:[%s3016_s3 + $0xb0] sm:$0xff]  ;;  %v1330_v14 = vld [vmem:[%s3016_s3 + $0xb8] sm:$0xff] }
  0x1c   :  { %612 = vmatprep.subr.bf16.mxu0 %v2082_v0  ;;  %901 = vmatprep.subr.bf16.mxu1 %v2082_v0 }
  0x1d   :  { %1482 = vperm.xlu1 %2049, %v1316_v43   ;;  %1487 = vperm.xlu0 %2048, %v1317_v45   ;;  %v1341_v43 = vld [vmem:[%s3016_s3 + $0x110] sm:$0xff]  ;;  %v1342_v45 = vld [vmem:[%s3016_s3 + $0x118] sm:$0xff] }
  0x1f   :  { %613 = vmatpush1.bf16.msra.mxu0 %v2064_v15  ;;  %902 = vmatpush1.bf16.msra.mxu1 %v2065_v16  ;;  %v95_v15 = vld [vmem:[%s3015_s0 + $0x48] sm:$0xff]  ;;  %v97_v16 = vld [vmem:[%s3015_s0 + $0x58] sm:$0xff] }
  0x20   :  { %614 = vmatprep.subr.bf16.mxu0 %v2082_v0  ;;  %903 = vmatprep.subr.bf16.mxu1 %v2082_v0  ;;  %v167_v20 = vunpack.c.l.s8.bf16 %v95_v15  ;;  %v169_v22 = vunpack.c.l.s8.bf16 %v97_v16 }
  0x21   :  { %1492 = vperm.xlu1 %2049, %v1318_v48   ;;  %1497 = vperm.xlu0 %2048, %v1319_v52   ;;  %v1343_v48 = vld [vmem:[%s3016_s3 + $0x120] sm:$0xff] }
  0x23   :  { %615 = vmatpush2.bf16.msra.mxu0 %v2066_v17  ;;  %904 = vmatpush2.bf16.msra.mxu1 %v2067_v18  ;;  %v162_v17 = vunpack.c.h.s8.bf16 %v90_v4  ;;  %v1331_v18 = vld [vmem:[%s3016_s3 + $0xc0] sm:$0xff] }
  0x24   :  { %616 = vmatprep.subr.bf16.mxu0 %v2082_v0  ;;  %905 = vmatprep.subr.bf16.mxu1 %v2082_v0  ;;  %v1351_v4 = vld [vmem:[%s3016_s3 + $0x160] sm:$0xff] }
  0x25   :  { %1502 = vperm.xlu1 %2049, %v1320_v55   ;;  %1507 = vperm.xlu0 %2048, %v1321_v57   ;;  %v103_v55 = vld [vmem:[%s3015_s0 + $0x88] sm:$0xff] }
  0x26   :  { %v183_v60 = vunpack.c.l.s8.bf16 %v103_v55  ;;  %v187_v6 = vunpack.c.h.s8.bf16 %v103_v55 }
  0x27   :  { %617 = vmatpush2.bf16.msra.mxu0 %v2068_v23  ;;  %906 = vmatpush2.bf16.msra.mxu1 %v2069_v24  ;;  %v1333_v23 = vld [vmem:[%s3016_s3 + $0xd0] sm:$0xff]  ;;  %v94_v24 = vld [vmem:[%s3015_s0 + $0x40] sm:$0xff] }
  0x28   :  { %618 = vmatprep.subr.bf16.mxu0 %v2082_v0  ;;  %907 = vmatprep.subr.bf16.mxu1 %v2082_v0  ;;  %v170_v37 = vunpack.c.h.s8.bf16 %v94_v24 }
  0x29   :  { %1512 = vperm.xlu1 %2049, %v1322_v58   ;;  %1517 = vperm.xlu0 %2048, %v1323_v62   ;;  %v1347_v58 = vld [vmem:[%s3016_s3 + $0x140] sm:$0xff] }
  0x2b   :  { %619 = vmatpush2.bf16.msra.mxu0 %v2070_v25  ;;  %908 = vmatpush2.bf16.msra.mxu1 %v2071_v27  ;;  %v1334_v25 = vld [vmem:[%s3016_s3 + $0xd8] sm:$0xff]  ;;  %v166_v27 = vunpack.c.l.s8.bf16 %v94_v24  ;;  %v1359_v24 = vld [vmem:[%s3016_s3 + $0x1a0] sm:$0xff] }
  0x2c   :  { %620 = vmatprep.subr.bf16.mxu0 %v2082_v0  ;;  %909 = vmatprep.subr.bf16.mxu1 %v2082_v0 }
  0x2d   :  { %1522 = vperm.xlu1 %2049, %v1324_v1   ;;  %1527 = vperm.xlu0 %2048, %v1325_v3   ;;  %v1350_v1 = vld [vmem:[%s3016_s3 + $0x158] sm:$0xff] }
  0x2f   :  { %621 = vmatpush2.bf16.msra.mxu0 %v2072_v30  ;;  %910 = vmatpush2.bf16.msra.mxu1 %v2073_v32  ;;  %v171_v30 = vunpack.c.h.s8.bf16 %v95_v15  ;;  %v173_v32 = vunpack.c.h.s8.bf16 %v97_v16 }
  0x30   :  { %622 = vmatprep.subr.bf16.mxu0 %v2082_v0  ;;  %911 = vmatprep.subr.bf16.mxu1 %v2082_v0 }
  0x31   :  { %1532 = vperm.xlu1 %2049, %v1326_v5   ;;  %1537 = vperm.xlu0 %2048, %v1327_v8  }
  0x33   :  { %623 = vmatpush2.bf16.msra.mxu0 %v2074_v34  ;;  %912 = vmatpush2.bf16.msra.mxu1 %v2075_v36  ;;  %v1338_v34 = vld [vmem:[%s3016_s3 + $0xf8] sm:$0xff] }
  0x34   :  { %624 = vmatprep.subr.bf16.mxu0 %v2082_v0  ;;  %913 = vmatprep.subr.bf16.mxu1 %v2082_v0  ;;  %v101_v36 = vld [vmem:[%s3015_s0 + $0x78] sm:$0xff] }
  0x35   :  { %1542 = vperm.xlu1 %2049, %v1328_v11   ;;  %1547 = vperm.xlu0 %2048, %v1329_v13   ;;  %v181_v52 = vunpack.c.h.s8.bf16 %v101_v36  ;;  %v107_v11 = vld [vmem:[%s3015_s0 + $0xa8] sm:$0xff] }
  0x36   :  { %v191_v16 = vunpack.c.l.s8.bf16 %v107_v11  ;;  %v195_v26 = vunpack.c.h.s8.bf16 %v107_v11  ;;  %v123_v11 = vld [vmem:[%s3015_s0 + $0x128] sm:$0xff] }
  0x37   :  { %625 = vmatpush2.bf16.msra.mxu0 %v2076_v38  ;;  %914 = vmatpush2.bf16.msra.mxu1 %v2077_v40  ;;  %v1339_v38 = vld [vmem:[%s3016_s3 + $0x100] sm:$0xff]  ;;  %v175_v40 = vunpack.c.l.s8.bf16 %v99_v35 }
  0x38   :  { %626 = vmatprep.subr.bf16.mxu0 %v2082_v0  ;;  %915 = vmatprep.subr.bf16.mxu1 %v2082_v0 }
  0x39   :  { %1552 = vperm.xlu1 %2049, %v1330_v14   ;;  %1557 = vperm.xlu0 %2048, %v1331_v18   ;;  %v1355_v14 = vld [vmem:[%s3016_s3 + $0x180] sm:$0xff] }
  0x3b   :  { %627 = vmatpush2.bf16.msra.mxu0 %v2078_v42  ;;  %916 = vmatpush2.bf16.msra.mxu1 %v2079_v44  ;;  %v177_v42 = vunpack.c.l.s8.bf16 %v101_v36  ;;  %v98_v44 = vld [vmem:[%s3015_s0 + $0x60] sm:$0xff] }
  0x3c   :  { %628 = vmatprep.subr.bf16.mxu0 %v2082_v0  ;;  %917 = vmatprep.subr.bf16.mxu1 %v2082_v0  ;;  %v159_v0 = vunpack.c.l.s8.bf16 %v91_v59  ;;  %v174_v47 = vunpack.c.l.s8.bf16 %v98_v44  ;;  %v178_v57 = vunpack.c.h.s8.bf16 %v98_v44  ;;  %v1367_v44 = vld [vmem:[%s3016_s3 + $0x1e0] sm:$0xff] }
  0x3d   :  { %1562 = vperm.xlu1 %2049, %v1332_v21   ;;  %1567 = vperm.xlu0 %2048, %v1333_v23   ;;  %v1358_v21 = vld [vmem:[%s3016_s3 + $0x198] sm:$0xff] }
  0x3f   :  { %629 = vmatpush2.bf16.msra.mxu0 %v2080_v46  ;;  %918 = vmatpush2.bf16.msra.mxu1 %v2081_v49  ;;  %v100_v46 = vld [vmem:[%s3015_s0 + $0x70] sm:$0xff] }
  0x40   :  { %v176_v49 = vunpack.c.l.s8.bf16 %v100_v46  ;;  %v180_v59 = vunpack.c.h.s8.bf16 %v100_v46 }
  0x41   :  { %1572 = vperm.xlu1 %2049, %v1334_v25   ;;  %1577 = vperm.xlu0 %2048, %v1335_v28  }
  0x42   :  { %631 = vmatmul.mubr.bf16.vlgmr.msra.gmra.mxu0 %v150_v51  ;;  %920 = vmatmul.mubr.bf16.vlgmr.msra.gmra.mxu1 %v152_v54  ;;  %v1344_v51 = vld [vmem:[%s3016_s3 + $0x128] sm:$0xff]  ;;  %v1346_v54 = vld [vmem:[%s3016_s3 + $0x138] sm:$0xff] }
  0x43   :  { %638 = vmatprep.mubr.bf16.mxu0 %v155_v53  ;;  %927 = vmatprep.mubr.bf16.mxu1 %v157_v56  ;;  %v1345_v53 = vld [vmem:[%s3016_s3 + $0x130] sm:$0xff]  ;;  %v105_v56 = vld [vmem:[%s3015_s0 + $0x98] sm:$0xff] }
  0x44   :  { %v185_v62 = vunpack.c.l.s8.bf16 %v105_v56  ;;  %v189_v8 = vunpack.c.h.s8.bf16 %v105_v56 }
  0x45   :  { %1582 = vperm.xlu1 %2049, %v1336_v31   ;;  %1587 = vperm.xlu0 %2048, %v1337_v33   ;;  %v111_v31 = vld [vmem:[%s3015_s0 + $0xc8] sm:$0xff] }
  0x46   :  { %v199_v36 = vunpack.c.l.s8.bf16 %v111_v31  ;;  %v203_v46 = vunpack.c.h.s8.bf16 %v111_v31 }
  0x49   :  { %1592 = vperm.xlu1 %2049, %v1338_v34   ;;  %1597 = vperm.xlu0 %2048, %v1339_v38   ;;  %v1363_v34 = vld [vmem:[%s3016_s3 + $0x1c0] sm:$0xff] }
  0x4a   :  { %639 = vmatmul.mubr.bf16.gmra.mxu0 %v154_v61  ;;  %928 = vmatmul.mubr.bf16.gmra.mxu1 %v156_v63  ;;  %v1348_v61 = vld [vmem:[%s3016_s3 + $0x148] sm:$0xff]  ;;  %v1349_v63 = vld [vmem:[%s3016_s3 + $0x150] sm:$0xff] }
  0x4b   :  { %646 = vmatprep.mubr.bf16.mxu0 %v159_v0  ;;  %935 = vmatprep.mubr.bf16.mxu1 %v161_v2  ;;  %v102_v0 = vld [vmem:[%s3015_s0 + $0x80] sm:$0xff]  ;;  %v104_v2 = vld [vmem:[%s3015_s0 + $0x90] sm:$0xff] }
  0x4c   :  { %v182_v3 = vunpack.c.l.s8.bf16 %v102_v0  ;;  %v184_v5 = vunpack.c.l.s8.bf16 %v104_v2  ;;  %v186_v13 = vunpack.c.h.s8.bf16 %v102_v0  ;;  %v188_v15 = vunpack.c.h.s8.bf16 %v104_v2  ;;  %v121_v0 = vld [vmem:[%s3015_s0 + $0x118] sm:$0xff] }
  0x4d   :  { %1602 = vperm.xlu1 %2049, %v1340_v41   ;;  %1607 = vperm.xlu0 %2048, %v1341_v43   ;;  %v1366_v41 = vld [vmem:[%s3016_s3 + $0x1d8] sm:$0xff] }
  0x51   :  { %1612 = vperm.xlu1 %2049, %v1342_v45   ;;  %1617 = vperm.xlu0 %2048, %v1343_v48  }
  0x52   :  { %647 = vmatmul.mubr.bf16.gmra.mxu0 %v158_v7  ;;  %936 = vmatmul.mubr.bf16.gmra.mxu1 %v160_v9  ;;  %v1352_v7 = vld [vmem:[%s3016_s3 + $0x168] sm:$0xff]  ;;  %v1353_v9 = vld [vmem:[%s3016_s3 + $0x170] sm:$0xff] }
  0x53   :  { %654 = vmatprep.mubr.bf16.mxu0 %v163_v10  ;;  %943 = vmatprep.mubr.bf16.mxu1 %v165_v12  ;;  %v1354_v10 = vld [vmem:[%s3016_s3 + $0x178] sm:$0xff] }
  0x54   :  { %v109_v12 = vld [vmem:[%s3015_s0 + $0xb8] sm:$0xff] }
  0x55   :  { %1622 = vperm.xlu1 %2049, %v1344_v51   ;;  %1627 = vperm.xlu0 %2048, %v1345_v53   ;;  %v193_v18 = vunpack.c.l.s8.bf16 %v109_v12  ;;  %v197_v28 = vunpack.c.h.s8.bf16 %v109_v12  ;;  %v115_v51 = vld [vmem:[%s3015_s0 + $0xe8] sm:$0xff]  ;;  %v125_v12 = vld [vmem:[%s3015_s0 + $0x138] sm:$0xff] }
  0x56   :  { %v207_v55 = vunpack.c.l.s8.bf16 %v115_v51 }
  0x59   :  { %1632 = vperm.xlu1 %2049, %v1346_v54   ;;  %1637 = vperm.xlu0 %2048, %v1347_v58   ;;  %v116_v58 = vld [vmem:[%s3015_s0 + $0xf0] sm:$0xff] }
  0x5a   :  { %655 = vmatmul.mubr.bf16.gmra.mxu0 %v162_v17  ;;  %944 = vmatmul.mubr.bf16.gmra.mxu1 %v164_v19  ;;  %v1356_v17 = vld [vmem:[%s3016_s3 + $0x188] sm:$0xff]  ;;  %v1357_v19 = vld [vmem:[%s3016_s3 + $0x190] sm:$0xff]  ;;  %v212_v2 = vunpack.c.h.s8.bf16 %v116_v58 }
  0x5b   :  { %662 = vmatprep.mubr.bf16.mxu0 %v167_v20  ;;  %951 = vmatprep.mubr.bf16.mxu1 %v169_v22  ;;  %v106_v20 = vld [vmem:[%s3015_s0 + $0xa0] sm:$0xff]  ;;  %v108_v22 = vld [vmem:[%s3015_s0 + $0xb0] sm:$0xff] }
  0x5c   :  { %v190_v23 = vunpack.c.l.s8.bf16 %v106_v20  ;;  %v192_v25 = vunpack.c.l.s8.bf16 %v108_v22  ;;  %v194_v33 = vunpack.c.h.s8.bf16 %v106_v20  ;;  %v196_v35 = vunpack.c.h.s8.bf16 %v108_v22 }
  0x5d   :  { %1642 = vperm.xlu1 %2049, %v1348_v61   ;;  %1647 = vperm.xlu0 %2048, %v1349_v63   ;;  %v211_v61 = vunpack.c.h.s8.bf16 %v115_v51  ;;  %v119_v63 = vld [vmem:[%s3015_s0 + $0x108] sm:$0xff]  ;;  %v229_v22 = vunpack.c.h.s8.bf16 %v125_v12 }
  0x61   :  { %1652 = vperm.xlu1 %2049, %v1350_v1   ;;  %1657 = vperm.xlu0 %2048, %v1351_v4   ;;  %v217_v4 = vunpack.c.l.s8.bf16 %v121_v0 }
  0x62   :  { %663 = vmatmul.mubr.bf16.gmra.mxu0 %v166_v27  ;;  %952 = vmatmul.mubr.bf16.gmra.mxu1 %v168_v29  ;;  %v1360_v27 = vld [vmem:[%s3016_s3 + $0x1a8] sm:$0xff]  ;;  %v1361_v29 = vld [vmem:[%s3016_s3 + $0x1b0] sm:$0xff] }
  0x63   :  { %670 = vmatprep.mubr.bf16.mxu0 %v171_v30  ;;  %959 = vmatprep.mubr.bf16.mxu1 %v173_v32  ;;  %v1362_v30 = vld [vmem:[%s3016_s3 + $0x1b8] sm:$0xff] }
  0x64   :  { %v113_v32 = vld [vmem:[%s3015_s0 + $0xd8] sm:$0xff] }
  0x65   :  { %1662 = vperm.xlu1 %2049, %v1352_v7   ;;  %1667 = vperm.xlu0 %2048, %v1353_v9   ;;  %v201_v38 = vunpack.c.l.s8.bf16 %v113_v32  ;;  %v205_v48 = vunpack.c.h.s8.bf16 %v113_v32  ;;  %v219_v9 = vunpack.c.h.s8.bf16 %v119_v63 }
  0x69   :  { %1672 = vperm.xlu1 %2049, %v1354_v10   ;;  %1677 = vperm.xlu0 %2048, %v1355_v14   ;;  %v221_v10 = vunpack.c.h.s8.bf16 %v121_v0  ;;  %v139_v0 = vld [vmem:[%s3015_s0 + $0x1a8] sm:$0xff] }
  0x6a   :  { %671 = vmatmul.mubr.bf16.gmra.mxu0 %v170_v37  ;;  %960 = vmatmul.mubr.bf16.gmra.mxu1 %v172_v39  ;;  %v1364_v37 = vld [vmem:[%s3016_s3 + $0x1c8] sm:$0xff]  ;;  %v1365_v39 = vld [vmem:[%s3016_s3 + $0x1d0] sm:$0xff] }
  0x6b   :  { %678 = vmatprep.mubr.bf16.mxu0 %v175_v40  ;;  %967 = vmatprep.mubr.bf16.mxu1 %v177_v42  ;;  %v110_v40 = vld [vmem:[%s3015_s0 + $0xc0] sm:$0xff]  ;;  %v112_v42 = vld [vmem:[%s3015_s0 + $0xd0] sm:$0xff] }
  0x6c   :  { %v198_v43 = vunpack.c.l.s8.bf16 %v110_v40  ;;  %v200_v45 = vunpack.c.l.s8.bf16 %v112_v42  ;;  %v202_v53 = vunpack.c.h.s8.bf16 %v110_v40  ;;  %v204_v54 = vunpack.c.h.s8.bf16 %v112_v42  ;;  %v132_v42 = vld [vmem:[%s3015_s0 + $0x170] sm:$0xff] }
  0x6d   :  { %1682 = vperm.xlu1 %2049, %v1356_v17   ;;  %1687 = vperm.xlu0 %2048, %v1357_v19   ;;  %v122_v17 = vld [vmem:[%s3015_s0 + $0x120] sm:$0xff] }
  0x6e   :  { %v222_v19 = vunpack.c.l.s8.bf16 %v122_v17 }
  0x71   :  { %1692 = vperm.xlu1 %2049, %v1358_v21   ;;  %1697 = vperm.xlu0 %2048, %v1359_v24   ;;  %v227_v21 = vunpack.c.h.s8.bf16 %v123_v11  ;;  %v129_v24 = vld [vmem:[%s3015_s0 + $0x158] sm:$0xff] }
  0x72   :  { %679 = vmatmul.mubr.bf16.gmra.mxu0 %v174_v47  ;;  %968 = vmatmul.mubr.bf16.gmra.mxu1 %v176_v49  ;;  %v1368_v47 = vld [vmem:[%s3016_s3 + $0x1e8] sm:$0xff]  ;;  %v1369_v49 = vld [vmem:[%s3016_s3 + $0x1f0] sm:$0xff] }
  0x73   :  { %686 = vmatprep.mubr.bf16.mxu0 %v179_v50  ;;  %975 = vmatprep.mubr.bf16.mxu1 %v181_v52  ;;  %v1370_v50 = vld [vmem:[%s3016_s3 + $0x1f8] sm:$0xff] }
  0x74   :  { %v117_v52 = vld [vmem:[%s3015_s0 + $0xf8] sm:$0xff] }
  0x75   :  { %1702 = vperm.xlu1 %2049, %v1360_v27   ;;  %1707 = vperm.xlu0 %2048, %v1361_v29   ;;  %v209_v56 = vunpack.c.l.s8.bf16 %v117_v52  ;;  %v126_v29 = vld [vmem:[%s3015_s0 + $0x140] sm:$0xff] }
  0x76   :  { %v230_v31 = vunpack.c.l.s8.bf16 %v126_v29 }
  0x79   :  { %1712 = vperm.xlu1 %2049, %v1362_v30   ;;  %1717 = vperm.xlu0 %2048, %v1363_v34   ;;  %v128_v30 = vld [vmem:[%s3015_s0 + $0x150] sm:$0xff]  ;;  %v237_v34 = vunpack.c.h.s8.bf16 %v129_v24 }
  0x7a   :  { %687 = vmatmul.mubr.bf16.gmra.mxu0 %v178_v57  ;;  %976 = vmatmul.mubr.bf16.gmra.mxu1 %v180_v59  ;;  %v114_v57 = vld [vmem:[%s3015_s0 + $0xe0] sm:$0xff]  ;;  %v232_v32 = vunpack.c.l.s8.bf16 %v128_v30 }
  0x7b   :  { %694 = vmatprep.mubr.bf16.mxu0 %v183_v60  ;;  %983 = vmatprep.mubr.bf16.mxu1 %v185_v62  ;;  %v206_v59 = vunpack.c.l.s8.bf16 %v114_v57  ;;  %v208_v60 = vunpack.c.l.s8.bf16 %v116_v58  ;;  %v213_v62 = vunpack.c.h.s8.bf16 %v117_v52  ;;  %v210_v1 = vunpack.c.h.s8.bf16 %v114_v57 }
  0x7d   :  { %1722 = vperm.xlu1 %2049, %v1364_v37   ;;  %1727 = vperm.xlu0 %2048, %v1365_v39   ;;  %v234_v37 = vunpack.c.h.s8.bf16 %v126_v29 }
  0x81   :  { %1732 = vperm.xlu1 %2049, %v1366_v41   ;;  %1737 = vperm.xlu0 %2048, %v1367_v44   ;;  %v130_v41 = vld [vmem:[%s3015_s0 + $0x160] sm:$0xff]  ;;  %v240_v44 = vunpack.c.l.s8.bf16 %v132_v42 }
  0x82   :  { %695 = vmatmul.mubr.bf16.gmra.mxu0 %v182_v3  ;;  %984 = vmatmul.mubr.bf16.gmra.mxu1 %v184_v5  ;;  %v215_v3 = vunpack.c.l.s8.bf16 %v119_v63  ;;  %v118_v5 = vld [vmem:[%s3015_s0 + $0x100] sm:$0xff] }
  0x83   :  { %702 = vmatprep.mubr.bf16.mxu0 %v187_v6  ;;  %991 = vmatprep.mubr.bf16.mxu1 %v189_v8  ;;  %v120_v6 = vld [vmem:[%s3015_s0 + $0x110] sm:$0xff]  ;;  %v214_v7 = vunpack.c.l.s8.bf16 %v118_v5 }
  0x84   :  { %v216_v8 = vunpack.c.l.s8.bf16 %v120_v6  ;;  %v220_v14 = vunpack.c.h.s8.bf16 %v120_v6 }
  0x85   :  { %1742 = vperm.xlu1 %2049, %v1368_v47   ;;  %1747 = vperm.xlu0 %2048, %v1369_v49   ;;  %v135_v47 = vld [vmem:[%s3015_s0 + $0x188] sm:$0xff]  ;;  %v242_v49 = vunpack.c.h.s8.bf16 %v130_v41 }
  0x86   :  { %v247_v51 = vunpack.c.l.s8.bf16 %v135_v47  ;;  %v251_v57 = vunpack.c.h.s8.bf16 %v135_v47  ;;  %v143_v47 = vld [vmem:[%s3015_s0 + $0x1c8] sm:$0xff] }
  0x89   :  { %1752 = vperm.xlu1 %2049, %v1370_v50   ;;  %v244_v50 = vunpack.c.h.s8.bf16 %v132_v42 }
  0x8a   :  { %703 = vmatmul.mubr.bf16.gmra.mxu0 %v186_v13  ;;  %992 = vmatmul.mubr.bf16.gmra.mxu1 %v188_v15  ;;  %v218_v13 = vunpack.c.h.s8.bf16 %v118_v5  ;;  %v223_v15 = vunpack.c.l.s8.bf16 %v123_v11 }
  0x8b   :  { %710 = vmatprep.mubr.bf16.mxu0 %v191_v16  ;;  %999 = vmatprep.mubr.bf16.mxu1 %v193_v18  ;;  %v225_v16 = vunpack.c.l.s8.bf16 %v125_v12  ;;  %v124_v18 = vld [vmem:[%s3015_s0 + $0x130] sm:$0xff] }
  0x8c   :  { %v224_v20 = vunpack.c.l.s8.bf16 %v124_v18 }
  0x92   :  { %711 = vmatmul.mubr.bf16.gmra.mxu0 %v190_v23  ;;  %1000 = vmatmul.mubr.bf16.gmra.mxu1 %v192_v25  ;;  %v127_v23 = vld [vmem:[%s3015_s0 + $0x148] sm:$0xff]  ;;  %v226_v25 = vunpack.c.h.s8.bf16 %v122_v17 }
  0x93   :  { %718 = vmatprep.mubr.bf16.mxu0 %v195_v26  ;;  %1007 = vmatprep.mubr.bf16.mxu1 %v197_v28  ;;  %v228_v26 = vunpack.c.h.s8.bf16 %v124_v18  ;;  %v231_v27 = vunpack.c.l.s8.bf16 %v127_v23  ;;  %v233_v28 = vunpack.c.l.s8.bf16 %v129_v24 }
  0x9a   :  { %719 = vmatmul.mubr.bf16.gmra.mxu0 %v194_v33  ;;  %1008 = vmatmul.mubr.bf16.gmra.mxu1 %v196_v35  ;;  %v235_v33 = vunpack.c.h.s8.bf16 %v127_v23  ;;  %v131_v35 = vld [vmem:[%s3015_s0 + $0x168] sm:$0xff] }
  0x9b   :  { %726 = vmatprep.mubr.bf16.mxu0 %v199_v36  ;;  %1015 = vmatprep.mubr.bf16.mxu1 %v201_v38  ;;  %v133_v36 = vld [vmem:[%s3015_s0 + $0x178] sm:$0xff]  ;;  %v236_v38 = vunpack.c.h.s8.bf16 %v128_v30  ;;  %v239_v39 = vunpack.c.l.s8.bf16 %v131_v35 }
  0x9c   :  { %v241_v40 = vunpack.c.l.s8.bf16 %v133_v36 }
  0xa2   :  { %727 = vmatmul.mubr.bf16.gmra.mxu0 %v198_v43  ;;  %1016 = vmatmul.mubr.bf16.gmra.mxu1 %v200_v45  ;;  %v238_v43 = vunpack.c.l.s8.bf16 %v130_v41  ;;  %v243_v45 = vunpack.c.h.s8.bf16 %v131_v35 }
  0xa3   :  { %734 = vmatprep.mubr.bf16.mxu0 %v203_v46  ;;  %1023 = vmatprep.mubr.bf16.mxu1 %v205_v48  ;;  %v245_v46 = vunpack.c.h.s8.bf16 %v133_v36  ;;  %v137_v48 = vld [vmem:[%s3015_s0 + $0x198] sm:$0xff] }
  0xa4   :  { %v249_v52 = vunpack.c.l.s8.bf16 %v137_v48  ;;  %v253_v58 = vunpack.c.h.s8.bf16 %v137_v48 }
  0xaa   :  { %735 = vmatmul.mubr.bf16.gmra.mxu0 %v202_v53  ;;  %1024 = vmatmul.mubr.bf16.gmra.mxu1 %v204_v54  ;;  %v134_v53 = vld [vmem:[%s3015_s0 + $0x180] sm:$0xff]  ;;  %v136_v54 = vld [vmem:[%s3015_s0 + $0x190] sm:$0xff] }
  0xab   :  { %742 = vmatprep.mubr.bf16.mxu0 %v207_v55  ;;  %1031 = vmatprep.mubr.bf16.mxu1 %v209_v56  ;;  %v246_v55 = vunpack.c.l.s8.bf16 %v134_v53  ;;  %v248_v56 = vunpack.c.l.s8.bf16 %v136_v54  ;;  %v250_v6 = vunpack.c.h.s8.bf16 %v134_v53 }
  0xb2   :  { %743 = vmatmul.mubr.bf16.gmra.mxu0 %v206_v59  ;;  %1032 = vmatmul.mubr.bf16.gmra.mxu1 %v208_v60  ;;  %v1438_v59 = vpop.permute.xlu0 %1437 }
  0xb3   :  { %750 = vmatprep.mubr.bf16.mxu0 %v211_v61  ;;  %1039 = vmatprep.mubr.bf16.mxu1 %v213_v62 }
  0xba   :  { %751 = vmatmul.mubr.bf16.gmra.mxu0 %v210_v1  ;;  %1040 = vmatmul.mubr.bf16.gmra.mxu1 %v212_v2  ;;  %v1819_v1 = vld [vmem:[%s3017_s2] sm:$0xff] }
  0xbb   :  { %758 = vmatprep.mubr.bf16.mxu0 %v215_v3  ;;  %1047 = vmatprep.mubr.bf16.mxu1 %v217_v4  ;;  %v141_v3 = vld [vmem:[%s3015_s0 + $0x1b8] sm:$0xff] }
  0xc2   :  { %759 = vmatmul.mubr.bf16.gmra.mxu0 %v214_v7  ;;  %1048 = vmatmul.mubr.bf16.gmra.mxu1 %v216_v8  ;;  %v1443_v8 = vpop.permute.xlu0 %1442 }
  0xc3   :  { %766 = vmatprep.mubr.bf16.mxu0 %v219_v9  ;;  %1055 = vmatprep.mubr.bf16.mxu1 %v221_v10  ;;  %v252_v9 = vunpack.c.h.s8.bf16 %v136_v54  ;;  %v255_v10 = vunpack.c.l.s8.bf16 %v139_v0 }
  0xc6   :  { %v1458_v48 = vpop.permute.xlu0 %1457 }
  0xca   :  { %767 = vmatmul.mubr.bf16.gmra.mxu0 %v218_v13  ;;  %1056 = vmatmul.mubr.bf16.gmra.mxu1 %v220_v14  ;;  %v257_v14 = vunpack.c.l.s8.bf16 %v141_v3 }
  0xcb   :  { %774 = vmatprep.mubr.bf16.mxu0 %v223_v15  ;;  %1063 = vmatprep.mubr.bf16.mxu1 %v225_v16  ;;  %v1820_v15 = vld [vmem:[%s3017_s2 + $0x8] sm:$0xff] }
  0xd2   :  { %775 = vmatmul.mubr.bf16.gmra.mxu0 %v222_v19  ;;  %1064 = vmatmul.mubr.bf16.gmra.mxu1 %v224_v20  ;;  %v1448_v19 = vpop.permute.xlu1 %1447 }
  0xd3   :  { %782 = vmatprep.mubr.bf16.mxu0 %v227_v21  ;;  %1071 = vmatprep.mubr.bf16.mxu1 %v229_v22  ;;  %v138_v21 = vld [vmem:[%s3015_s0 + $0x1a0] sm:$0xff] }
  0xd4   :  { %v254_v30 = vunpack.c.l.s8.bf16 %v138_v21  ;;  %v258_v54 = vunpack.c.h.s8.bf16 %v138_v21 }
  0xda   :  { %783 = vmatmul.mubr.bf16.gmra.mxu0 %v226_v25  ;;  %1072 = vmatmul.mubr.bf16.gmra.mxu1 %v228_v26  ;;  %v140_v25 = vld [vmem:[%s3015_s0 + $0x1b0] sm:$0xff] }
  0xdb   :  { %790 = vmatprep.mubr.bf16.mxu0 %v231_v27  ;;  %1079 = vmatprep.mubr.bf16.mxu1 %v233_v28  ;;  %v1821_v26 = vld [vmem:[%s3017_s2 + $0x10] sm:$0xff] }
  0xe2   :  { %791 = vmatmul.mubr.bf16.gmra.mxu0 %v230_v31  ;;  %1080 = vmatmul.mubr.bf16.gmra.mxu1 %v232_v32  ;;  %v256_v32 = vunpack.c.l.s8.bf16 %v140_v25 }
  0xe3   :  { %798 = vmatprep.mubr.bf16.mxu0 %v235_v33  ;;  %1087 = vmatprep.mubr.bf16.mxu1 %v237_v34  ;;  %v259_v33 = vunpack.c.h.s8.bf16 %v139_v0 }
  0xea   :  { %799 = vmatmul.mubr.bf16.gmra.mxu0 %v234_v37  ;;  %1088 = vmatmul.mubr.bf16.gmra.mxu1 %v236_v38  ;;  %v261_v37 = vunpack.c.h.s8.bf16 %v141_v3  ;;  %v1453_v38 = vpop.permute.xlu1 %1452 }
  0xeb   :  { %806 = vmatprep.mubr.bf16.mxu0 %v239_v39  ;;  %1095 = vmatprep.mubr.bf16.mxu1 %v241_v40  ;;  %v1822_v39 = vld [vmem:[%s3017_s2 + $0x18] sm:$0xff] }
  0xf2   :  { %807 = vmatmul.mubr.bf16.gmra.mxu0 %v238_v43  ;;  %1096 = vmatmul.mubr.bf16.gmra.mxu1 %v240_v44 }
  0xf3   :  { %814 = vmatprep.mubr.bf16.mxu0 %v243_v45  ;;  %1103 = vmatprep.mubr.bf16.mxu1 %v245_v46 }
  0xfa   :  { %815 = vmatmul.mubr.bf16.gmra.mxu0 %v242_v49  ;;  %1104 = vmatmul.mubr.bf16.gmra.mxu1 %v244_v50  ;;  %v1823_v49 = vld [vmem:[%s3017_s2 + $0x20] sm:$0xff] }
  0xfb   :  { %822 = vmatprep.mubr.bf16.mxu0 %v247_v51  ;;  %1111 = vmatprep.mubr.bf16.mxu1 %v249_v52  ;;  %v145_v51 = vld [vmem:[%s3015_s0 + $0x1d8] sm:$0xff] }
  0xfc   :  { %v269_v21 = vunpack.c.h.s8.bf16 %v145_v51 }
 0x102   :  { %v632_v60 = vpop.f32.mrf.mxu0  ;;  %823 = vmatmul.mubr.bf16.gmra.mxu0 %v246_v55  ;;  %v921_v61 = vpop.f32.mrf.mxu1  ;;  %1112 = vmatmul.mubr.bf16.gmra.mxu1 %v248_v56  ;;  %v260_v56 = vunpack.c.h.s8.bf16 %v140_v25 }
 0x103   :  { %830 = vmatprep.mubr.bf16.mxu0 %v251_v57  ;;  %v922_v62 = vadd.f32 %v921_v61, %v632_v60  ;;  %1119 = vmatprep.mubr.bf16.mxu1 %v253_v58  ;;  %v263_v57 = vunpack.c.l.s8.bf16 %v143_v47  ;;  %v265_v61 = vunpack.c.l.s8.bf16 %v145_v51 }
 0x104   :  { %v634_v63 = vpop.f32.mrf.mxu0  ;;  %v923_v2 = vpop.f32.mrf.mxu1 }
 0x105   :  { %v1755_v4 = vmul.f32 %v1438_v59, %v922_v62  ;;  %v1463_v62 = vpop.permute.xlu1 %1462  ;;  %v1824_v63 = vld [vmem:[%s3017_s2 + $0x28] sm:$0xff] }
 0x106   :  { %v635_v5 = vpop.f32.mrf.mxu0  ;;  %v924_v7 = vpop.f32.mrf.mxu1 }
 0x107   :  { %v1883_v11 = vadd.f32 %v1819_v1, %v1755_v4  ;;  %v925_v12 = vadd.f32 %v924_v7, %v635_v5  ;;  %v142_v4 = vld [vmem:[%s3015_s0 + $0x1c0] sm:$0xff] }
 0x108   :  { %v637_v13 = vpop.f32.mrf.mxu0  ;;  %v926_v16 = vpop.f32.mrf.mxu1 }
 0x109   :  { %1947 = vst [vmem:[%s3018_s4] sm:$0xff] %v1883_v11  ;;  %v1756_v17 = vmul.f32 %v1443_v8, %v925_v12  ;;  %v144_v8 = vld [vmem:[%s3015_s0 + $0x1d0] sm:$0xff] }
 0x10a   :  { %v640_v18 = vpop.f32.mrf.mxu0  ;;  %831 = vmatmul.mubr.bf16.gmra.mxu0 %v250_v6  ;;  %v929_v20 = vpop.f32.mrf.mxu1  ;;  %1120 = vmatmul.mubr.bf16.gmra.mxu1 %v252_v9  ;;  %v264_v16 = vunpack.c.l.s8.bf16 %v144_v8 }
 0x10b   :  { %838 = vmatprep.mubr.bf16.mxu0 %v255_v10  ;;  %v1884_v22 = vadd.f32 %v1820_v15, %v1756_v17  ;;  %v930_v23 = vadd.f32 %v929_v20, %v640_v18  ;;  %1127 = vmatprep.mubr.bf16.mxu1 %v257_v14  ;;  %v1468_v9 = vpop.permute.xlu0 %1467  ;;  %v1825_v10 = vld [vmem:[%s3017_s2 + $0x30] sm:$0xff]  ;;  %v262_v14 = vunpack.c.l.s8.bf16 %v142_v4  ;;  %v267_v17 = vunpack.c.h.s8.bf16 %v143_v47  ;;  %v1828_v47 = vld [vmem:[%s3017_s2 + $0x48] sm:$0xff] }
 0x10c   :  { %v642_v24 = vpop.f32.mrf.mxu0  ;;  %v931_v27 = vpop.f32.mrf.mxu1 }
 0x10d   :  { %1948 = vst [vmem:[%s3018_s4 + $0x8] sm:$0xff] %v1884_v22  ;;  %v1757_v28 = vmul.f32 %v1448_v19, %v930_v23  ;;  %v1473_v22 = vpop.permute.xlu1 %1472  ;;  %v1826_v23 = vld [vmem:[%s3017_s2 + $0x38] sm:$0xff] }
 0x10e   :  { %v643_v29 = vpop.f32.mrf.mxu0  ;;  %v932_v31 = vpop.f32.mrf.mxu1 }
 0x10f   :  { %v1885_v34 = vadd.f32 %v1821_v26, %v1757_v28  ;;  %v933_v35 = vadd.f32 %v932_v31, %v643_v29  ;;  %v147_v31 = vld [vmem:[%s3015_s0 + $0x1e8] sm:$0xff] }
 0x110   :  { %v645_v36 = vpop.f32.mrf.mxu0  ;;  %v934_v40 = vpop.f32.mrf.mxu1 }
 0x111   :  { %1949 = vst [vmem:[%s3018_s4 + $0x10] sm:$0xff] %v1885_v34  ;;  %v1758_v41 = vmul.f32 %v1453_v38, %v933_v35  ;;  %v149_v35 = vld [vmem:[%s3015_s0 + $0x1f8] sm:$0xff]  ;;  %v266_v38 = vunpack.c.h.s8.bf16 %v142_v4  ;;  %v268_v40 = vunpack.c.h.s8.bf16 %v144_v8 }
 0x112   :  { %v648_v42 = vpop.f32.mrf.mxu0  ;;  %839 = vmatmul.mubr.bf16.gmra.mxu0 %v254_v30  ;;  %v937_v43 = vpop.f32.mrf.mxu1  ;;  %1128 = vmatmul.mubr.bf16.gmra.mxu1 %v256_v32 }
 0x113   :  { %846 = vmatprep.mubr.bf16.mxu0 %v259_v33  ;;  %v1886_v44 = vadd.f32 %v1822_v39, %v1758_v41  ;;  %v938_v45 = vadd.f32 %v937_v43, %v648_v42  ;;  %1135 = vmatprep.mubr.bf16.mxu1 %v261_v37  ;;  %v1478_v32 = vpop.permute.xlu0 %1477  ;;  %v1827_v33 = vld [vmem:[%s3017_s2 + $0x40] sm:$0xff]  ;;  %v271_v41 = vunpack.c.l.s8.bf16 %v147_v31 }
 0x114   :  { %v650_v46 = vpop.f32.mrf.mxu0  ;;  %v939_v50 = vpop.f32.mrf.mxu1 }
 0x115   :  { %1950 = vst [vmem:[%s3018_s4 + $0x18] sm:$0xff] %v1886_v44  ;;  %v1759_v52 = vmul.f32 %v1458_v48, %v938_v45  ;;  %v273_v45 = vunpack.c.l.s8.bf16 %v149_v35  ;;  %v1483_v46 = vpop.permute.xlu1 %1482 }
 0x116   :  { %v651_v53 = vpop.f32.mrf.mxu0  ;;  %v940_v55 = vpop.f32.mrf.mxu1 }
 0x117   :  { %v1887_v58 = vadd.f32 %v1823_v49, %v1759_v52  ;;  %v941_v59 = vadd.f32 %v940_v55, %v651_v53  ;;  %v146_v52 = vld [vmem:[%s3015_s0 + $0x1e0] sm:$0xff] }
 0x118   :  { %v653_v60 = vpop.f32.mrf.mxu0  ;;  %v942_v0 = vpop.f32.mrf.mxu1 }
 0x119   :  { %1951 = vst [vmem:[%s3018_s4 + $0x20] sm:$0xff] %v1887_v58  ;;  %v1760_v1 = vmul.f32 %v1463_v62, %v941_v59  ;;  %v1829_v58 = vld [vmem:[%s3017_s2 + $0x50] sm:$0xff]  ;;  %v270_v62 = vunpack.c.l.s8.bf16 %v146_v52 }
 0x11a   :  { %v656_v2 = vpop.f32.mrf.mxu0  ;;  %847 = vmatmul.mubr.bf16.gmra.mxu0 %v258_v54  ;;  %v945_v3 = vpop.f32.mrf.mxu1  ;;  %1136 = vmatmul.mubr.bf16.gmra.mxu1 %v260_v56  ;;  %v148_v56 = vld [vmem:[%s3015_s0 + $0x1f0] sm:$0xff] }
 0x11b   :  { %854 = vmatprep.mubr.bf16.mxu0 %v263_v57  ;;  %v1888_v5 = vadd.f32 %v1824_v63, %v1760_v1  ;;  %v946_v6 = vadd.f32 %v945_v3, %v656_v2  ;;  %1143 = vmatprep.mubr.bf16.mxu1 %v265_v61  ;;  %v1488_v57 = vpop.permute.xlu0 %1487  ;;  %v272_v0 = vunpack.c.l.s8.bf16 %v148_v56  ;;  %v275_v1 = vunpack.c.h.s8.bf16 %v147_v31 }
 0x11c   :  { %v658_v7 = vpop.f32.mrf.mxu0  ;;  %v947_v11 = vpop.f32.mrf.mxu1 }
 0x11d   :  { %1952 = vst [vmem:[%s3018_s4 + $0x28] sm:$0xff] %v1888_v5  ;;  %v1761_v12 = vmul.f32 %v1468_v9, %v946_v6  ;;  %v277_v5 = vunpack.c.h.s8.bf16 %v149_v35  ;;  %v1493_v6 = vpop.permute.xlu1 %1492  ;;  %v1830_v7 = vld [vmem:[%s3017_s2 + $0x58] sm:$0xff] }
 0x11e   :  { %v659_v13 = vpop.f32.mrf.mxu0  ;;  %v948_v15 = vpop.f32.mrf.mxu1 }
 0x11f   :  { %v1889_v18 = vadd.f32 %v1825_v10, %v1761_v12  ;;  %v949_v19 = vadd.f32 %v948_v15, %v659_v13  ;;  %v1498_v15 = vpop.permute.xlu0 %1497 }
 0x120   :  { %v661_v20 = vpop.f32.mrf.mxu0  ;;  %v950_v24 = vpop.f32.mrf.mxu1 }
 0x121   :  { %1953 = vst [vmem:[%s3018_s4 + $0x30] sm:$0xff] %v1889_v18  ;;  %v1762_v25 = vmul.f32 %v1473_v22, %v949_v19  ;;  %v274_v20 = vunpack.c.h.s8.bf16 %v146_v52  ;;  %v276_v22 = vunpack.c.h.s8.bf16 %v148_v56 }
 0x122   :  { %v664_v26 = vpop.f32.mrf.mxu0  ;;  %855 = vmatmul.mubr.bf16.gmra.mxu0 %v262_v14  ;;  %v953_v27 = vpop.f32.mrf.mxu1  ;;  %1144 = vmatmul.mubr.bf16.gmra.mxu1 %v264_v16  ;;  %v1831_v16 = vld [vmem:[%s3017_s2 + $0x60] sm:$0xff] }
 0x123   :  { %862 = vmatprep.mubr.bf16.mxu0 %v267_v17  ;;  %v1890_v28 = vadd.f32 %v1826_v23, %v1762_v25  ;;  %v954_v29 = vadd.f32 %v953_v27, %v664_v26  ;;  %1151 = vmatprep.mubr.bf16.mxu1 %v269_v21  ;;  %v1503_v26 = vpop.permute.xlu1 %1502  ;;  %v1832_v27 = vld [vmem:[%s3017_s2 + $0x68] sm:$0xff]  ;;  %v1508_v35 = vpop.permute.xlu0 %1507 }
 0x124   :  { %v666_v30 = vpop.f32.mrf.mxu0  ;;  %v955_v34 = vpop.f32.mrf.mxu1 }
 0x125   :  { %1954 = vst [vmem:[%s3018_s4 + $0x38] sm:$0xff] %v1890_v28  ;;  %v1763_v36 = vmul.f32 %v1478_v32, %v954_v29 }
 0x126   :  { %v667_v37 = vpop.f32.mrf.mxu0  ;;  %v956_v39 = vpop.f32.mrf.mxu1 }
 0x127   :  { %v1891_v42 = vadd.f32 %v1827_v33, %v1763_v36  ;;  %v957_v43 = vadd.f32 %v956_v39, %v667_v37  ;;  %v1833_v36 = vld [vmem:[%s3017_s2 + $0x70] sm:$0xff] }
 0x128   :  { %v669_v44 = vpop.f32.mrf.mxu0  ;;  %v958_v48 = vpop.f32.mrf.mxu1 }
 0x129   :  { %1955 = vst [vmem:[%s3018_s4 + $0x40] sm:$0xff] %v1891_v42  ;;  %v1764_v49 = vmul.f32 %v1483_v46, %v957_v43  ;;  %v1513_v44 = vpop.permute.xlu1 %1512 }
 0x12a   :  { %v672_v50 = vpop.f32.mrf.mxu0  ;;  %863 = vmatmul.mubr.bf16.gmra.mxu0 %v266_v38  ;;  %v961_v51 = vpop.f32.mrf.mxu1  ;;  %1152 = vmatmul.mubr.bf16.gmra.mxu1 %v268_v40 }
 0x12b   :  { %870 = vmatprep.mubr.bf16.mxu0 %v271_v41  ;;  %v1892_v53 = vadd.f32 %v1828_v47, %v1764_v49  ;;  %v962_v54 = vadd.f32 %v961_v51, %v672_v50  ;;  %1159 = vmatprep.mubr.bf16.mxu1 %v273_v45  ;;  %v1834_v45 = vld [vmem:[%s3017_s2 + $0x78] sm:$0xff] }
 0x12c   :  { %v674_v55 = vpop.f32.mrf.mxu0  ;;  %v963_v59 = vpop.f32.mrf.mxu1 }
 0x12d   :  { %1956 = vst [vmem:[%s3018_s4 + $0x48] sm:$0xff] %v1892_v53  ;;  %v1765_v60 = vmul.f32 %v1488_v57, %v962_v54  ;;  %v1518_v53 = vpop.permute.xlu0 %1517  ;;  %v1835_v54 = vld [vmem:[%s3017_s2 + $0x80] sm:$0xff] }
 0x12e   :  { %v675_v61 = vpop.f32.mrf.mxu0  ;;  %v964_v63 = vpop.f32.mrf.mxu1 }
 0x12f   :  { %v1893_v2 = vadd.f32 %v1829_v58, %v1765_v60  ;;  %v965_v3 = vadd.f32 %v964_v63, %v675_v61  ;;  %v1836_v63 = vld [vmem:[%s3017_s2 + $0x88] sm:$0xff] }
 0x130   :  { %v677_v4 = vpop.f32.mrf.mxu0  ;;  %v966_v8 = vpop.f32.mrf.mxu1 }
 0x131   :  { %1957 = vst [vmem:[%s3018_s4 + $0x50] sm:$0xff] %v1893_v2  ;;  %v1766_v9 = vmul.f32 %v1493_v6, %v965_v3  ;;  %v1837_v8 = vld [vmem:[%s3017_s2 + $0x90] sm:$0xff] }
 0x132   :  { %v680_v10 = vpop.f32.mrf.mxu0  ;;  %871 = vmatmul.mubr.bf16.gmra.mxu0 %v270_v62  ;;  %v969_v11 = vpop.f32.mrf.mxu1  ;;  %1160 = vmatmul.mubr.bf16.gmra.mxu1 %v272_v0 }
 0x133   :  { %878 = vmatprep.mubr.bf16.mxu0 %v275_v1  ;;  %v1894_v12 = vadd.f32 %v1830_v7, %v1766_v9  ;;  %v970_v13 = vadd.f32 %v969_v11, %v680_v10  ;;  %1167 = vmatprep.mubr.bf16.mxu1 %v277_v5  ;;  %v1523_v62 = vpop.permute.xlu1 %1522  ;;  %v1528_v7 = vpop.permute.xlu0 %1527 }
 0x134   :  { %v682_v14 = vpop.f32.mrf.mxu0  ;;  %v971_v17 = vpop.f32.mrf.mxu1 }
 0x135   :  { %1958 = vst [vmem:[%s3018_s4 + $0x58] sm:$0xff] %v1894_v12  ;;  %v1767_v18 = vmul.f32 %v1498_v15, %v970_v13  ;;  %v1838_v17 = vld [vmem:[%s3017_s2 + $0x98] sm:$0xff] }
 0x136   :  { %v683_v19 = vpop.f32.mrf.mxu0  ;;  %v972_v21 = vpop.f32.mrf.mxu1 }
 0x137   :  { %v1895_v23 = vadd.f32 %v1831_v16, %v1767_v18  ;;  %v973_v24 = vadd.f32 %v972_v21, %v683_v19  ;;  %v1533_v16 = vpop.permute.xlu1 %1532 }
 0x138   :  { %v685_v25 = vpop.f32.mrf.mxu0  ;;  %v974_v28 = vpop.f32.mrf.mxu1 }
 0x139   :  { %1959 = vst [vmem:[%s3018_s4 + $0x60] sm:$0xff] %v1895_v23  ;;  %v1768_v29 = vmul.f32 %v1503_v26, %v973_v24  ;;  %v1538_v25 = vpop.permute.xlu0 %1537  ;;  %v1839_v26 = vld [vmem:[%s3017_s2 + $0xa0] sm:$0xff] }
 0x13a   :  { %v688_v30 = vpop.f32.mrf.mxu0  ;;  %879 = vmatmul.mubr.bf16.gmra.mxu0 %v274_v20  ;;  %v977_v31 = vpop.f32.mrf.mxu1  ;;  %1168 = vmatmul.mubr.bf16.gmra.mxu1 %v276_v22 }
 0x13b   :  { %v1896_v32 = vadd.f32 %v1832_v27, %v1768_v29  ;;  %v978_v33 = vadd.f32 %v977_v31, %v688_v30 }
 0x13c   :  { %v690_v34 = vpop.f32.mrf.mxu0  ;;  %v979_v37 = vpop.f32.mrf.mxu1 }
 0x13d   :  { %1960 = vst [vmem:[%s3018_s4 + $0x68] sm:$0xff] %v1896_v32  ;;  %v1769_v38 = vmul.f32 %v1508_v35, %v978_v33  ;;  %v1543_v34 = vpop.permute.xlu1 %1542  ;;  %v1840_v35 = vld [vmem:[%s3017_s2 + $0xa8] sm:$0xff] }
 0x13e   :  { %v691_v39 = vpop.f32.mrf.mxu0  ;;  %v980_v40 = vpop.f32.mrf.mxu1 }
 0x13f   :  { %v1897_v41 = vadd.f32 %v1833_v36, %v1769_v38  ;;  %v981_v42 = vadd.f32 %v980_v40, %v691_v39 }
 0x140   :  { %v693_v43 = vpop.f32.mrf.mxu0  ;;  %v982_v46 = vpop.f32.mrf.mxu1 }
 0x141   :  { %1961 = vst [vmem:[%s3018_s4 + $0x70] sm:$0xff] %v1897_v41  ;;  %v1770_v47 = vmul.f32 %v1513_v44, %v981_v42  ;;  %v1548_v43 = vpop.permute.xlu0 %1547  ;;  %v1841_v44 = vld [vmem:[%s3017_s2 + $0xb0] sm:$0xff] }
 0x142   :  { %v696_v48 = vpop.f32.mrf.mxu0  ;;  %v985_v49 = vpop.f32.mrf.mxu1 }
 0x143   :  { %v1898_v50 = vadd.f32 %v1834_v45, %v1770_v47  ;;  %v986_v51 = vadd.f32 %v985_v49, %v696_v48 }
 0x144   :  { %v698_v52 = vpop.f32.mrf.mxu0  ;;  %v987_v55 = vpop.f32.mrf.mxu1 }
 0x145   :  { %1962 = vst [vmem:[%s3018_s4 + $0x78] sm:$0xff] %v1898_v50  ;;  %v1771_v56 = vmul.f32 %v1518_v53, %v986_v51  ;;  %v1553_v52 = vpop.permute.xlu1 %1552  ;;  %v1842_v53 = vld [vmem:[%s3017_s2 + $0xb8] sm:$0xff] }
 0x146   :  { %v699_v57 = vpop.f32.mrf.mxu0  ;;  %v988_v58 = vpop.f32.mrf.mxu1 }
 0x147   :  { %v1899_v59 = vadd.f32 %v1835_v54, %v1771_v56  ;;  %v989_v60 = vadd.f32 %v988_v58, %v699_v57 }
 0x148   :  { %v701_v61 = vpop.f32.mrf.mxu0  ;;  %v990_v0 = vpop.f32.mrf.mxu1 }
 0x149   :  { %1963 = vst [vmem:[%s3018_s4 + $0x80] sm:$0xff] %v1899_v59  ;;  %v1772_v1 = vmul.f32 %v1523_v62, %v989_v60  ;;  %v1558_v61 = vpop.permute.xlu0 %1557  ;;  %v1843_v62 = vld [vmem:[%s3017_s2 + $0xc0] sm:$0xff] }
 0x14a   :  { %v704_v2 = vpop.f32.mrf.mxu0  ;;  %v993_v3 = vpop.f32.mrf.mxu1 }
 0x14b   :  { %v1900_v4 = vadd.f32 %v1836_v63, %v1772_v1  ;;  %v994_v5 = vadd.f32 %v993_v3, %v704_v2 }
 0x14c   :  { %v706_v6 = vpop.f32.mrf.mxu0  ;;  %v995_v9 = vpop.f32.mrf.mxu1 }
 0x14d   :  { %1964 = vst [vmem:[%s3018_s4 + $0x88] sm:$0xff] %v1900_v4  ;;  %v1773_v10 = vmul.f32 %v1528_v7, %v994_v5  ;;  %v1563_v6 = vpop.permute.xlu1 %1562  ;;  %v1844_v7 = vld [vmem:[%s3017_s2 + $0xc8] sm:$0xff] }
 0x14e   :  { %v707_v11 = vpop.f32.mrf.mxu0  ;;  %v996_v12 = vpop.f32.mrf.mxu1 }
 0x14f   :  { %v1901_v13 = vadd.f32 %v1837_v8, %v1773_v10  ;;  %v997_v14 = vadd.f32 %v996_v12, %v707_v11 }
 0x150   :  { %v709_v15 = vpop.f32.mrf.mxu0  ;;  %v998_v18 = vpop.f32.mrf.mxu1 }
 0x151   :  { %1965 = vst [vmem:[%s3018_s4 + $0x90] sm:$0xff] %v1901_v13  ;;  %v1774_v19 = vmul.f32 %v1533_v16, %v997_v14  ;;  %v1568_v15 = vpop.permute.xlu0 %1567  ;;  %v1845_v16 = vld [vmem:[%s3017_s2 + $0xd0] sm:$0xff] }
 0x152   :  { %v712_v20 = vpop.f32.mrf.mxu0  ;;  %v1001_v21 = vpop.f32.mrf.mxu1 }
 0x153   :  { %v1902_v22 = vadd.f32 %v1838_v17, %v1774_v19  ;;  %v1002_v23 = vadd.f32 %v1001_v21, %v712_v20 }
 0x154   :  { %v714_v24 = vpop.f32.mrf.mxu0  ;;  %v1003_v27 = vpop.f32.mrf.mxu1 }
 0x155   :  { %1966 = vst [vmem:[%s3018_s4 + $0x98] sm:$0xff] %v1902_v22  ;;  %v1775_v28 = vmul.f32 %v1538_v25, %v1002_v23  ;;  %v1573_v24 = vpop.permute.xlu1 %1572  ;;  %v1846_v25 = vld [vmem:[%s3017_s2 + $0xd8] sm:$0xff] }
 0x156   :  { %v715_v29 = vpop.f32.mrf.mxu0  ;;  %v1004_v30 = vpop.f32.mrf.mxu1 }
 0x157   :  { %v1903_v31 = vadd.f32 %v1839_v26, %v1775_v28  ;;  %v1005_v32 = vadd.f32 %v1004_v30, %v715_v29 }
 0x158   :  { %v717_v33 = vpop.f32.mrf.mxu0  ;;  %v1006_v36 = vpop.f32.mrf.mxu1 }
 0x159   :  { %1967 = vst [vmem:[%s3018_s4 + $0xa0] sm:$0xff] %v1903_v31  ;;  %v1776_v37 = vmul.f32 %v1543_v34, %v1005_v32  ;;  %v1578_v33 = vpop.permute.xlu0 %1577  ;;  %v1847_v34 = vld [vmem:[%s3017_s2 + $0xe0] sm:$0xff] }
 0x15a   :  { %v720_v38 = vpop.f32.mrf.mxu0  ;;  %v1009_v39 = vpop.f32.mrf.mxu1 }
 0x15b   :  { %v1904_v40 = vadd.f32 %v1840_v35, %v1776_v37  ;;  %v1010_v41 = vadd.f32 %v1009_v39, %v720_v38 }
 0x15c   :  { %v722_v42 = vpop.f32.mrf.mxu0  ;;  %v1011_v45 = vpop.f32.mrf.mxu1 }
 0x15d   :  { %1968 = vst [vmem:[%s3018_s4 + $0xa8] sm:$0xff] %v1904_v40  ;;  %v1777_v46 = vmul.f32 %v1548_v43, %v1010_v41  ;;  %v1583_v42 = vpop.permute.xlu1 %1582  ;;  %v1848_v43 = vld [vmem:[%s3017_s2 + $0xe8] sm:$0xff] }
 0x15e   :  { %v723_v47 = vpop.f32.mrf.mxu0  ;;  %v1012_v48 = vpop.f32.mrf.mxu1 }
 0x15f   :  { %v1905_v49 = vadd.f32 %v1841_v44, %v1777_v46  ;;  %v1013_v50 = vadd.f32 %v1012_v48, %v723_v47 }
 0x160   :  { %v725_v51 = vpop.f32.mrf.mxu0  ;;  %v1014_v54 = vpop.f32.mrf.mxu1 }
 0x161   :  { %1969 = vst [vmem:[%s3018_s4 + $0xb0] sm:$0xff] %v1905_v49  ;;  %v1778_v55 = vmul.f32 %v1553_v52, %v1013_v50  ;;  %v1588_v51 = vpop.permute.xlu0 %1587  ;;  %v1849_v52 = vld [vmem:[%s3017_s2 + $0xf0] sm:$0xff] }
 0x162   :  { %v728_v56 = vpop.f32.mrf.mxu0  ;;  %v1017_v57 = vpop.f32.mrf.mxu1 }
 0x163   :  { %v1906_v58 = vadd.f32 %v1842_v53, %v1778_v55  ;;  %v1018_v59 = vadd.f32 %v1017_v57, %v728_v56 }
 0x164   :  { %v730_v60 = vpop.f32.mrf.mxu0  ;;  %v1019_v63 = vpop.f32.mrf.mxu1 }
 0x165   :  { %1970 = vst [vmem:[%s3018_s4 + $0xb8] sm:$0xff] %v1906_v58  ;;  %v1779_v0 = vmul.f32 %v1558_v61, %v1018_v59  ;;  %v1593_v60 = vpop.permute.xlu1 %1592  ;;  %v1850_v61 = vld [vmem:[%s3017_s2 + $0xf8] sm:$0xff] }
 0x166   :  { %v731_v1 = vpop.f32.mrf.mxu0  ;;  %v1020_v2 = vpop.f32.mrf.mxu1 }
 0x167   :  { %v1907_v3 = vadd.f32 %v1843_v62, %v1779_v0  ;;  %v1021_v4 = vadd.f32 %v1020_v2, %v731_v1 }
 0x168   :  { %v733_v5 = vpop.f32.mrf.mxu0  ;;  %v1022_v8 = vpop.f32.mrf.mxu1 }
 0x169   :  { %1971 = vst [vmem:[%s3018_s4 + $0xc0] sm:$0xff] %v1907_v3  ;;  %v1780_v9 = vmul.f32 %v1563_v6, %v1021_v4  ;;  %v1598_v5 = vpop.permute.xlu0 %1597  ;;  %v1851_v6 = vld [vmem:[%s3017_s2 + $0x100] sm:$0xff] }
 0x16a   :  { %v736_v10 = vpop.f32.mrf.mxu0  ;;  %v1025_v11 = vpop.f32.mrf.mxu1 }
 0x16b   :  { %v1908_v12 = vadd.f32 %v1844_v7, %v1780_v9  ;;  %v1026_v13 = vadd.f32 %v1025_v11, %v736_v10 }
 0x16c   :  { %v738_v14 = vpop.f32.mrf.mxu0  ;;  %v1027_v17 = vpop.f32.mrf.mxu1 }
 0x16d   :  { %1972 = vst [vmem:[%s3018_s4 + $0xc8] sm:$0xff] %v1908_v12  ;;  %v1781_v18 = vmul.f32 %v1568_v15, %v1026_v13  ;;  %v1603_v14 = vpop.permute.xlu1 %1602  ;;  %v1852_v15 = vld [vmem:[%s3017_s2 + $0x108] sm:$0xff] }
 0x16e   :  { %v739_v19 = vpop.f32.mrf.mxu0  ;;  %v1028_v20 = vpop.f32.mrf.mxu1 }
 0x16f   :  { %v1909_v21 = vadd.f32 %v1845_v16, %v1781_v18  ;;  %v1029_v22 = vadd.f32 %v1028_v20, %v739_v19 }
 0x170   :  { %v741_v23 = vpop.f32.mrf.mxu0  ;;  %v1030_v26 = vpop.f32.mrf.mxu1 }
 0x171   :  { %1973 = vst [vmem:[%s3018_s4 + $0xd0] sm:$0xff] %v1909_v21  ;;  %v1782_v27 = vmul.f32 %v1573_v24, %v1029_v22  ;;  %v1608_v23 = vpop.permute.xlu0 %1607  ;;  %v1853_v24 = vld [vmem:[%s3017_s2 + $0x110] sm:$0xff] }
 0x172   :  { %v744_v28 = vpop.f32.mrf.mxu0  ;;  %v1033_v29 = vpop.f32.mrf.mxu1 }
 0x173   :  { %v1910_v30 = vadd.f32 %v1846_v25, %v1782_v27  ;;  %v1034_v31 = vadd.f32 %v1033_v29, %v744_v28 }
 0x174   :  { %v746_v32 = vpop.f32.mrf.mxu0  ;;  %v1035_v35 = vpop.f32.mrf.mxu1 }
 0x175   :  { %1974 = vst [vmem:[%s3018_s4 + $0xd8] sm:$0xff] %v1910_v30  ;;  %v1783_v36 = vmul.f32 %v1578_v33, %v1034_v31  ;;  %v1613_v32 = vpop.permute.xlu1 %1612  ;;  %v1854_v33 = vld [vmem:[%s3017_s2 + $0x118] sm:$0xff] }
 0x176   :  { %v747_v37 = vpop.f32.mrf.mxu0  ;;  %v1036_v38 = vpop.f32.mrf.mxu1 }
 0x177   :  { %v1911_v39 = vadd.f32 %v1847_v34, %v1783_v36  ;;  %v1037_v40 = vadd.f32 %v1036_v38, %v747_v37 }
 0x178   :  { %v749_v41 = vpop.f32.mrf.mxu0  ;;  %v1038_v44 = vpop.f32.mrf.mxu1 }
 0x179   :  { %1975 = vst [vmem:[%s3018_s4 + $0xe0] sm:$0xff] %v1911_v39  ;;  %v1784_v45 = vmul.f32 %v1583_v42, %v1037_v40  ;;  %v1618_v41 = vpop.permute.xlu0 %1617  ;;  %v1855_v42 = vld [vmem:[%s3017_s2 + $0x120] sm:$0xff] }
 0x17a   :  { %v752_v46 = vpop.f32.mrf.mxu0  ;;  %v1041_v47 = vpop.f32.mrf.mxu1 }
 0x17b   :  { %v1912_v48 = vadd.f32 %v1848_v43, %v1784_v45  ;;  %v1042_v49 = vadd.f32 %v1041_v47, %v752_v46 }
 0x17c   :  { %v754_v50 = vpop.f32.mrf.mxu0  ;;  %v1043_v53 = vpop.f32.mrf.mxu1 }
 0x17d   :  { %1976 = vst [vmem:[%s3018_s4 + $0xe8] sm:$0xff] %v1912_v48  ;;  %v1785_v54 = vmul.f32 %v1588_v51, %v1042_v49  ;;  %v1623_v50 = vpop.permute.xlu1 %1622  ;;  %v1856_v51 = vld [vmem:[%s3017_s2 + $0x128] sm:$0xff] }
 0x17e   :  { %v755_v55 = vpop.f32.mrf.mxu0  ;;  %v1044_v56 = vpop.f32.mrf.mxu1 }
 0x17f   :  { %v1913_v57 = vadd.f32 %v1849_v52, %v1785_v54  ;;  %v1045_v58 = vadd.f32 %v1044_v56, %v755_v55 }
 0x180   :  { %v757_v59 = vpop.f32.mrf.mxu0  ;;  %v1046_v62 = vpop.f32.mrf.mxu1 }
 0x181   :  { %1977 = vst [vmem:[%s3018_s4 + $0xf0] sm:$0xff] %v1913_v57  ;;  %v1786_v63 = vmul.f32 %v1593_v60, %v1045_v58  ;;  %v1628_v59 = vpop.permute.xlu0 %1627  ;;  %v1857_v60 = vld [vmem:[%s3017_s2 + $0x130] sm:$0xff] }
 0x182   :  { %v760_v0 = vpop.f32.mrf.mxu0  ;;  %v1049_v1 = vpop.f32.mrf.mxu1 }
 0x183   :  { %v1914_v2 = vadd.f32 %v1850_v61, %v1786_v63  ;;  %v1050_v3 = vadd.f32 %v1049_v1, %v760_v0 }
 0x184   :  { %v762_v4 = vpop.f32.mrf.mxu0  ;;  %v1051_v7 = vpop.f32.mrf.mxu1 }
 0x185   :  { %1978 = vst [vmem:[%s3018_s4 + $0xf8] sm:$0xff] %v1914_v2  ;;  %v1787_v8 = vmul.f32 %v1598_v5, %v1050_v3  ;;  %v1633_v4 = vpop.permute.xlu1 %1632  ;;  %v1858_v5 = vld [vmem:[%s3017_s2 + $0x138] sm:$0xff] }
 0x186   :  { %v763_v9 = vpop.f32.mrf.mxu0  ;;  %v1052_v10 = vpop.f32.mrf.mxu1 }
 0x187   :  { %v1915_v11 = vadd.f32 %v1851_v6, %v1787_v8  ;;  %v1053_v12 = vadd.f32 %v1052_v10, %v763_v9 }
 0x188   :  { %v765_v13 = vpop.f32.mrf.mxu0  ;;  %v1054_v16 = vpop.f32.mrf.mxu1 }
 0x189   :  { %1979 = vst [vmem:[%s3018_s4 + $0x100] sm:$0xff] %v1915_v11  ;;  %v1788_v17 = vmul.f32 %v1603_v14, %v1053_v12  ;;  %v1638_v13 = vpop.permute.xlu0 %1637  ;;  %v1859_v14 = vld [vmem:[%s3017_s2 + $0x140] sm:$0xff] }
 0x18a   :  { %v768_v18 = vpop.f32.mrf.mxu0  ;;  %v1057_v19 = vpop.f32.mrf.mxu1 }
 0x18b   :  { %v1916_v20 = vadd.f32 %v1852_v15, %v1788_v17  ;;  %v1058_v21 = vadd.f32 %v1057_v19, %v768_v18 }
 0x18c   :  { %v770_v22 = vpop.f32.mrf.mxu0  ;;  %v1059_v25 = vpop.f32.mrf.mxu1 }
 0x18d   :  { %1980 = vst [vmem:[%s3018_s4 + $0x108] sm:$0xff] %v1916_v20  ;;  %v1789_v26 = vmul.f32 %v1608_v23, %v1058_v21  ;;  %v1643_v22 = vpop.permute.xlu1 %1642  ;;  %v1860_v23 = vld [vmem:[%s3017_s2 + $0x148] sm:$0xff] }
 0x18e   :  { %v771_v27 = vpop.f32.mrf.mxu0  ;;  %v1060_v28 = vpop.f32.mrf.mxu1 }
 0x18f   :  { %v1917_v29 = vadd.f32 %v1853_v24, %v1789_v26  ;;  %v1061_v30 = vadd.f32 %v1060_v28, %v771_v27 }
 0x190   :  { %v773_v31 = vpop.f32.mrf.mxu0  ;;  %v1062_v34 = vpop.f32.mrf.mxu1 }
 0x191   :  { %1981 = vst [vmem:[%s3018_s4 + $0x110] sm:$0xff] %v1917_v29  ;;  %v1790_v35 = vmul.f32 %v1613_v32, %v1061_v30  ;;  %v1648_v31 = vpop.permute.xlu0 %1647  ;;  %v1861_v32 = vld [vmem:[%s3017_s2 + $0x150] sm:$0xff] }
 0x192   :  { %v776_v36 = vpop.f32.mrf.mxu0  ;;  %v1065_v37 = vpop.f32.mrf.mxu1 }
 0x193   :  { %v1918_v38 = vadd.f32 %v1854_v33, %v1790_v35  ;;  %v1066_v39 = vadd.f32 %v1065_v37, %v776_v36 }
 0x194   :  { %v778_v40 = vpop.f32.mrf.mxu0  ;;  %v1067_v43 = vpop.f32.mrf.mxu1 }
 0x195   :  { %1982 = vst [vmem:[%s3018_s4 + $0x118] sm:$0xff] %v1918_v38  ;;  %v1791_v44 = vmul.f32 %v1618_v41, %v1066_v39  ;;  %v1653_v40 = vpop.permute.xlu1 %1652  ;;  %v1862_v41 = vld [vmem:[%s3017_s2 + $0x158] sm:$0xff] }
 0x196   :  { %v779_v45 = vpop.f32.mrf.mxu0  ;;  %v1068_v46 = vpop.f32.mrf.mxu1 }
 0x197   :  { %v1919_v47 = vadd.f32 %v1855_v42, %v1791_v44  ;;  %v1069_v48 = vadd.f32 %v1068_v46, %v779_v45 }
 0x198   :  { %v781_v49 = vpop.f32.mrf.mxu0  ;;  %v1070_v52 = vpop.f32.mrf.mxu1 }
 0x199   :  { %1983 = vst [vmem:[%s3018_s4 + $0x120] sm:$0xff] %v1919_v47  ;;  %v1792_v53 = vmul.f32 %v1623_v50, %v1069_v48  ;;  %v1658_v49 = vpop.permute.xlu0 %1657  ;;  %v1863_v50 = vld [vmem:[%s3017_s2 + $0x160] sm:$0xff] }
 0x19a   :  { %v784_v54 = vpop.f32.mrf.mxu0  ;;  %v1073_v55 = vpop.f32.mrf.mxu1 }
 0x19b   :  { %v1920_v56 = vadd.f32 %v1856_v51, %v1792_v53  ;;  %v1074_v57 = vadd.f32 %v1073_v55, %v784_v54 }
 0x19c   :  { %v786_v58 = vpop.f32.mrf.mxu0  ;;  %v1075_v61 = vpop.f32.mrf.mxu1 }
 0x19d   :  { %1984 = vst [vmem:[%s3018_s4 + $0x128] sm:$0xff] %v1920_v56  ;;  %v1793_v62 = vmul.f32 %v1628_v59, %v1074_v57  ;;  %v1663_v58 = vpop.permute.xlu1 %1662  ;;  %v1864_v59 = vld [vmem:[%s3017_s2 + $0x168] sm:$0xff] }
 0x19e   :  { %v787_v63 = vpop.f32.mrf.mxu0  ;;  %v1076_v0 = vpop.f32.mrf.mxu1 }
 0x19f   :  { %v1921_v1 = vadd.f32 %v1857_v60, %v1793_v62  ;;  %v1077_v2 = vadd.f32 %v1076_v0, %v787_v63 }
 0x1a0   :  { %v789_v3 = vpop.f32.mrf.mxu0  ;;  %v1078_v6 = vpop.f32.mrf.mxu1 }
 0x1a1   :  { %1985 = vst [vmem:[%s3018_s4 + $0x130] sm:$0xff] %v1921_v1  ;;  %v1794_v7 = vmul.f32 %v1633_v4, %v1077_v2  ;;  %v1668_v3 = vpop.permute.xlu0 %1667  ;;  %v1865_v4 = vld [vmem:[%s3017_s2 + $0x170] sm:$0xff] }
 0x1a2   :  { %v792_v8 = vpop.f32.mrf.mxu0  ;;  %v1081_v9 = vpop.f32.mrf.mxu1 }
 0x1a3   :  { %v1922_v10 = vadd.f32 %v1858_v5, %v1794_v7  ;;  %v1082_v11 = vadd.f32 %v1081_v9, %v792_v8 }
 0x1a4   :  { %v794_v12 = vpop.f32.mrf.mxu0  ;;  %v1083_v15 = vpop.f32.mrf.mxu1 }
 0x1a5   :  { %1986 = vst [vmem:[%s3018_s4 + $0x138] sm:$0xff] %v1922_v10  ;;  %v1795_v16 = vmul.f32 %v1638_v13, %v1082_v11  ;;  %v1673_v12 = vpop.permute.xlu1 %1672  ;;  %v1866_v13 = vld [vmem:[%s3017_s2 + $0x178] sm:$0xff] }
 0x1a6   :  { %v795_v17 = vpop.f32.mrf.mxu0  ;;  %v1084_v18 = vpop.f32.mrf.mxu1 }
 0x1a7   :  { %v1923_v19 = vadd.f32 %v1859_v14, %v1795_v16  ;;  %v1085_v20 = vadd.f32 %v1084_v18, %v795_v17 }
 0x1a8   :  { %v797_v21 = vpop.f32.mrf.mxu0  ;;  %v1086_v24 = vpop.f32.mrf.mxu1 }
 0x1a9   :  { %1987 = vst [vmem:[%s3018_s4 + $0x140] sm:$0xff] %v1923_v19  ;;  %v1796_v25 = vmul.f32 %v1643_v22, %v1085_v20  ;;  %v1678_v21 = vpop.permute.xlu0 %1677  ;;  %v1867_v22 = vld [vmem:[%s3017_s2 + $0x180] sm:$0xff] }
 0x1aa   :  { %v800_v26 = vpop.f32.mrf.mxu0  ;;  %v1089_v27 = vpop.f32.mrf.mxu1 }
 0x1ab   :  { %v1924_v28 = vadd.f32 %v1860_v23, %v1796_v25  ;;  %v1090_v29 = vadd.f32 %v1089_v27, %v800_v26 }
 0x1ac   :  { %v802_v30 = vpop.f32.mrf.mxu0  ;;  %v1091_v33 = vpop.f32.mrf.mxu1 }
 0x1ad   :  { %1988 = vst [vmem:[%s3018_s4 + $0x148] sm:$0xff] %v1924_v28  ;;  %v1797_v34 = vmul.f32 %v1648_v31, %v1090_v29  ;;  %v1683_v30 = vpop.permute.xlu1 %1682  ;;  %v1868_v31 = vld [vmem:[%s3017_s2 + $0x188] sm:$0xff] }
 0x1ae   :  { %v803_v35 = vpop.f32.mrf.mxu0  ;;  %v1092_v36 = vpop.f32.mrf.mxu1 }
 0x1af   :  { %v1925_v37 = vadd.f32 %v1861_v32, %v1797_v34  ;;  %v1093_v38 = vadd.f32 %v1092_v36, %v803_v35 }
 0x1b0   :  { %v805_v39 = vpop.f32.mrf.mxu0  ;;  %v1094_v42 = vpop.f32.mrf.mxu1 }
 0x1b1   :  { %1989 = vst [vmem:[%s3018_s4 + $0x150] sm:$0xff] %v1925_v37  ;;  %v1798_v43 = vmul.f32 %v1653_v40, %v1093_v38  ;;  %v1688_v39 = vpop.permute.xlu0 %1687  ;;  %v1869_v40 = vld [vmem:[%s3017_s2 + $0x190] sm:$0xff] }
 0x1b2   :  { %v808_v44 = vpop.f32.mrf.mxu0  ;;  %v1097_v45 = vpop.f32.mrf.mxu1 }
 0x1b3   :  { %v1926_v46 = vadd.f32 %v1862_v41, %v1798_v43  ;;  %v1098_v47 = vadd.f32 %v1097_v45, %v808_v44 }
 0x1b4   :  { %v810_v48 = vpop.f32.mrf.mxu0  ;;  %v1099_v51 = vpop.f32.mrf.mxu1 }
 0x1b5   :  { %1990 = vst [vmem:[%s3018_s4 + $0x158] sm:$0xff] %v1926_v46  ;;  %v1799_v52 = vmul.f32 %v1658_v49, %v1098_v47  ;;  %v1693_v48 = vpop.permute.xlu1 %1692  ;;  %v1870_v49 = vld [vmem:[%s3017_s2 + $0x198] sm:$0xff] }
 0x1b6   :  { %v811_v53 = vpop.f32.mrf.mxu0  ;;  %v1100_v54 = vpop.f32.mrf.mxu1 }
 0x1b7   :  { %v1927_v55 = vadd.f32 %v1863_v50, %v1799_v52  ;;  %v1101_v56 = vadd.f32 %v1100_v54, %v811_v53 }
 0x1b8   :  { %v813_v57 = vpop.f32.mrf.mxu0  ;;  %v1102_v60 = vpop.f32.mrf.mxu1 }
 0x1b9   :  { %1991 = vst [vmem:[%s3018_s4 + $0x160] sm:$0xff] %v1927_v55  ;;  %v1800_v61 = vmul.f32 %v1663_v58, %v1101_v56  ;;  %v1698_v57 = vpop.permute.xlu0 %1697  ;;  %v1871_v58 = vld [vmem:[%s3017_s2 + $0x1a0] sm:$0xff] }
 0x1ba   :  { %v816_v62 = vpop.f32.mrf.mxu0  ;;  %v1105_v63 = vpop.f32.mrf.mxu1 }
 0x1bb   :  { %v1928_v0 = vadd.f32 %v1864_v59, %v1800_v61  ;;  %v1106_v1 = vadd.f32 %v1105_v63, %v816_v62 }
 0x1bc   :  { %v818_v2 = vpop.f32.mrf.mxu0  ;;  %v1107_v5 = vpop.f32.mrf.mxu1 }
 0x1bd   :  { %1992 = vst [vmem:[%s3018_s4 + $0x168] sm:$0xff] %v1928_v0  ;;  %v1801_v6 = vmul.f32 %v1668_v3, %v1106_v1  ;;  %v1703_v2 = vpop.permute.xlu1 %1702  ;;  %v1872_v3 = vld [vmem:[%s3017_s2 + $0x1a8] sm:$0xff] }
 0x1be   :  { %v819_v7 = vpop.f32.mrf.mxu0  ;;  %v1108_v8 = vpop.f32.mrf.mxu1 }
 0x1bf   :  { %v1929_v9 = vadd.f32 %v1865_v4, %v1801_v6  ;;  %v1109_v10 = vadd.f32 %v1108_v8, %v819_v7 }
 0x1c0   :  { %v821_v11 = vpop.f32.mrf.mxu0  ;;  %v1110_v14 = vpop.f32.mrf.mxu1 }
 0x1c1   :  { %1993 = vst [vmem:[%s3018_s4 + $0x170] sm:$0xff] %v1929_v9  ;;  %v1802_v15 = vmul.f32 %v1673_v12, %v1109_v10  ;;  %v1708_v11 = vpop.permute.xlu0 %1707  ;;  %v1873_v12 = vld [vmem:[%s3017_s2 + $0x1b0] sm:$0xff] }
 0x1c2   :  { %v824_v16 = vpop.f32.mrf.mxu0  ;;  %v1113_v17 = vpop.f32.mrf.mxu1 }
 0x1c3   :  { %v1930_v18 = vadd.f32 %v1866_v13, %v1802_v15  ;;  %v1114_v19 = vadd.f32 %v1113_v17, %v824_v16 }
 0x1c4   :  { %v826_v20 = vpop.f32.mrf.mxu0  ;;  %v1115_v23 = vpop.f32.mrf.mxu1 }
 0x1c5   :  { %1994 = vst [vmem:[%s3018_s4 + $0x178] sm:$0xff] %v1930_v18  ;;  %v1803_v24 = vmul.f32 %v1678_v21, %v1114_v19  ;;  %v1713_v20 = vpop.permute.xlu1 %1712  ;;  %v1874_v21 = vld [vmem:[%s3017_s2 + $0x1b8] sm:$0xff] }
 0x1c6   :  { %v827_v25 = vpop.f32.mrf.mxu0  ;;  %v1116_v26 = vpop.f32.mrf.mxu1 }
 0x1c7   :  { %v1931_v27 = vadd.f32 %v1867_v22, %v1803_v24  ;;  %v1117_v28 = vadd.f32 %v1116_v26, %v827_v25 }
 0x1c8   :  { %v829_v29 = vpop.f32.mrf.mxu0  ;;  %v1118_v32 = vpop.f32.mrf.mxu1 }
 0x1c9   :  { %1995 = vst [vmem:[%s3018_s4 + $0x180] sm:$0xff] %v1931_v27  ;;  %v1804_v33 = vmul.f32 %v1683_v30, %v1117_v28  ;;  %v1718_v29 = vpop.permute.xlu0 %1717  ;;  %v1875_v30 = vld [vmem:[%s3017_s2 + $0x1c0] sm:$0xff] }
 0x1ca   :  { %v832_v34 = vpop.f32.mrf.mxu0  ;;  %v1121_v35 = vpop.f32.mrf.mxu1 }
 0x1cb   :  { %v1932_v36 = vadd.f32 %v1868_v31, %v1804_v33  ;;  %v1122_v37 = vadd.f32 %v1121_v35, %v832_v34 }
 0x1cc   :  { %v834_v38 = vpop.f32.mrf.mxu0  ;;  %v1123_v41 = vpop.f32.mrf.mxu1 }
 0x1cd   :  { %1996 = vst [vmem:[%s3018_s4 + $0x188] sm:$0xff] %v1932_v36  ;;  %v1805_v42 = vmul.f32 %v1688_v39, %v1122_v37  ;;  %v1723_v38 = vpop.permute.xlu1 %1722  ;;  %v1876_v39 = vld [vmem:[%s3017_s2 + $0x1c8] sm:$0xff] }
 0x1ce   :  { %v835_v43 = vpop.f32.mrf.mxu0  ;;  %v1124_v44 = vpop.f32.mrf.mxu1 }
 0x1cf   :  { %v1933_v45 = vadd.f32 %v1869_v40, %v1805_v42  ;;  %v1125_v46 = vadd.f32 %v1124_v44, %v835_v43 }
 0x1d0   :  { %v837_v47 = vpop.f32.mrf.mxu0  ;;  %v1126_v50 = vpop.f32.mrf.mxu1 }
 0x1d1   :  { %1997 = vst [vmem:[%s3018_s4 + $0x190] sm:$0xff] %v1933_v45  ;;  %v1806_v51 = vmul.f32 %v1693_v48, %v1125_v46  ;;  %v1728_v47 = vpop.permute.xlu0 %1727  ;;  %v1877_v48 = vld [vmem:[%s3017_s2 + $0x1d0] sm:$0xff] }
 0x1d2   :  { %v840_v52 = vpop.f32.mrf.mxu0  ;;  %v1129_v53 = vpop.f32.mrf.mxu1 }
 0x1d3   :  { %v1934_v54 = vadd.f32 %v1870_v49, %v1806_v51  ;;  %v1130_v55 = vadd.f32 %v1129_v53, %v840_v52 }
 0x1d4   :  { %v842_v56 = vpop.f32.mrf.mxu0  ;;  %v1131_v59 = vpop.f32.mrf.mxu1 }
 0x1d5   :  { %1998 = vst [vmem:[%s3018_s4 + $0x198] sm:$0xff] %v1934_v54  ;;  %v1807_v60 = vmul.f32 %v1698_v57, %v1130_v55  ;;  %v1733_v56 = vpop.permute.xlu1 %1732  ;;  %v1878_v57 = vld [vmem:[%s3017_s2 + $0x1d8] sm:$0xff] }
 0x1d6   :  { %v843_v61 = vpop.f32.mrf.mxu0  ;;  %v1132_v62 = vpop.f32.mrf.mxu1 }
 0x1d7   :  { %v1935_v63 = vadd.f32 %v1871_v58, %v1807_v60  ;;  %v1133_v0 = vadd.f32 %v1132_v62, %v843_v61 }
 0x1d8   :  { %v845_v1 = vpop.f32.mrf.mxu0  ;;  %v1134_v4 = vpop.f32.mrf.mxu1 }
 0x1d9   :  { %1999 = vst [vmem:[%s3018_s4 + $0x1a0] sm:$0xff] %v1935_v63  ;;  %v1808_v5 = vmul.f32 %v1703_v2, %v1133_v0  ;;  %v1738_v1 = vpop.permute.xlu0 %1737  ;;  %v1879_v2 = vld [vmem:[%s3017_s2 + $0x1e0] sm:$0xff] }
 0x1da   :  { %v848_v6 = vpop.f32.mrf.mxu0  ;;  %v1137_v7 = vpop.f32.mrf.mxu1 }
 0x1db   :  { %v1936_v8 = vadd.f32 %v1872_v3, %v1808_v5  ;;  %v1138_v9 = vadd.f32 %v1137_v7, %v848_v6 }
 0x1dc   :  { %v850_v10 = vpop.f32.mrf.mxu0  ;;  %v1139_v13 = vpop.f32.mrf.mxu1 }
 0x1dd   :  { %2000 = vst [vmem:[%s3018_s4 + $0x1a8] sm:$0xff] %v1936_v8  ;;  %v1809_v14 = vmul.f32 %v1708_v11, %v1138_v9  ;;  %v1743_v10 = vpop.permute.xlu1 %1742  ;;  %v1880_v11 = vld [vmem:[%s3017_s2 + $0x1e8] sm:$0xff] }
 0x1de   :  { %v851_v15 = vpop.f32.mrf.mxu0  ;;  %v1140_v16 = vpop.f32.mrf.mxu1 }
 0x1df   :  { %v1937_v17 = vadd.f32 %v1873_v12, %v1809_v14  ;;  %v1141_v18 = vadd.f32 %v1140_v16, %v851_v15 }
 0x1e0   :  { %v853_v19 = vpop.f32.mrf.mxu0  ;;  %v1142_v22 = vpop.f32.mrf.mxu1 }
 0x1e1   :  { %2001 = vst [vmem:[%s3018_s4 + $0x1b0] sm:$0xff] %v1937_v17  ;;  %v1810_v23 = vmul.f32 %v1713_v20, %v1141_v18  ;;  %v1748_v19 = vpop.permute.xlu0 %1747  ;;  %v1881_v20 = vld [vmem:[%s3017_s2 + $0x1f0] sm:$0xff] }
 0x1e2   :  { %v856_v24 = vpop.f32.mrf.mxu0  ;;  %v1145_v25 = vpop.f32.mrf.mxu1 }
 0x1e3   :  { %v1938_v26 = vadd.f32 %v1874_v21, %v1810_v23  ;;  %v1146_v27 = vadd.f32 %v1145_v25, %v856_v24 }
 0x1e4   :  { %v858_v28 = vpop.f32.mrf.mxu0  ;;  %v1147_v31 = vpop.f32.mrf.mxu1 }
 0x1e5   :  { %2002 = vst [vmem:[%s3018_s4 + $0x1b8] sm:$0xff] %v1938_v26  ;;  %v1811_v32 = vmul.f32 %v1718_v29, %v1146_v27  ;;  %v1753_v28 = vpop.permute.xlu1 %1752  ;;  %v1882_v29 = vld [vmem:[%s3017_s2 + $0x1f8] sm:$0xff] }
 0x1e6   :  { %v859_v33 = vpop.f32.mrf.mxu0  ;;  %v1148_v34 = vpop.f32.mrf.mxu1 }
 0x1e7   :  { %v1939_v35 = vadd.f32 %v1875_v30, %v1811_v32  ;;  %v1149_v36 = vadd.f32 %v1148_v34, %v859_v33 }
 0x1e8   :  { %v861_v37 = vpop.f32.mrf.mxu0  ;;  %v1150_v40 = vpop.f32.mrf.mxu1 }
 0x1e9   :  { %2003 = vst [vmem:[%s3018_s4 + $0x1c0] sm:$0xff] %v1939_v35  ;;  %v1812_v41 = vmul.f32 %v1723_v38, %v1149_v36 }
 0x1ea   :  { %v864_v42 = vpop.f32.mrf.mxu0  ;;  %v1153_v43 = vpop.f32.mrf.mxu1 }
 0x1eb   :  { %v1940_v44 = vadd.f32 %v1876_v39, %v1812_v41  ;;  %v1154_v45 = vadd.f32 %v1153_v43, %v864_v42 }
 0x1ec   :  { %v866_v46 = vpop.f32.mrf.mxu0  ;;  %v1155_v49 = vpop.f32.mrf.mxu1 }
 0x1ed   :  { %2004 = vst [vmem:[%s3018_s4 + $0x1c8] sm:$0xff] %v1940_v44  ;;  %v1813_v50 = vmul.f32 %v1728_v47, %v1154_v45 }
 0x1ee   :  { %v867_v51 = vpop.f32.mrf.mxu0  ;;  %v1156_v52 = vpop.f32.mrf.mxu1 }
 0x1ef   :  { %v1941_v53 = vadd.f32 %v1877_v48, %v1813_v50  ;;  %v1157_v54 = vadd.f32 %v1156_v52, %v867_v51 }
 0x1f0   :  { %v869_v55 = vpop.f32.mrf.mxu0  ;;  %v1158_v58 = vpop.f32.mrf.mxu1 }
 0x1f1   :  { %2005 = vst [vmem:[%s3018_s4 + $0x1d0] sm:$0xff] %v1941_v53  ;;  %v1814_v59 = vmul.f32 %v1733_v56, %v1157_v54 }
 0x1f2   :  { %v872_v60 = vpop.f32.mrf.mxu0  ;;  %v1161_v61 = vpop.f32.mrf.mxu1 }
 0x1f3   :  { %v1942_v62 = vadd.f32 %v1878_v57, %v1814_v59  ;;  %v1162_v63 = vadd.f32 %v1161_v61, %v872_v60 }
 0x1f4   :  { %v874_v0 = vpop.f32.mrf.mxu0  ;;  %v1163_v3 = vpop.f32.mrf.mxu1 }
 0x1f5   :  { %2006 = vst [vmem:[%s3018_s4 + $0x1d8] sm:$0xff] %v1942_v62  ;;  %v1815_v4 = vmul.f32 %v1738_v1, %v1162_v63 }
 0x1f6   :  { %v875_v5 = vpop.f32.mrf.mxu0  ;;  %v1164_v6 = vpop.f32.mrf.mxu1 }
 0x1f7   :  { %v1943_v7 = vadd.f32 %v1879_v2, %v1815_v4  ;;  %v1165_v8 = vadd.f32 %v1164_v6, %v875_v5 }
 0x1f8   :  { %v877_v9 = vpop.f32.mrf.mxu0  ;;  %v1166_v12 = vpop.f32.mrf.mxu1 }
 0x1f9   :  { %2007 = vst [vmem:[%s3018_s4 + $0x1e0] sm:$0xff] %v1943_v7  ;;  %v1816_v13 = vmul.f32 %v1743_v10, %v1165_v8 }
 0x1fa   :  { %v880_v14 = vpop.f32.mrf.mxu0  ;;  %v1169_v15 = vpop.f32.mrf.mxu1 }
 0x1fb   :  { %v1944_v16 = vadd.f32 %v1880_v11, %v1816_v13  ;;  %v1170_v17 = vadd.f32 %v1169_v15, %v880_v14 }
 0x1fc   :  { %v882_v18 = vpop.f32.mrf.mxu0  ;;  %v1171_v21 = vpop.f32.mrf.mxu1 }
 0x1fd   :  { %2008 = vst [vmem:[%s3018_s4 + $0x1e8] sm:$0xff] %v1944_v16  ;;  %v1817_v22 = vmul.f32 %v1748_v19, %v1170_v17 }
 0x1fe   :  { %v883_v23 = vpop.f32.mrf.mxu0  ;;  %v1172_v24 = vpop.f32.mrf.mxu1 }
 0x1ff   :  { %v1945_v25 = vadd.f32 %v1881_v20, %v1817_v22  ;;  %v1173_v26 = vadd.f32 %v1172_v24, %v883_v23 }
 0x200   :  { %v885_v27 = vpop.f32.mrf.mxu0  ;;  %v1174_v30 = vpop.f32.mrf.mxu1 }
 0x201   :  { %2009 = vst [vmem:[%s3018_s4 + $0x1f0] sm:$0xff] %v1945_v25  ;;  %v1818_v31 = vmul.f32 %v1753_v28, %v1173_v26 }
 0x203   :  { %v1946_v32 = vadd.f32 %v1882_v29, %v1818_v31 }
 0x205   :  { %2010 = vst [vmem:[%s3018_s4 + $0x1f8] sm:$0xff] %v1946_v32 }

// kernel: graphsage_forward.2
= control target key start
LH: loop header
LB: loop body
LE: loop exit
PB: predicated region body
PF: predicated region fallthrough
CT: control target
= control target key end

     0   :  { %v2500_v0 = vmov 0   ;;  %s3577_s1 = inlined_call_operand.vmem [shape: bf16[512,128], index: 1, kind: input, shape index: {}]   ;;  %s3578_s0 = inlined_call_operand.vmem [shape: s8[512,512], index: 0, kind: input, shape index: {}]   ;;  %s3579_s3 = inlined_call_operand.vmem [shape: f32[512,1], index: 3, kind: input, shape index: {}]   ;;  %s3580_s4 = inlined_call_operand.vmem [shape: bf16[512,128], index: 4, kind: input, shape index: {}]   ;;  %s3581_s2 = inlined_call_operand.vmem [shape: f32[512,128], index: 2, kind: input, shape index: {}]   ;;  %s3582_s5 = inlined_call_operand.vmem [shape: f32[512,128], index: 5, kind: output, shape index: {}]  }
   0x1   :  { %601 = vmatprep.subr.bf16.mxu0 %v2500_v0  ;;  %890 = vmatprep.subr.bf16.mxu1 %v2500_v0  ;;  %v2468_v1 = vld [vmem:[%s3577_s1 + $0x38] sm:$0xff]   ;;  %v2470_v3 = vld [vmem:[%s3577_s1 + $0x30] sm:$0xff]   ;;  %v2472_v5 = vld [vmem:[%s3577_s1 + $0x28] sm:$0xff]  }
   0x2   :  { %v2469_v2 = vld [vmem:[%s3577_s1 + $0xb8] sm:$0xff]   ;;  %2466 = vset.pattern.permute.xlu0 %v2500_v0  ;;  %2467 = vset.pattern.permute.xlu1 %v2500_v0  ;;  %v2471_v4 = vld [vmem:[%s3577_s1 + $0xb0] sm:$0xff]   ;;  %v2473_v6 = vld [vmem:[%s3577_s1 + $0xa8] sm:$0xff]  }
   0x3   :  { %602 = vmatpush1.bf16.msra.mxu0 %v2468_v1  ;;  %891 = vmatpush1.bf16.msra.mxu1 %v2469_v2  ;;  %v2474_v7 = vld [vmem:[%s3577_s1 + $0x20] sm:$0xff]   ;;  %v2476_v9 = vld [vmem:[%s3577_s1 + $0x18] sm:$0xff]   ;;  %v2478_v11 = vld [vmem:[%s3577_s1 + $0x10] sm:$0xff]  }
   0x4   :  { %603 = vmatprep.subr.bf16.mxu0 %v2500_v0  ;;  %892 = vmatprep.subr.bf16.mxu1 %v2500_v0  ;;  %v2475_v8 = vld [vmem:[%s3577_s1 + $0xa0] sm:$0xff]   ;;  %v2477_v10 = vld [vmem:[%s3577_s1 + $0x98] sm:$0xff]   ;;  %v2479_v12 = vld [vmem:[%s3577_s1 + $0x90] sm:$0xff]  }
   0x5   :  { %v2480_v13 = vld [vmem:[%s3577_s1 + $0x8] sm:$0xff]   ;;  %v2482_v15 = vld [vmem:[%s3577_s1] sm:$0xff]   ;;  %v2484_v17 = vld [vmem:[%s3577_s1 + $0x78] sm:$0xff]  }
   0x6   :  { %v2481_v14 = vld [vmem:[%s3577_s1 + $0x88] sm:$0xff]   ;;  %v2483_v16 = vld [vmem:[%s3577_s1 + $0x80] sm:$0xff]   ;;  %v2485_v18 = vld [vmem:[%s3577_s1 + $0xf8] sm:$0xff]  }
   0x7   :  { %604 = vmatpush1.bf16.msra.mxu0 %v2470_v3  ;;  %893 = vmatpush1.bf16.msra.mxu1 %v2471_v4  ;;  %v2608_v19 = vld [vmem:[%s3578_s0 + $0x8] sm:$0xff]  ;;  %v2613_v20 = vld [vmem:[%s3578_s0 + $0x18] sm:$0xff]  ;;  %v2486_v23 = vld [vmem:[%s3577_s1 + $0x70] sm:$0xff]  }
   0x8   :  { %605 = vmatprep.subr.bf16.mxu0 %v2500_v0  ;;  %894 = vmatprep.subr.bf16.mxu1 %v2500_v0  ;;  %v154_v21 = vunpack.c.l.s8.bf16 %v2608_v19  ;;  %v156_v22 = vunpack.c.l.s8.bf16 %v2613_v20  ;;  %v2487_v24 = vld [vmem:[%s3577_s1 + $0xf0] sm:$0xff]   ;;  %v2488_v25 = vld [vmem:[%s3577_s1 + $0x68] sm:$0xff]   ;;  %v1310_v26 = vld [vmem:[%s3579_s3] sm:$0xff]  ;;  %v158_v53 = vunpack.c.h.s8.bf16 %v2608_v19  ;;  %v160_v56 = vunpack.c.h.s8.bf16 %v2613_v20 }
   0x9   :  { %v2489_v27 = vld [vmem:[%s3577_s1 + $0xe8] sm:$0xff]   ;;  %v1312_v28 = vld [vmem:[%s3579_s3 + $0x10] sm:$0xff]  ;;  %1440 = vperm.xlu0 %2466, %v1310_v26   ;;  %v2490_v30 = vld [vmem:[%s3577_s1 + $0x60] sm:$0xff]  }
   0xa   :  { %633 = vmatprep.mubr.bf16.mxu0 %v154_v21  ;;  %922 = vmatprep.mubr.bf16.mxu1 %v156_v22  ;;  %v1311_v29 = vld [vmem:[%s3579_s3 + $0x8] sm:$0xff]  ;;  %v1313_v31 = vld [vmem:[%s3579_s3 + $0x18] sm:$0xff]  ;;  %v2491_v32 = vld [vmem:[%s3577_s1 + $0xe0] sm:$0xff]  }
   0xb   :  { %606 = vmatpush1.bf16.msra.mxu0 %v2472_v5  ;;  %895 = vmatpush1.bf16.msra.mxu1 %v2473_v6  ;;  %v1314_v33 = vld [vmem:[%s3579_s3 + $0x20] sm:$0xff]  ;;  %v2492_v34 = vld [vmem:[%s3577_s1 + $0x58] sm:$0xff]   ;;  %v1315_v35 = vld [vmem:[%s3579_s3 + $0x28] sm:$0xff] }
   0xc   :  { %607 = vmatprep.subr.bf16.mxu0 %v2500_v0  ;;  %896 = vmatprep.subr.bf16.mxu1 %v2500_v0  ;;  %v2493_v36 = vld [vmem:[%s3577_s1 + $0xd8] sm:$0xff]   ;;  %v1316_v37 = vld [vmem:[%s3579_s3 + $0x30] sm:$0xff]  ;;  %v1318_v41 = vld [vmem:[%s3579_s3 + $0x40] sm:$0xff] }
   0xd   :  { %1450 = vperm.xlu1 %2467, %v1312_v28   ;;  %1445 = vperm.xlu0 %2466, %v1311_v29   ;;  %v2494_v38 = vld [vmem:[%s3577_s1 + $0x50] sm:$0xff]   ;;  %v1317_v39 = vld [vmem:[%s3579_s3 + $0x38] sm:$0xff]  ;;  %v2496_v42 = vld [vmem:[%s3577_s1 + $0x48] sm:$0xff]  }
   0xe   :  { %v2495_v40 = vld [vmem:[%s3577_s1 + $0xd0] sm:$0xff]   ;;  %v1319_v43 = vld [vmem:[%s3579_s3 + $0x48] sm:$0xff]  ;;  %v2498_v46 = vld [vmem:[%s3577_s1 + $0x40] sm:$0xff]  }
   0xf   :  { %608 = vmatpush1.bf16.msra.mxu0 %v2474_v7  ;;  %897 = vmatpush1.bf16.msra.mxu1 %v2475_v8  ;;  %v2497_v44 = vld [vmem:[%s3577_s1 + $0xc8] sm:$0xff]   ;;  %v1320_v45 = vld [vmem:[%s3579_s3 + $0x50] sm:$0xff]  ;;  %v89_v47 = vld [vmem:[%s3578_s0] sm:$0xff] }
  0x10   :  { %609 = vmatprep.subr.bf16.mxu0 %v2500_v0  ;;  %898 = vmatprep.subr.bf16.mxu1 %v2500_v0  ;;  %v1321_v48 = vld [vmem:[%s3579_s3 + $0x58] sm:$0xff]  ;;  %v2499_v49 = vld [vmem:[%s3577_s1 + $0xc0] sm:$0xff]   ;;  %v91_v50 = vld [vmem:[%s3578_s0 + $0x10] sm:$0xff]  ;;  %v153_v51 = vunpack.c.l.s8.bf16 %v89_v47  ;;  %v157_v61 = vunpack.c.h.s8.bf16 %v89_v47 }
  0x11   :  { %1455 = vperm.xlu1 %2467, %v1313_v31   ;;  %1460 = vperm.xlu0 %2466, %v1314_v33   ;;  %v1322_v52 = vld [vmem:[%s3579_s3 + $0x60] sm:$0xff]  ;;  %v155_v54 = vunpack.c.l.s8.bf16 %v91_v50  ;;  %v1323_v55 = vld [vmem:[%s3579_s3 + $0x68] sm:$0xff]  ;;  %v1324_v57 = vld [vmem:[%s3579_s3 + $0x70] sm:$0xff]  ;;  %v159_v63 = vunpack.c.h.s8.bf16 %v91_v50 }
  0x12   :  { %v1325_v58 = vld [vmem:[%s3579_s3 + $0x78] sm:$0xff]  ;;  %v94_v59 = vld [vmem:[%s3578_s0 + $0x28] sm:$0xff]  ;;  %v1326_v62 = vld [vmem:[%s3579_s3 + $0x80] sm:$0xff] }
  0x13   :  { %610 = vmatpush1.bf16.msra.mxu0 %v2476_v9  ;;  %899 = vmatpush1.bf16.msra.mxu1 %v2477_v10  ;;  %v96_v60 = vld [vmem:[%s3578_s0 + $0x38] sm:$0xff]  ;;  %v1327_v1 = vld [vmem:[%s3579_s3 + $0x88] sm:$0xff]  ;;  %v1328_v3 = vld [vmem:[%s3579_s3 + $0x90] sm:$0xff]  ;;  %v166_v10 = vunpack.c.h.s8.bf16 %v94_v59 }
  0x14   :  { %611 = vmatprep.subr.bf16.mxu0 %v2500_v0  ;;  %900 = vmatprep.subr.bf16.mxu1 %v2500_v0  ;;  %v164_v2 = vunpack.c.l.s8.bf16 %v96_v60  ;;  %v93_v4 = vld [vmem:[%s3578_s0 + $0x20] sm:$0xff]  ;;  %v1329_v5 = vld [vmem:[%s3579_s3 + $0x98] sm:$0xff]  ;;  %v95_v6 = vld [vmem:[%s3578_s0 + $0x30] sm:$0xff] }
  0x15   :  { %1465 = vperm.xlu1 %2467, %v1315_v35   ;;  %1470 = vperm.xlu0 %2466, %v1316_v37   ;;  %v161_v7 = vunpack.c.l.s8.bf16 %v93_v4  ;;  %v1330_v8 = vld [vmem:[%s3579_s3 + $0xa0] sm:$0xff]  ;;  %v163_v9 = vunpack.c.l.s8.bf16 %v95_v6  ;;  %v167_v19 = vunpack.c.h.s8.bf16 %v95_v6  ;;  %v1335_v21 = vld [vmem:[%s3579_s3 + $0xc8] sm:$0xff]  ;;  %v99_v26 = vld [vmem:[%s3578_s0 + $0x50] sm:$0xff] }
  0x16   :  { %v1338_v28 = vld [vmem:[%s3579_s3 + $0xe0] sm:$0xff]  ;;  %v171_v29 = vunpack.c.l.s8.bf16 %v99_v26  ;;  %v1339_v31 = vld [vmem:[%s3579_s3 + $0xe8] sm:$0xff]  ;;  %v1340_v33 = vld [vmem:[%s3579_s3 + $0xf0] sm:$0xff] }
  0x17   :  { %612 = vmatpush1.bf16.msra.mxu0 %v2478_v11  ;;  %901 = vmatpush1.bf16.msra.mxu1 %v2479_v12  ;;  %v1331_v11 = vld [vmem:[%s3579_s3 + $0xa8] sm:$0xff]  ;;  %v168_v12 = vunpack.c.h.s8.bf16 %v96_v60 }
  0x18   :  { %613 = vmatprep.subr.bf16.mxu0 %v2500_v0  ;;  %902 = vmatprep.subr.bf16.mxu1 %v2500_v0  ;;  %v102_v35 = vld [vmem:[%s3578_s0 + $0x68] sm:$0xff] }
  0x19   :  { %1475 = vperm.xlu1 %2467, %v1317_v39   ;;  %1480 = vperm.xlu0 %2466, %v1318_v41   ;;  %v175_v39 = vunpack.c.h.s8.bf16 %v99_v26  ;;  %v1343_v41 = vld [vmem:[%s3579_s3 + $0x108] sm:$0xff]  ;;  %v182_v50 = vunpack.c.h.s8.bf16 %v102_v35 }
  0x1b   :  { %614 = vmatpush1.bf16.msra.mxu0 %v2480_v13  ;;  %903 = vmatpush1.bf16.msra.mxu1 %v2481_v14  ;;  %v1332_v13 = vld [vmem:[%s3579_s3 + $0xb0] sm:$0xff]  ;;  %v1333_v14 = vld [vmem:[%s3579_s3 + $0xb8] sm:$0xff] }
  0x1c   :  { %615 = vmatprep.subr.bf16.mxu0 %v2500_v0  ;;  %904 = vmatprep.subr.bf16.mxu1 %v2500_v0 }
  0x1d   :  { %1485 = vperm.xlu1 %2467, %v1319_v43   ;;  %1490 = vperm.xlu0 %2466, %v1320_v45   ;;  %v1344_v43 = vld [vmem:[%s3579_s3 + $0x110] sm:$0xff]  ;;  %v1345_v45 = vld [vmem:[%s3579_s3 + $0x118] sm:$0xff] }
  0x1f   :  { %616 = vmatpush1.bf16.msra.mxu0 %v2482_v15  ;;  %905 = vmatpush1.bf16.msra.mxu1 %v2483_v16  ;;  %v98_v15 = vld [vmem:[%s3578_s0 + $0x48] sm:$0xff]  ;;  %v100_v16 = vld [vmem:[%s3578_s0 + $0x58] sm:$0xff] }
  0x20   :  { %617 = vmatprep.subr.bf16.mxu0 %v2500_v0  ;;  %906 = vmatprep.subr.bf16.mxu1 %v2500_v0  ;;  %v170_v20 = vunpack.c.l.s8.bf16 %v98_v15  ;;  %v172_v22 = vunpack.c.l.s8.bf16 %v100_v16 }
  0x21   :  { %1495 = vperm.xlu1 %2467, %v1321_v48   ;;  %1500 = vperm.xlu0 %2466, %v1322_v52   ;;  %v1346_v48 = vld [vmem:[%s3579_s3 + $0x120] sm:$0xff] }
  0x23   :  { %618 = vmatpush2.bf16.msra.mxu0 %v2484_v17  ;;  %907 = vmatpush2.bf16.msra.mxu1 %v2485_v18  ;;  %v165_v17 = vunpack.c.h.s8.bf16 %v93_v4  ;;  %v1334_v18 = vld [vmem:[%s3579_s3 + $0xc0] sm:$0xff] }
  0x24   :  { %619 = vmatprep.subr.bf16.mxu0 %v2500_v0  ;;  %908 = vmatprep.subr.bf16.mxu1 %v2500_v0  ;;  %v1354_v4 = vld [vmem:[%s3579_s3 + $0x160] sm:$0xff] }
  0x25   :  { %1505 = vperm.xlu1 %2467, %v1323_v55   ;;  %1510 = vperm.xlu0 %2466, %v1324_v57   ;;  %v106_v55 = vld [vmem:[%s3578_s0 + $0x88] sm:$0xff] }
  0x26   :  { %v186_v60 = vunpack.c.l.s8.bf16 %v106_v55  ;;  %v190_v6 = vunpack.c.h.s8.bf16 %v106_v55 }
  0x27   :  { %620 = vmatpush2.bf16.msra.mxu0 %v2486_v23  ;;  %909 = vmatpush2.bf16.msra.mxu1 %v2487_v24  ;;  %v1336_v23 = vld [vmem:[%s3579_s3 + $0xd0] sm:$0xff]  ;;  %v97_v24 = vld [vmem:[%s3578_s0 + $0x40] sm:$0xff] }
  0x28   :  { %621 = vmatprep.subr.bf16.mxu0 %v2500_v0  ;;  %910 = vmatprep.subr.bf16.mxu1 %v2500_v0  ;;  %v173_v37 = vunpack.c.h.s8.bf16 %v97_v24 }
  0x29   :  { %1515 = vperm.xlu1 %2467, %v1325_v58   ;;  %1520 = vperm.xlu0 %2466, %v1326_v62   ;;  %v1350_v58 = vld [vmem:[%s3579_s3 + $0x140] sm:$0xff] }
  0x2b   :  { %622 = vmatpush2.bf16.msra.mxu0 %v2488_v25  ;;  %911 = vmatpush2.bf16.msra.mxu1 %v2489_v27  ;;  %v1337_v25 = vld [vmem:[%s3579_s3 + $0xd8] sm:$0xff]  ;;  %v169_v27 = vunpack.c.l.s8.bf16 %v97_v24  ;;  %v1362_v24 = vld [vmem:[%s3579_s3 + $0x1a0] sm:$0xff] }
  0x2c   :  { %623 = vmatprep.subr.bf16.mxu0 %v2500_v0  ;;  %912 = vmatprep.subr.bf16.mxu1 %v2500_v0 }
  0x2d   :  { %1525 = vperm.xlu1 %2467, %v1327_v1   ;;  %1530 = vperm.xlu0 %2466, %v1328_v3   ;;  %v1353_v1 = vld [vmem:[%s3579_s3 + $0x158] sm:$0xff] }
  0x2f   :  { %624 = vmatpush2.bf16.msra.mxu0 %v2490_v30  ;;  %913 = vmatpush2.bf16.msra.mxu1 %v2491_v32  ;;  %v174_v30 = vunpack.c.h.s8.bf16 %v98_v15  ;;  %v176_v32 = vunpack.c.h.s8.bf16 %v100_v16 }
  0x30   :  { %625 = vmatprep.subr.bf16.mxu0 %v2500_v0  ;;  %914 = vmatprep.subr.bf16.mxu1 %v2500_v0 }
  0x31   :  { %1535 = vperm.xlu1 %2467, %v1329_v5   ;;  %1540 = vperm.xlu0 %2466, %v1330_v8  }
  0x33   :  { %626 = vmatpush2.bf16.msra.mxu0 %v2492_v34  ;;  %915 = vmatpush2.bf16.msra.mxu1 %v2493_v36  ;;  %v1341_v34 = vld [vmem:[%s3579_s3 + $0xf8] sm:$0xff] }
  0x34   :  { %627 = vmatprep.subr.bf16.mxu0 %v2500_v0  ;;  %916 = vmatprep.subr.bf16.mxu1 %v2500_v0  ;;  %v104_v36 = vld [vmem:[%s3578_s0 + $0x78] sm:$0xff] }
  0x35   :  { %1545 = vperm.xlu1 %2467, %v1331_v11   ;;  %1550 = vperm.xlu0 %2466, %v1332_v13   ;;  %v184_v52 = vunpack.c.h.s8.bf16 %v104_v36  ;;  %v110_v11 = vld [vmem:[%s3578_s0 + $0xa8] sm:$0xff] }
  0x36   :  { %v194_v16 = vunpack.c.l.s8.bf16 %v110_v11  ;;  %v198_v26 = vunpack.c.h.s8.bf16 %v110_v11  ;;  %v126_v11 = vld [vmem:[%s3578_s0 + $0x128] sm:$0xff] }
  0x37   :  { %628 = vmatpush2.bf16.msra.mxu0 %v2494_v38  ;;  %917 = vmatpush2.bf16.msra.mxu1 %v2495_v40  ;;  %v1342_v38 = vld [vmem:[%s3579_s3 + $0x100] sm:$0xff]  ;;  %v178_v40 = vunpack.c.l.s8.bf16 %v102_v35 }
  0x38   :  { %629 = vmatprep.subr.bf16.mxu0 %v2500_v0  ;;  %918 = vmatprep.subr.bf16.mxu1 %v2500_v0 }
  0x39   :  { %1555 = vperm.xlu1 %2467, %v1333_v14   ;;  %1560 = vperm.xlu0 %2466, %v1334_v18   ;;  %v1358_v14 = vld [vmem:[%s3579_s3 + $0x180] sm:$0xff] }
  0x3b   :  { %630 = vmatpush2.bf16.msra.mxu0 %v2496_v42  ;;  %919 = vmatpush2.bf16.msra.mxu1 %v2497_v44  ;;  %v180_v42 = vunpack.c.l.s8.bf16 %v104_v36  ;;  %v101_v44 = vld [vmem:[%s3578_s0 + $0x60] sm:$0xff] }
  0x3c   :  { %631 = vmatprep.subr.bf16.mxu0 %v2500_v0  ;;  %920 = vmatprep.subr.bf16.mxu1 %v2500_v0  ;;  %v162_v0 = vunpack.c.l.s8.bf16 %v94_v59  ;;  %v177_v47 = vunpack.c.l.s8.bf16 %v101_v44  ;;  %v181_v57 = vunpack.c.h.s8.bf16 %v101_v44  ;;  %v1370_v44 = vld [vmem:[%s3579_s3 + $0x1e0] sm:$0xff] }
  0x3d   :  { %1565 = vperm.xlu1 %2467, %v1335_v21   ;;  %1570 = vperm.xlu0 %2466, %v1336_v23   ;;  %v1361_v21 = vld [vmem:[%s3579_s3 + $0x198] sm:$0xff] }
  0x3f   :  { %632 = vmatpush2.bf16.msra.mxu0 %v2498_v46  ;;  %921 = vmatpush2.bf16.msra.mxu1 %v2499_v49  ;;  %v103_v46 = vld [vmem:[%s3578_s0 + $0x70] sm:$0xff] }
  0x40   :  { %v179_v49 = vunpack.c.l.s8.bf16 %v103_v46  ;;  %v183_v59 = vunpack.c.h.s8.bf16 %v103_v46 }
  0x41   :  { %1575 = vperm.xlu1 %2467, %v1337_v25   ;;  %1580 = vperm.xlu0 %2466, %v1338_v28  }
  0x42   :  { %634 = vmatmul.mubr.bf16.vlgmr.msra.gmra.mxu0 %v153_v51  ;;  %923 = vmatmul.mubr.bf16.vlgmr.msra.gmra.mxu1 %v155_v54  ;;  %v1347_v51 = vld [vmem:[%s3579_s3 + $0x128] sm:$0xff]  ;;  %v1349_v54 = vld [vmem:[%s3579_s3 + $0x138] sm:$0xff] }
  0x43   :  { %641 = vmatprep.mubr.bf16.mxu0 %v158_v53  ;;  %930 = vmatprep.mubr.bf16.mxu1 %v160_v56  ;;  %v1348_v53 = vld [vmem:[%s3579_s3 + $0x130] sm:$0xff]  ;;  %v108_v56 = vld [vmem:[%s3578_s0 + $0x98] sm:$0xff] }
  0x44   :  { %v188_v62 = vunpack.c.l.s8.bf16 %v108_v56  ;;  %v192_v8 = vunpack.c.h.s8.bf16 %v108_v56 }
  0x45   :  { %1585 = vperm.xlu1 %2467, %v1339_v31   ;;  %1590 = vperm.xlu0 %2466, %v1340_v33   ;;  %v114_v31 = vld [vmem:[%s3578_s0 + $0xc8] sm:$0xff] }
  0x46   :  { %v202_v36 = vunpack.c.l.s8.bf16 %v114_v31  ;;  %v206_v46 = vunpack.c.h.s8.bf16 %v114_v31 }
  0x49   :  { %1595 = vperm.xlu1 %2467, %v1341_v34   ;;  %1600 = vperm.xlu0 %2466, %v1342_v38   ;;  %v1366_v34 = vld [vmem:[%s3579_s3 + $0x1c0] sm:$0xff] }
  0x4a   :  { %642 = vmatmul.mubr.bf16.gmra.mxu0 %v157_v61  ;;  %931 = vmatmul.mubr.bf16.gmra.mxu1 %v159_v63  ;;  %v1351_v61 = vld [vmem:[%s3579_s3 + $0x148] sm:$0xff]  ;;  %v1352_v63 = vld [vmem:[%s3579_s3 + $0x150] sm:$0xff] }
  0x4b   :  { %649 = vmatprep.mubr.bf16.mxu0 %v162_v0  ;;  %938 = vmatprep.mubr.bf16.mxu1 %v164_v2  ;;  %v105_v0 = vld [vmem:[%s3578_s0 + $0x80] sm:$0xff]  ;;  %v107_v2 = vld [vmem:[%s3578_s0 + $0x90] sm:$0xff] }
  0x4c   :  { %v185_v3 = vunpack.c.l.s8.bf16 %v105_v0  ;;  %v187_v5 = vunpack.c.l.s8.bf16 %v107_v2  ;;  %v189_v13 = vunpack.c.h.s8.bf16 %v105_v0  ;;  %v191_v15 = vunpack.c.h.s8.bf16 %v107_v2  ;;  %v124_v0 = vld [vmem:[%s3578_s0 + $0x118] sm:$0xff] }
  0x4d   :  { %1605 = vperm.xlu1 %2467, %v1343_v41   ;;  %1610 = vperm.xlu0 %2466, %v1344_v43   ;;  %v1369_v41 = vld [vmem:[%s3579_s3 + $0x1d8] sm:$0xff] }
  0x51   :  { %1615 = vperm.xlu1 %2467, %v1345_v45   ;;  %1620 = vperm.xlu0 %2466, %v1346_v48  }
  0x52   :  { %650 = vmatmul.mubr.bf16.gmra.mxu0 %v161_v7  ;;  %939 = vmatmul.mubr.bf16.gmra.mxu1 %v163_v9  ;;  %v1355_v7 = vld [vmem:[%s3579_s3 + $0x168] sm:$0xff]  ;;  %v1356_v9 = vld [vmem:[%s3579_s3 + $0x170] sm:$0xff] }
  0x53   :  { %657 = vmatprep.mubr.bf16.mxu0 %v166_v10  ;;  %946 = vmatprep.mubr.bf16.mxu1 %v168_v12  ;;  %v1357_v10 = vld [vmem:[%s3579_s3 + $0x178] sm:$0xff] }
  0x54   :  { %v112_v12 = vld [vmem:[%s3578_s0 + $0xb8] sm:$0xff] }
  0x55   :  { %1625 = vperm.xlu1 %2467, %v1347_v51   ;;  %1630 = vperm.xlu0 %2466, %v1348_v53   ;;  %v196_v18 = vunpack.c.l.s8.bf16 %v112_v12  ;;  %v200_v28 = vunpack.c.h.s8.bf16 %v112_v12  ;;  %v118_v51 = vld [vmem:[%s3578_s0 + $0xe8] sm:$0xff]  ;;  %v128_v12 = vld [vmem:[%s3578_s0 + $0x138] sm:$0xff] }
  0x56   :  { %v210_v55 = vunpack.c.l.s8.bf16 %v118_v51 }
  0x59   :  { %1635 = vperm.xlu1 %2467, %v1349_v54   ;;  %1640 = vperm.xlu0 %2466, %v1350_v58   ;;  %v119_v58 = vld [vmem:[%s3578_s0 + $0xf0] sm:$0xff] }
  0x5a   :  { %658 = vmatmul.mubr.bf16.gmra.mxu0 %v165_v17  ;;  %947 = vmatmul.mubr.bf16.gmra.mxu1 %v167_v19  ;;  %v1359_v17 = vld [vmem:[%s3579_s3 + $0x188] sm:$0xff]  ;;  %v1360_v19 = vld [vmem:[%s3579_s3 + $0x190] sm:$0xff]  ;;  %v215_v2 = vunpack.c.h.s8.bf16 %v119_v58 }
  0x5b   :  { %665 = vmatprep.mubr.bf16.mxu0 %v170_v20  ;;  %954 = vmatprep.mubr.bf16.mxu1 %v172_v22  ;;  %v109_v20 = vld [vmem:[%s3578_s0 + $0xa0] sm:$0xff]  ;;  %v111_v22 = vld [vmem:[%s3578_s0 + $0xb0] sm:$0xff] }
  0x5c   :  { %v193_v23 = vunpack.c.l.s8.bf16 %v109_v20  ;;  %v195_v25 = vunpack.c.l.s8.bf16 %v111_v22  ;;  %v197_v33 = vunpack.c.h.s8.bf16 %v109_v20  ;;  %v199_v35 = vunpack.c.h.s8.bf16 %v111_v22 }
  0x5d   :  { %1645 = vperm.xlu1 %2467, %v1351_v61   ;;  %1650 = vperm.xlu0 %2466, %v1352_v63   ;;  %v214_v61 = vunpack.c.h.s8.bf16 %v118_v51  ;;  %v122_v63 = vld [vmem:[%s3578_s0 + $0x108] sm:$0xff]  ;;  %v232_v22 = vunpack.c.h.s8.bf16 %v128_v12 }
  0x61   :  { %1655 = vperm.xlu1 %2467, %v1353_v1   ;;  %1660 = vperm.xlu0 %2466, %v1354_v4   ;;  %v220_v4 = vunpack.c.l.s8.bf16 %v124_v0 }
  0x62   :  { %666 = vmatmul.mubr.bf16.gmra.mxu0 %v169_v27  ;;  %955 = vmatmul.mubr.bf16.gmra.mxu1 %v171_v29  ;;  %v1363_v27 = vld [vmem:[%s3579_s3 + $0x1a8] sm:$0xff]  ;;  %v1364_v29 = vld [vmem:[%s3579_s3 + $0x1b0] sm:$0xff] }
  0x63   :  { %673 = vmatprep.mubr.bf16.mxu0 %v174_v30  ;;  %962 = vmatprep.mubr.bf16.mxu1 %v176_v32  ;;  %v1365_v30 = vld [vmem:[%s3579_s3 + $0x1b8] sm:$0xff] }
  0x64   :  { %v116_v32 = vld [vmem:[%s3578_s0 + $0xd8] sm:$0xff] }
  0x65   :  { %1665 = vperm.xlu1 %2467, %v1355_v7   ;;  %1670 = vperm.xlu0 %2466, %v1356_v9   ;;  %v204_v38 = vunpack.c.l.s8.bf16 %v116_v32  ;;  %v208_v48 = vunpack.c.h.s8.bf16 %v116_v32  ;;  %v222_v9 = vunpack.c.h.s8.bf16 %v122_v63 }
  0x69   :  { %1675 = vperm.xlu1 %2467, %v1357_v10   ;;  %1680 = vperm.xlu0 %2466, %v1358_v14   ;;  %v224_v10 = vunpack.c.h.s8.bf16 %v124_v0  ;;  %v3020_v0 = vld [vmem:[%s3578_s0 + $0x1a8] sm:$0xff] }
  0x6a   :  { %674 = vmatmul.mubr.bf16.gmra.mxu0 %v173_v37  ;;  %963 = vmatmul.mubr.bf16.gmra.mxu1 %v175_v39  ;;  %v1367_v37 = vld [vmem:[%s3579_s3 + $0x1c8] sm:$0xff]  ;;  %v1368_v39 = vld [vmem:[%s3579_s3 + $0x1d0] sm:$0xff] }
  0x6b   :  { %681 = vmatprep.mubr.bf16.mxu0 %v178_v40  ;;  %970 = vmatprep.mubr.bf16.mxu1 %v180_v42  ;;  %v113_v40 = vld [vmem:[%s3578_s0 + $0xc0] sm:$0xff]  ;;  %v115_v42 = vld [vmem:[%s3578_s0 + $0xd0] sm:$0xff] }
  0x6c   :  { %v201_v43 = vunpack.c.l.s8.bf16 %v113_v40  ;;  %v203_v45 = vunpack.c.l.s8.bf16 %v115_v42  ;;  %v205_v53 = vunpack.c.h.s8.bf16 %v113_v40  ;;  %v207_v54 = vunpack.c.h.s8.bf16 %v115_v42  ;;  %v135_v42 = vld [vmem:[%s3578_s0 + $0x170] sm:$0xff] }
  0x6d   :  { %1685 = vperm.xlu1 %2467, %v1359_v17   ;;  %1690 = vperm.xlu0 %2466, %v1360_v19   ;;  %v125_v17 = vld [vmem:[%s3578_s0 + $0x120] sm:$0xff] }
  0x6e   :  { %v225_v19 = vunpack.c.l.s8.bf16 %v125_v17 }
  0x71   :  { %1695 = vperm.xlu1 %2467, %v1361_v21   ;;  %1700 = vperm.xlu0 %2466, %v1362_v24   ;;  %v230_v21 = vunpack.c.h.s8.bf16 %v126_v11  ;;  %v132_v24 = vld [vmem:[%s3578_s0 + $0x158] sm:$0xff] }
  0x72   :  { %682 = vmatmul.mubr.bf16.gmra.mxu0 %v177_v47  ;;  %971 = vmatmul.mubr.bf16.gmra.mxu1 %v179_v49  ;;  %v1371_v47 = vld [vmem:[%s3579_s3 + $0x1e8] sm:$0xff]  ;;  %v1372_v49 = vld [vmem:[%s3579_s3 + $0x1f0] sm:$0xff] }
  0x73   :  { %689 = vmatprep.mubr.bf16.mxu0 %v182_v50  ;;  %978 = vmatprep.mubr.bf16.mxu1 %v184_v52  ;;  %v1373_v50 = vld [vmem:[%s3579_s3 + $0x1f8] sm:$0xff] }
  0x74   :  { %v120_v52 = vld [vmem:[%s3578_s0 + $0xf8] sm:$0xff] }
  0x75   :  { %1705 = vperm.xlu1 %2467, %v1363_v27   ;;  %1710 = vperm.xlu0 %2466, %v1364_v29   ;;  %v212_v56 = vunpack.c.l.s8.bf16 %v120_v52  ;;  %v129_v29 = vld [vmem:[%s3578_s0 + $0x140] sm:$0xff] }
  0x76   :  { %v233_v31 = vunpack.c.l.s8.bf16 %v129_v29 }
  0x79   :  { %1715 = vperm.xlu1 %2467, %v1365_v30   ;;  %1720 = vperm.xlu0 %2466, %v1366_v34   ;;  %v131_v30 = vld [vmem:[%s3578_s0 + $0x150] sm:$0xff]  ;;  %v240_v34 = vunpack.c.h.s8.bf16 %v132_v24 }
  0x7a   :  { %690 = vmatmul.mubr.bf16.gmra.mxu0 %v181_v57  ;;  %979 = vmatmul.mubr.bf16.gmra.mxu1 %v183_v59  ;;  %v117_v57 = vld [vmem:[%s3578_s0 + $0xe0] sm:$0xff]  ;;  %v235_v32 = vunpack.c.l.s8.bf16 %v131_v30 }
  0x7b   :  { %697 = vmatprep.mubr.bf16.mxu0 %v186_v60  ;;  %986 = vmatprep.mubr.bf16.mxu1 %v188_v62  ;;  %v209_v59 = vunpack.c.l.s8.bf16 %v117_v57  ;;  %v211_v60 = vunpack.c.l.s8.bf16 %v119_v58  ;;  %v216_v62 = vunpack.c.h.s8.bf16 %v120_v52  ;;  %v213_v1 = vunpack.c.h.s8.bf16 %v117_v57 }
  0x7d   :  { %1725 = vperm.xlu1 %2467, %v1367_v37   ;;  %1730 = vperm.xlu0 %2466, %v1368_v39   ;;  %v237_v37 = vunpack.c.h.s8.bf16 %v129_v29  ;;  %v2434_v29 = vld [vmem:[%s3580_s4 + $0x8] sm:$0xff]  }
  0x81   :  { %1735 = vperm.xlu1 %2467, %v1369_v41   ;;  %1740 = vperm.xlu0 %2466, %v1370_v44   ;;  %v133_v41 = vld [vmem:[%s3578_s0 + $0x160] sm:$0xff]  ;;  %v243_v44 = vunpack.c.l.s8.bf16 %v135_v42 }
  0x82   :  { %698 = vmatmul.mubr.bf16.gmra.mxu0 %v185_v3  ;;  %987 = vmatmul.mubr.bf16.gmra.mxu1 %v187_v5  ;;  %v218_v3 = vunpack.c.l.s8.bf16 %v122_v63  ;;  %v121_v5 = vld [vmem:[%s3578_s0 + $0x100] sm:$0xff] }
  0x83   :  { %705 = vmatprep.mubr.bf16.mxu0 %v190_v6  ;;  %994 = vmatprep.mubr.bf16.mxu1 %v192_v8  ;;  %v123_v6 = vld [vmem:[%s3578_s0 + $0x110] sm:$0xff]  ;;  %v217_v7 = vunpack.c.l.s8.bf16 %v121_v5 }
  0x84   :  { %v219_v8 = vunpack.c.l.s8.bf16 %v123_v6  ;;  %v223_v14 = vunpack.c.h.s8.bf16 %v123_v6 }
  0x85   :  { %1745 = vperm.xlu1 %2467, %v1371_v47   ;;  %1750 = vperm.xlu0 %2466, %v1372_v49   ;;  %v138_v47 = vld [vmem:[%s3578_s0 + $0x188] sm:$0xff]  ;;  %v245_v49 = vunpack.c.h.s8.bf16 %v133_v41 }
  0x86   :  { %v250_v51 = vunpack.c.l.s8.bf16 %v138_v47  ;;  %v254_v57 = vunpack.c.h.s8.bf16 %v138_v47 }
  0x89   :  { %1755 = vperm.xlu1 %2467, %v1373_v50   ;;  %v247_v50 = vunpack.c.h.s8.bf16 %v135_v42 }
  0x8a   :  { %706 = vmatmul.mubr.bf16.gmra.mxu0 %v189_v13  ;;  %995 = vmatmul.mubr.bf16.gmra.mxu1 %v191_v15  ;;  %v221_v13 = vunpack.c.h.s8.bf16 %v121_v5  ;;  %v226_v15 = vunpack.c.l.s8.bf16 %v126_v11  ;;  %v258_v11 = vunpack.c.l.s8.bf16 %v3020_v0 }
  0x8b   :  { %713 = vmatprep.mubr.bf16.mxu0 %v194_v16  ;;  %1002 = vmatprep.mubr.bf16.mxu1 %v196_v18  ;;  %v228_v16 = vunpack.c.l.s8.bf16 %v128_v12  ;;  %v127_v18 = vld [vmem:[%s3578_s0 + $0x130] sm:$0xff] }
  0x8c   :  { %v227_v20 = vunpack.c.l.s8.bf16 %v127_v18 }
  0x92   :  { %714 = vmatmul.mubr.bf16.gmra.mxu0 %v193_v23  ;;  %1003 = vmatmul.mubr.bf16.gmra.mxu1 %v195_v25  ;;  %v130_v23 = vld [vmem:[%s3578_s0 + $0x148] sm:$0xff]  ;;  %v229_v25 = vunpack.c.h.s8.bf16 %v125_v17 }
  0x93   :  { %721 = vmatprep.mubr.bf16.mxu0 %v198_v26  ;;  %1010 = vmatprep.mubr.bf16.mxu1 %v200_v28  ;;  %v231_v26 = vunpack.c.h.s8.bf16 %v127_v18  ;;  %v234_v27 = vunpack.c.l.s8.bf16 %v130_v23  ;;  %v236_v28 = vunpack.c.l.s8.bf16 %v132_v24  ;;  %v1823_v17 = vld [vmem:[%s3581_s2 + $0x8] sm:$0xff]  ;;  %v3041_v24 = vld [vmem:[%s3578_s0 + $0x1a0] sm:$0xff] }
  0x9a   :  { %722 = vmatmul.mubr.bf16.gmra.mxu0 %v197_v33  ;;  %1011 = vmatmul.mubr.bf16.gmra.mxu1 %v199_v35  ;;  %v238_v33 = vunpack.c.h.s8.bf16 %v130_v23  ;;  %v134_v35 = vld [vmem:[%s3578_s0 + $0x168] sm:$0xff] }
  0x9b   :  { %729 = vmatprep.mubr.bf16.mxu0 %v202_v36  ;;  %1018 = vmatprep.mubr.bf16.mxu1 %v204_v38  ;;  %v136_v36 = vld [vmem:[%s3578_s0 + $0x178] sm:$0xff]  ;;  %v239_v38 = vunpack.c.h.s8.bf16 %v131_v30  ;;  %v242_v39 = vunpack.c.l.s8.bf16 %v134_v35 }
  0x9c   :  { %v244_v40 = vunpack.c.l.s8.bf16 %v136_v36 }
  0xa2   :  { %730 = vmatmul.mubr.bf16.gmra.mxu0 %v201_v43  ;;  %1019 = vmatmul.mubr.bf16.gmra.mxu1 %v203_v45  ;;  %v241_v43 = vunpack.c.l.s8.bf16 %v133_v41  ;;  %v246_v45 = vunpack.c.h.s8.bf16 %v134_v35  ;;  %v262_v41 = vunpack.c.h.s8.bf16 %v3020_v0  ;;  %v3081_v0 = vld [vmem:[%s3578_s0 + $0x1d8] sm:$0xff] }
  0xa3   :  { %737 = vmatprep.mubr.bf16.mxu0 %v206_v46  ;;  %1026 = vmatprep.mubr.bf16.mxu1 %v208_v48  ;;  %v248_v46 = vunpack.c.h.s8.bf16 %v136_v36  ;;  %v140_v48 = vld [vmem:[%s3578_s0 + $0x198] sm:$0xff] }
  0xa4   :  { %v252_v52 = vunpack.c.l.s8.bf16 %v140_v48  ;;  %v256_v58 = vunpack.c.h.s8.bf16 %v140_v48  ;;  %v1825_v48 = vld [vmem:[%s3581_s2 + $0x18] sm:$0xff] }
  0xaa   :  { %738 = vmatmul.mubr.bf16.gmra.mxu0 %v205_v53  ;;  %1027 = vmatmul.mubr.bf16.gmra.mxu1 %v207_v54  ;;  %v137_v53 = vld [vmem:[%s3578_s0 + $0x180] sm:$0xff]  ;;  %v139_v54 = vld [vmem:[%s3578_s0 + $0x190] sm:$0xff] }
  0xab   :  { %745 = vmatprep.mubr.bf16.mxu0 %v210_v55  ;;  %1034 = vmatprep.mubr.bf16.mxu1 %v212_v56  ;;  %v249_v55 = vunpack.c.l.s8.bf16 %v137_v53  ;;  %v251_v56 = vunpack.c.l.s8.bf16 %v139_v54 }
  0xb2   :  { %746 = vmatmul.mubr.bf16.gmra.mxu0 %v209_v59  ;;  %1035 = vmatmul.mubr.bf16.gmra.mxu1 %v211_v60  ;;  %v1441_v59 = vpop.permute.xlu0 %1440 }
  0xb3   :  { %753 = vmatprep.mubr.bf16.mxu0 %v214_v61  ;;  %1042 = vmatprep.mubr.bf16.mxu1 %v216_v62 }
  0xba   :  { %754 = vmatmul.mubr.bf16.gmra.mxu0 %v213_v1  ;;  %1043 = vmatmul.mubr.bf16.gmra.mxu1 %v215_v2  ;;  %v2307_v1 = vld [vmem:[%s3580_s4] sm:$0xff]  }
  0xbb   :  { %761 = vmatprep.mubr.bf16.mxu0 %v218_v3  ;;  %1050 = vmatprep.mubr.bf16.mxu1 %v220_v4  ;;  %v1822_v2 = vld [vmem:[%s3581_s2] sm:$0xff]  ;;  %v3031_v4 = vld [vmem:[%s3578_s0 + $0x1b8] sm:$0xff]  ;;  %v2308_v12 = vunpack.c.l.bf16 %v2307_v1 }
  0xc2   :  { %762 = vmatmul.mubr.bf16.gmra.mxu0 %v217_v7  ;;  %1051 = vmatmul.mubr.bf16.gmra.mxu1 %v219_v8  ;;  %v253_v7 = vunpack.c.h.s8.bf16 %v137_v53 }
  0xc3   :  { %769 = vmatprep.mubr.bf16.mxu0 %v222_v9  ;;  %1058 = vmatprep.mubr.bf16.mxu1 %v224_v10  ;;  %v1446_v9 = vpop.permute.xlu0 %1445  ;;  %v255_v10 = vunpack.c.h.s8.bf16 %v139_v54 }
  0xca   :  { %770 = vmatmul.mubr.bf16.gmra.mxu0 %v221_v13  ;;  %1059 = vmatmul.mubr.bf16.gmra.mxu1 %v223_v14 }
  0xcb   :  { %777 = vmatprep.mubr.bf16.mxu0 %v226_v15  ;;  %1066 = vmatprep.mubr.bf16.mxu1 %v228_v16  ;;  %v260_v16 = vunpack.c.l.s8.bf16 %v3031_v4 }
  0xd2   :  { %778 = vmatmul.mubr.bf16.gmra.mxu0 %v225_v19  ;;  %1067 = vmatmul.mubr.bf16.gmra.mxu1 %v227_v20 }
  0xd3   :  { %785 = vmatprep.mubr.bf16.mxu0 %v230_v21  ;;  %1074 = vmatprep.mubr.bf16.mxu1 %v232_v22  ;;  %v1451_v22 = vpop.permute.xlu1 %1450 }
  0xd7   :  { %v1456_v47 = vpop.permute.xlu1 %1455 }
  0xda   :  { %786 = vmatmul.mubr.bf16.gmra.mxu0 %v229_v25  ;;  %1075 = vmatmul.mubr.bf16.gmra.mxu1 %v231_v26  ;;  %v2309_v26 = vunpack.c.h.bf16 %v2307_v1 }
  0xdb   :  { %793 = vmatprep.mubr.bf16.mxu0 %v234_v27  ;;  %1082 = vmatprep.mubr.bf16.mxu1 %v236_v28 }
  0xe2   :  { %794 = vmatmul.mubr.bf16.gmra.mxu0 %v233_v31  ;;  %1083 = vmatmul.mubr.bf16.gmra.mxu1 %v235_v32  ;;  %v3049_v31 = vld [vmem:[%s3578_s0 + $0x1b0] sm:$0xff] }
  0xe3   :  { %801 = vmatprep.mubr.bf16.mxu0 %v238_v33  ;;  %1090 = vmatprep.mubr.bf16.mxu1 %v240_v34  ;;  %v1824_v32 = vld [vmem:[%s3581_s2 + $0x10] sm:$0xff] }
  0xea   :  { %802 = vmatmul.mubr.bf16.gmra.mxu0 %v237_v37  ;;  %1091 = vmatmul.mubr.bf16.gmra.mxu1 %v239_v38  ;;  %v257_v37 = vunpack.c.l.s8.bf16 %v3041_v24  ;;  %v2312_v38 = vunpack.c.l.bf16 %v2434_v29 }
  0xeb   :  { %809 = vmatprep.mubr.bf16.mxu0 %v242_v39  ;;  %1098 = vmatprep.mubr.bf16.mxu1 %v244_v40  ;;  %v259_v40 = vunpack.c.l.s8.bf16 %v3049_v31 }
  0xf2   :  { %810 = vmatmul.mubr.bf16.gmra.mxu0 %v241_v43  ;;  %1099 = vmatmul.mubr.bf16.gmra.mxu1 %v243_v44 }
  0xf3   :  { %817 = vmatprep.mubr.bf16.mxu0 %v246_v45  ;;  %1106 = vmatprep.mubr.bf16.mxu1 %v248_v46  ;;  %v264_v46 = vunpack.c.h.s8.bf16 %v3031_v4  ;;  %v261_v4 = vunpack.c.h.s8.bf16 %v3041_v24 }
  0xfa   :  { %818 = vmatmul.mubr.bf16.gmra.mxu0 %v245_v49  ;;  %1107 = vmatmul.mubr.bf16.gmra.mxu1 %v247_v50 }
  0xfb   :  { %825 = vmatprep.mubr.bf16.mxu0 %v250_v51  ;;  %1114 = vmatprep.mubr.bf16.mxu1 %v252_v52 }
 0x102   :  { %v635_v60 = vpop.f32.mrf.mxu0  ;;  %826 = vmatmul.mubr.bf16.gmra.mxu0 %v249_v55  ;;  %v924_v61 = vpop.f32.mrf.mxu1  ;;  %1115 = vmatmul.mubr.bf16.gmra.mxu1 %v251_v56  ;;  %v2313_v56 = vunpack.c.h.bf16 %v2434_v29 }
 0x103   :  { %833 = vmatprep.mubr.bf16.mxu0 %v254_v57  ;;  %v925_v62 = vadd.f32 %v924_v61, %v635_v60  ;;  %1122 = vmatprep.mubr.bf16.mxu1 %v256_v58  ;;  %v2435_v58 = vld [vmem:[%s3580_s4 + $0x10] sm:$0xff]   ;;  %v3073_v60 = vld [vmem:[%s3578_s0 + $0x1c8] sm:$0xff]  ;;  %v1461_v61 = vpop.permute.xlu0 %1460 }
 0x104   :  { %v637_v63 = vpop.f32.mrf.mxu0  ;;  %v926_v3 = vpop.f32.mrf.mxu1  ;;  %v2317_v24 = vunpack.c.h.bf16 %v2435_v58 }
 0x105   :  { %v1758_v5 = vmul.f32 %v1441_v59, %v925_v62  ;;  %v1826_v62 = vld [vmem:[%s3581_s2 + $0x20] sm:$0xff] }
 0x106   :  { %v638_v6 = vpop.f32.mrf.mxu0  ;;  %v927_v8 = vpop.f32.mrf.mxu1 }
 0x107   :  { %v1886_v13 = vadd.f32 %v1822_v2, %v1758_v5  ;;  %v928_v14 = vadd.f32 %v927_v8, %v638_v6  ;;  %v2316_v5 = vunpack.c.l.bf16 %v2435_v58  ;;  %v266_v8 = vunpack.c.l.s8.bf16 %v3073_v60  ;;  %v1471_v29 = vpop.permute.xlu0 %1470  ;;  %v3131_v58 = vld [vmem:[%s3578_s0 + $0x1e8] sm:$0xff] }
 0x108   :  { %v640_v15 = vpop.f32.mrf.mxu0  ;;  %v929_v18 = vpop.f32.mrf.mxu1 }
 0x109   :  { %v1950_v19 = vmax.f32 %v1886_v13, 0.0  ;;  %v1759_v20 = vmul.f32 %v1446_v9, %v928_v14  ;;  %v268_v13 = vunpack.c.l.s8.bf16 %v3081_v0  ;;  %v1466_v14 = vpop.permute.xlu1 %1465  ;;  %v1827_v15 = vld [vmem:[%s3581_s2 + $0x28] sm:$0xff] }
 0x10a   :  { %v643_v21 = vpop.f32.mrf.mxu0  ;;  %834 = vmatmul.mubr.bf16.gmra.mxu0 %v253_v7  ;;  %v932_v23 = vpop.f32.mrf.mxu1  ;;  %1123 = vmatmul.mubr.bf16.gmra.mxu1 %v255_v10  ;;  %v263_v7 = vunpack.c.h.s8.bf16 %v3049_v31 }
 0x10b   :  { %841 = vmatprep.mubr.bf16.mxu0 %v258_v11  ;;  %v2142_v25 = vmul.f32 %v2308_v12, %v1950_v19  ;;  %v1887_v27 = vadd.f32 %v1823_v17, %v1759_v20  ;;  %v933_v28 = vadd.f32 %v932_v23, %v643_v21  ;;  %1130 = vmatprep.mubr.bf16.mxu1 %v260_v16  ;;  %v3099_v21 = vld [vmem:[%s3578_s0 + $0x1c0] sm:$0xff] }
 0x10c   :  { %v645_v30 = vpop.f32.mrf.mxu0  ;;  %v934_v33 = vpop.f32.mrf.mxu1 }
 0x10d   :  { %2206 = vst [vmem:[%s3582_s5] sm:$0xff] %v2142_v25  ;;  %v1951_v34 = vmax.f32 %v1887_v27, 0.0  ;;  %v1760_v35 = vmul.f32 %v1451_v22, %v933_v28  ;;  %v3107_v28 = vld [vmem:[%s3578_s0 + $0x1d0] sm:$0xff] }
 0x10e   :  { %v646_v36 = vpop.f32.mrf.mxu0  ;;  %v935_v39 = vpop.f32.mrf.mxu1  ;;  %v1828_v30 = vld [vmem:[%s3581_s2 + $0x30] sm:$0xff] }
 0x10f   :  { %v2143_v42 = vmul.f32 %v2309_v26, %v1951_v34  ;;  %v1888_v43 = vadd.f32 %v1824_v32, %v1760_v35  ;;  %v936_v44 = vadd.f32 %v935_v39, %v646_v36  ;;  %v2436_v26 = vld [vmem:[%s3580_s4 + $0x18] sm:$0xff]   ;;  %v265_v35 = vunpack.c.l.s8.bf16 %v3099_v21 }
 0x110   :  { %v648_v45 = vpop.f32.mrf.mxu0  ;;  %v937_v49 = vpop.f32.mrf.mxu1  ;;  %v2320_v36 = vunpack.c.l.bf16 %v2436_v26  ;;  %v270_v39 = vunpack.c.h.s8.bf16 %v3073_v60  ;;  %v1830_v60 = vld [vmem:[%s3581_s2 + $0x40] sm:$0xff] }
 0x111   :  { %2207 = vst [vmem:[%s3582_s5 + $0x8] sm:$0xff] %v2143_v42  ;;  %v1952_v50 = vmax.f32 %v1888_v43, 0.0  ;;  %v1761_v51 = vmul.f32 %v1456_v47, %v936_v44  ;;  %v272_v44 = vunpack.c.h.s8.bf16 %v3081_v0  ;;  %v1476_v45 = vpop.permute.xlu1 %1475 }
 0x112   :  { %v651_v52 = vpop.f32.mrf.mxu0  ;;  %842 = vmatmul.mubr.bf16.gmra.mxu0 %v257_v37  ;;  %v940_v53 = vpop.f32.mrf.mxu1  ;;  %1131 = vmatmul.mubr.bf16.gmra.mxu1 %v259_v40 }
 0x113   :  { %849 = vmatprep.mubr.bf16.mxu0 %v262_v41  ;;  %v2144_v54 = vmul.f32 %v2312_v38, %v1952_v50  ;;  %v1889_v55 = vadd.f32 %v1825_v48, %v1761_v51  ;;  %v941_v57 = vadd.f32 %v940_v53, %v651_v52  ;;  %1138 = vmatprep.mubr.bf16.mxu1 %v264_v46  ;;  %v267_v38 = vunpack.c.l.s8.bf16 %v3107_v28  ;;  %v1829_v46 = vld [vmem:[%s3581_s2 + $0x38] sm:$0xff] }
 0x114   :  { %v653_v59 = vpop.f32.mrf.mxu0  ;;  %v942_v63 = vpop.f32.mrf.mxu1 }
 0x115   :  { %2208 = vst [vmem:[%s3582_s5 + $0x10] sm:$0xff] %v2144_v54  ;;  %v1953_v1 = vmax.f32 %v1889_v55, 0.0  ;;  %v1762_v2 = vmul.f32 %v1461_v61, %v941_v57  ;;  %v2321_v54 = vunpack.c.h.bf16 %v2436_v26  ;;  %v1481_v59 = vpop.permute.xlu0 %1480  ;;  %v151_v26 = vld [vmem:[%s3578_s0 + $0x1f0] sm:$0xff] }
 0x116   :  { %v654_v3 = vpop.f32.mrf.mxu0  ;;  %v943_v6 = vpop.f32.mrf.mxu1 }
 0x117   :  { %v2145_v9 = vmul.f32 %v2313_v56, %v1953_v1  ;;  %v1890_v10 = vadd.f32 %v1826_v62, %v1762_v2  ;;  %v944_v11 = vadd.f32 %v943_v6, %v654_v3  ;;  %v2437_v56 = vld [vmem:[%s3580_s4 + $0x20] sm:$0xff]   ;;  %v3139_v62 = vld [vmem:[%s3578_s0 + $0x1f8] sm:$0xff]  ;;  %v269_v2 = vunpack.c.h.s8.bf16 %v3099_v21 }
 0x118   :  { %v656_v12 = vpop.f32.mrf.mxu0  ;;  %v945_v16 = vpop.f32.mrf.mxu1  ;;  %v2324_v3 = vunpack.c.l.bf16 %v2437_v56  ;;  %v274_v6 = vunpack.c.l.s8.bf16 %v3131_v58 }
 0x119   :  { %2209 = vst [vmem:[%s3582_s5 + $0x18] sm:$0xff] %v2145_v9  ;;  %v1954_v17 = vmax.f32 %v1890_v10, 0.0  ;;  %v1763_v18 = vmul.f32 %v1466_v14, %v944_v11  ;;  %v276_v11 = vunpack.c.l.s8.bf16 %v3139_v62  ;;  %v1486_v12 = vpop.permute.xlu1 %1485 }
 0x11a   :  { %v659_v19 = vpop.f32.mrf.mxu0  ;;  %850 = vmatmul.mubr.bf16.gmra.mxu0 %v261_v4  ;;  %v948_v20 = vpop.f32.mrf.mxu1  ;;  %1139 = vmatmul.mubr.bf16.gmra.mxu1 %v263_v7 }
 0x11b   :  { %857 = vmatprep.mubr.bf16.mxu0 %v266_v8  ;;  %v2146_v22 = vmul.f32 %v2316_v5, %v1954_v17  ;;  %v1891_v23 = vadd.f32 %v1827_v15, %v1763_v18  ;;  %v949_v25 = vadd.f32 %v948_v20, %v659_v19  ;;  %1146 = vmatprep.mubr.bf16.mxu1 %v268_v13  ;;  %v271_v5 = vunpack.c.h.s8.bf16 %v3107_v28  ;;  %v1831_v13 = vld [vmem:[%s3581_s2 + $0x48] sm:$0xff]  ;;  %v3157_v19 = vld [vmem:[%s3578_s0 + $0x1e0] sm:$0xff]  ;;  %v1832_v28 = vld [vmem:[%s3581_s2 + $0x50] sm:$0xff] }
 0x11c   :  { %v661_v27 = vpop.f32.mrf.mxu0  ;;  %v950_v31 = vpop.f32.mrf.mxu1 }
 0x11d   :  { %2210 = vst [vmem:[%s3582_s5 + $0x20] sm:$0xff] %v2146_v22  ;;  %v1955_v32 = vmax.f32 %v1891_v23, 0.0  ;;  %v1764_v33 = vmul.f32 %v1471_v29, %v949_v25  ;;  %v2325_v22 = vunpack.c.h.bf16 %v2437_v56  ;;  %v1491_v27 = vpop.permute.xlu0 %1490  ;;  %v1834_v56 = vld [vmem:[%s3581_s2 + $0x60] sm:$0xff] }
 0x11e   :  { %v662_v34 = vpop.f32.mrf.mxu0  ;;  %v951_v37 = vpop.f32.mrf.mxu1 }
 0x11f   :  { %v2147_v40 = vmul.f32 %v2317_v24, %v1955_v32  ;;  %v1892_v41 = vadd.f32 %v1828_v30, %v1764_v33  ;;  %v952_v42 = vadd.f32 %v951_v37, %v662_v34  ;;  %v2438_v24 = vld [vmem:[%s3580_s4 + $0x28] sm:$0xff]   ;;  %v273_v33 = vunpack.c.l.s8.bf16 %v3157_v19 }
 0x120   :  { %v664_v43 = vpop.f32.mrf.mxu0  ;;  %v953_v47 = vpop.f32.mrf.mxu1  ;;  %v2328_v34 = vunpack.c.l.bf16 %v2438_v24  ;;  %v278_v37 = vunpack.c.h.s8.bf16 %v3131_v58 }
 0x121   :  { %2211 = vst [vmem:[%s3582_s5 + $0x28] sm:$0xff] %v2147_v40  ;;  %v1956_v48 = vmax.f32 %v1892_v41, 0.0  ;;  %v1765_v49 = vmul.f32 %v1476_v45, %v952_v42  ;;  %v280_v42 = vunpack.c.h.s8.bf16 %v3139_v62  ;;  %v1496_v43 = vpop.permute.xlu1 %1495  ;;  %v277_v62 = vunpack.c.h.s8.bf16 %v3157_v19  ;;  %v1836_v19 = vld [vmem:[%s3581_s2 + $0x70] sm:$0xff] }
 0x122   :  { %v667_v50 = vpop.f32.mrf.mxu0  ;;  %858 = vmatmul.mubr.bf16.gmra.mxu0 %v265_v35  ;;  %v956_v51 = vpop.f32.mrf.mxu1  ;;  %1147 = vmatmul.mubr.bf16.gmra.mxu1 %v267_v38 }
 0x123   :  { %865 = vmatprep.mubr.bf16.mxu0 %v270_v39  ;;  %v2148_v52 = vmul.f32 %v2320_v36, %v1956_v48  ;;  %v1893_v53 = vadd.f32 %v1829_v46, %v1765_v49  ;;  %v957_v55 = vadd.f32 %v956_v51, %v667_v50  ;;  %1154 = vmatprep.mubr.bf16.mxu1 %v272_v44  ;;  %v275_v36 = vunpack.c.l.s8.bf16 %v151_v26  ;;  %v1833_v44 = vld [vmem:[%s3581_s2 + $0x58] sm:$0xff] }
 0x124   :  { %v669_v57 = vpop.f32.mrf.mxu0  ;;  %v958_v61 = vpop.f32.mrf.mxu1 }
 0x125   :  { %2212 = vst [vmem:[%s3582_s5 + $0x30] sm:$0xff] %v2148_v52  ;;  %v1957_v63 = vmax.f32 %v1893_v53, 0.0  ;;  %v1766_v0 = vmul.f32 %v1481_v59, %v957_v55  ;;  %v2329_v52 = vunpack.c.h.bf16 %v2438_v24  ;;  %v1501_v55 = vpop.permute.xlu0 %1500  ;;  %v2439_v57 = vld [vmem:[%s3580_s4 + $0x30] sm:$0xff]  }
 0x126   :  { %v670_v1 = vpop.f32.mrf.mxu0  ;;  %v959_v4 = vpop.f32.mrf.mxu1 }
 0x127   :  { %v2149_v7 = vmul.f32 %v2321_v54, %v1957_v63  ;;  %v1894_v8 = vadd.f32 %v1830_v60, %v1766_v0  ;;  %v960_v9 = vadd.f32 %v959_v4, %v670_v1  ;;  %v279_v0 = vunpack.c.h.s8.bf16 %v151_v26 }
 0x128   :  { %v672_v10 = vpop.f32.mrf.mxu0  ;;  %v961_v14 = vpop.f32.mrf.mxu1 }
 0x129   :  { %2213 = vst [vmem:[%s3582_s5 + $0x38] sm:$0xff] %v2149_v7  ;;  %v1958_v15 = vmax.f32 %v1894_v8, 0.0  ;;  %v1767_v16 = vmul.f32 %v1486_v12, %v960_v9  ;;  %v1835_v7 = vld [vmem:[%s3581_s2 + $0x68] sm:$0xff] }
 0x12a   :  { %v675_v17 = vpop.f32.mrf.mxu0  ;;  %866 = vmatmul.mubr.bf16.gmra.mxu0 %v269_v2  ;;  %v964_v18 = vpop.f32.mrf.mxu1  ;;  %1155 = vmatmul.mubr.bf16.gmra.mxu1 %v271_v5 }
 0x12b   :  { %873 = vmatprep.mubr.bf16.mxu0 %v274_v6  ;;  %v2150_v20 = vmul.f32 %v2324_v3, %v1958_v15  ;;  %v1895_v21 = vadd.f32 %v1831_v13, %v1767_v16  ;;  %v965_v23 = vadd.f32 %v964_v18, %v675_v17  ;;  %1162 = vmatprep.mubr.bf16.mxu1 %v276_v11  ;;  %v2332_v3 = vunpack.c.l.bf16 %v2439_v57  ;;  %v1506_v6 = vpop.permute.xlu1 %1505  ;;  %v1511_v18 = vpop.permute.xlu0 %1510 }
 0x12c   :  { %v677_v25 = vpop.f32.mrf.mxu0  ;;  %v966_v29 = vpop.f32.mrf.mxu1  ;;  %v2333_v15 = vunpack.c.h.bf16 %v2439_v57  ;;  %v1839_v57 = vld [vmem:[%s3581_s2 + $0x88] sm:$0xff] }
 0x12d   :  { %2214 = vst [vmem:[%s3582_s5 + $0x40] sm:$0xff] %v2150_v20  ;;  %v1959_v30 = vmax.f32 %v1895_v21, 0.0  ;;  %v1768_v31 = vmul.f32 %v1491_v27, %v965_v23  ;;  %v2440_v20 = vld [vmem:[%s3580_s4 + $0x38] sm:$0xff]  }
 0x12e   :  { %v678_v32 = vpop.f32.mrf.mxu0  ;;  %v967_v35 = vpop.f32.mrf.mxu1 }
 0x12f   :  { %v2151_v38 = vmul.f32 %v2325_v22, %v1959_v30  ;;  %v1896_v39 = vadd.f32 %v1832_v28, %v1768_v31  ;;  %v968_v40 = vadd.f32 %v967_v35, %v678_v32  ;;  %v2336_v28 = vunpack.c.l.bf16 %v2440_v20  ;;  %v1516_v31 = vpop.permute.xlu1 %1515  ;;  %v1837_v32 = vld [vmem:[%s3581_s2 + $0x78] sm:$0xff] }
 0x130   :  { %v680_v41 = vpop.f32.mrf.mxu0  ;;  %v969_v45 = vpop.f32.mrf.mxu1 }
 0x131   :  { %2215 = vst [vmem:[%s3582_s5 + $0x48] sm:$0xff] %v2151_v38  ;;  %v1960_v46 = vmax.f32 %v1896_v39, 0.0  ;;  %v1769_v47 = vmul.f32 %v1496_v43, %v968_v40  ;;  %v2337_v40 = vunpack.c.h.bf16 %v2440_v20  ;;  %v1521_v43 = vpop.permute.xlu0 %1520  ;;  %v2441_v45 = vld [vmem:[%s3580_s4 + $0x40] sm:$0xff]  }
 0x132   :  { %v683_v48 = vpop.f32.mrf.mxu0  ;;  %874 = vmatmul.mubr.bf16.gmra.mxu0 %v273_v33  ;;  %v972_v49 = vpop.f32.mrf.mxu1  ;;  %1163 = vmatmul.mubr.bf16.gmra.mxu1 %v275_v36 }
 0x133   :  { %881 = vmatprep.mubr.bf16.mxu0 %v278_v37  ;;  %v2152_v50 = vmul.f32 %v2328_v34, %v1960_v46  ;;  %v1897_v51 = vadd.f32 %v1833_v44, %v1769_v47  ;;  %v973_v53 = vadd.f32 %v972_v49, %v683_v48  ;;  %1170 = vmatprep.mubr.bf16.mxu1 %v280_v42  ;;  %v1838_v44 = vld [vmem:[%s3581_s2 + $0x80] sm:$0xff] }
 0x134   :  { %v685_v54 = vpop.f32.mrf.mxu0  ;;  %v974_v58 = vpop.f32.mrf.mxu1 }
 0x135   :  { %2216 = vst [vmem:[%s3582_s5 + $0x50] sm:$0xff] %v2152_v50  ;;  %v1961_v59 = vmax.f32 %v1897_v51, 0.0  ;;  %v1770_v60 = vmul.f32 %v1501_v55, %v973_v53  ;;  %v2340_v53 = vunpack.c.l.bf16 %v2441_v45 }
 0x136   :  { %v686_v61 = vpop.f32.mrf.mxu0  ;;  %v975_v63 = vpop.f32.mrf.mxu1 }
 0x137   :  { %v2153_v1 = vmul.f32 %v2329_v52, %v1961_v59  ;;  %v1898_v2 = vadd.f32 %v1834_v56, %v1770_v60  ;;  %v976_v4 = vadd.f32 %v975_v63, %v686_v61  ;;  %v1526_v56 = vpop.permute.xlu1 %1525 }
 0x138   :  { %v688_v5 = vpop.f32.mrf.mxu0  ;;  %v977_v8 = vpop.f32.mrf.mxu1 }
 0x139   :  { %2217 = vst [vmem:[%s3582_s5 + $0x58] sm:$0xff] %v2153_v1  ;;  %v1962_v9 = vmax.f32 %v1898_v2, 0.0  ;;  %v1771_v10 = vmul.f32 %v1506_v6, %v976_v4  ;;  %v2341_v1 = vunpack.c.h.bf16 %v2441_v45  ;;  %v1531_v4 = vpop.permute.xlu0 %1530  ;;  %v1840_v5 = vld [vmem:[%s3581_s2 + $0x90] sm:$0xff]  ;;  %v2442_v6 = vld [vmem:[%s3580_s4 + $0x48] sm:$0xff]  }
 0x13a   :  { %v691_v11 = vpop.f32.mrf.mxu0  ;;  %882 = vmatmul.mubr.bf16.gmra.mxu0 %v277_v62  ;;  %v980_v12 = vpop.f32.mrf.mxu1  ;;  %1171 = vmatmul.mubr.bf16.gmra.mxu1 %v279_v0 }
 0x13b   :  { %v2154_v13 = vmul.f32 %v2332_v3, %v1962_v9  ;;  %v1899_v14 = vadd.f32 %v1835_v7, %v1771_v10  ;;  %v981_v16 = vadd.f32 %v980_v12, %v691_v11 }
 0x13c   :  { %v693_v17 = vpop.f32.mrf.mxu0  ;;  %v982_v21 = vpop.f32.mrf.mxu1 }
 0x13d   :  { %2218 = vst [vmem:[%s3582_s5 + $0x60] sm:$0xff] %v2154_v13  ;;  %v1963_v22 = vmax.f32 %v1899_v14, 0.0  ;;  %v1772_v23 = vmul.f32 %v1511_v18, %v981_v16  ;;  %v2344_v14 = vunpack.c.l.bf16 %v2442_v6  ;;  %v1536_v17 = vpop.permute.xlu1 %1535  ;;  %v1841_v18 = vld [vmem:[%s3581_s2 + $0x98] sm:$0xff] }
 0x13e   :  { %v694_v24 = vpop.f32.mrf.mxu0  ;;  %v983_v25 = vpop.f32.mrf.mxu1 }
 0x13f   :  { %v2155_v26 = vmul.f32 %v2333_v15, %v1963_v22  ;;  %v1900_v27 = vadd.f32 %v1836_v19, %v1772_v23  ;;  %v984_v29 = vadd.f32 %v983_v25, %v694_v24 }
 0x140   :  { %v696_v30 = vpop.f32.mrf.mxu0  ;;  %v985_v33 = vpop.f32.mrf.mxu1 }
 0x141   :  { %2219 = vst [vmem:[%s3582_s5 + $0x68] sm:$0xff] %v2155_v26  ;;  %v1964_v34 = vmax.f32 %v1900_v27, 0.0  ;;  %v1773_v35 = vmul.f32 %v1516_v31, %v984_v29  ;;  %v2345_v26 = vunpack.c.h.bf16 %v2442_v6  ;;  %v1541_v29 = vpop.permute.xlu0 %1540  ;;  %v1842_v30 = vld [vmem:[%s3581_s2 + $0xa0] sm:$0xff]  ;;  %v2443_v31 = vld [vmem:[%s3580_s4 + $0x50] sm:$0xff]  }
 0x142   :  { %v699_v36 = vpop.f32.mrf.mxu0  ;;  %v988_v37 = vpop.f32.mrf.mxu1 }
 0x143   :  { %v2156_v38 = vmul.f32 %v2336_v28, %v1964_v34  ;;  %v1901_v39 = vadd.f32 %v1837_v32, %v1773_v35  ;;  %v989_v41 = vadd.f32 %v988_v37, %v699_v36 }
 0x144   :  { %v701_v42 = vpop.f32.mrf.mxu0  ;;  %v990_v46 = vpop.f32.mrf.mxu1 }
 0x145   :  { %2220 = vst [vmem:[%s3582_s5 + $0x70] sm:$0xff] %v2156_v38  ;;  %v1965_v47 = vmax.f32 %v1901_v39, 0.0  ;;  %v1774_v48 = vmul.f32 %v1521_v43, %v989_v41  ;;  %v2348_v39 = vunpack.c.l.bf16 %v2443_v31  ;;  %v1546_v42 = vpop.permute.xlu1 %1545  ;;  %v1843_v43 = vld [vmem:[%s3581_s2 + $0xa8] sm:$0xff] }
 0x146   :  { %v702_v49 = vpop.f32.mrf.mxu0  ;;  %v991_v50 = vpop.f32.mrf.mxu1 }
 0x147   :  { %v2157_v51 = vmul.f32 %v2337_v40, %v1965_v47  ;;  %v1902_v52 = vadd.f32 %v1838_v44, %v1774_v48  ;;  %v992_v54 = vadd.f32 %v991_v50, %v702_v49 }
 0x148   :  { %v704_v55 = vpop.f32.mrf.mxu0  ;;  %v993_v58 = vpop.f32.mrf.mxu1 }
 0x149   :  { %2221 = vst [vmem:[%s3582_s5 + $0x78] sm:$0xff] %v2157_v51  ;;  %v1966_v59 = vmax.f32 %v1902_v52, 0.0  ;;  %v1775_v60 = vmul.f32 %v1526_v56, %v992_v54  ;;  %v2349_v51 = vunpack.c.h.bf16 %v2443_v31  ;;  %v1551_v54 = vpop.permute.xlu0 %1550  ;;  %v1844_v55 = vld [vmem:[%s3581_s2 + $0xb0] sm:$0xff]  ;;  %v2444_v56 = vld [vmem:[%s3580_s4 + $0x58] sm:$0xff]  }
 0x14a   :  { %v707_v61 = vpop.f32.mrf.mxu0  ;;  %v996_v62 = vpop.f32.mrf.mxu1 }
 0x14b   :  { %v2158_v63 = vmul.f32 %v2340_v53, %v1966_v59  ;;  %v1903_v0 = vadd.f32 %v1839_v57, %v1775_v60  ;;  %v997_v2 = vadd.f32 %v996_v62, %v707_v61 }
 0x14c   :  { %v709_v3 = vpop.f32.mrf.mxu0  ;;  %v998_v7 = vpop.f32.mrf.mxu1 }
 0x14d   :  { %2222 = vst [vmem:[%s3582_s5 + $0x80] sm:$0xff] %v2158_v63  ;;  %v1967_v8 = vmax.f32 %v1903_v0, 0.0  ;;  %v1776_v9 = vmul.f32 %v1531_v4, %v997_v2  ;;  %v2352_v0 = vunpack.c.l.bf16 %v2444_v56  ;;  %v1556_v3 = vpop.permute.xlu1 %1555  ;;  %v1845_v4 = vld [vmem:[%s3581_s2 + $0xb8] sm:$0xff] }
 0x14e   :  { %v710_v10 = vpop.f32.mrf.mxu0  ;;  %v999_v11 = vpop.f32.mrf.mxu1 }
 0x14f   :  { %v2159_v12 = vmul.f32 %v2341_v1, %v1967_v8  ;;  %v1904_v13 = vadd.f32 %v1840_v5, %v1776_v9  ;;  %v1000_v15 = vadd.f32 %v999_v11, %v710_v10 }
 0x150   :  { %v712_v16 = vpop.f32.mrf.mxu0  ;;  %v1001_v19 = vpop.f32.mrf.mxu1 }
 0x151   :  { %2223 = vst [vmem:[%s3582_s5 + $0x88] sm:$0xff] %v2159_v12  ;;  %v1968_v20 = vmax.f32 %v1904_v13, 0.0  ;;  %v1777_v21 = vmul.f32 %v1536_v17, %v1000_v15  ;;  %v2353_v12 = vunpack.c.h.bf16 %v2444_v56  ;;  %v1561_v15 = vpop.permute.xlu0 %1560  ;;  %v1846_v16 = vld [vmem:[%s3581_s2 + $0xc0] sm:$0xff] }
 0x152   :  { %v715_v22 = vpop.f32.mrf.mxu0  ;;  %v1004_v23 = vpop.f32.mrf.mxu1  ;;  %v2445_v17 = vld [vmem:[%s3580_s4 + $0x60] sm:$0xff]  }
 0x153   :  { %v2160_v24 = vmul.f32 %v2344_v14, %v1968_v20  ;;  %v1905_v25 = vadd.f32 %v1841_v18, %v1777_v21  ;;  %v1005_v27 = vadd.f32 %v1004_v23, %v715_v22 }
 0x154   :  { %v717_v28 = vpop.f32.mrf.mxu0  ;;  %v1006_v32 = vpop.f32.mrf.mxu1 }
 0x155   :  { %2224 = vst [vmem:[%s3582_s5 + $0x90] sm:$0xff] %v2160_v24  ;;  %v1969_v33 = vmax.f32 %v1905_v25, 0.0  ;;  %v1778_v34 = vmul.f32 %v1541_v29, %v1005_v27  ;;  %v2356_v25 = vunpack.c.l.bf16 %v2445_v17  ;;  %v1566_v28 = vpop.permute.xlu1 %1565  ;;  %v1847_v29 = vld [vmem:[%s3581_s2 + $0xc8] sm:$0xff] }
 0x156   :  { %v718_v35 = vpop.f32.mrf.mxu0  ;;  %v1007_v36 = vpop.f32.mrf.mxu1 }
 0x157   :  { %v2161_v37 = vmul.f32 %v2345_v26, %v1969_v33  ;;  %v1906_v38 = vadd.f32 %v1842_v30, %v1778_v34  ;;  %v1008_v40 = vadd.f32 %v1007_v36, %v718_v35 }
 0x158   :  { %v720_v41 = vpop.f32.mrf.mxu0  ;;  %v1009_v44 = vpop.f32.mrf.mxu1 }
 0x159   :  { %2225 = vst [vmem:[%s3582_s5 + $0x98] sm:$0xff] %v2161_v37  ;;  %v1970_v45 = vmax.f32 %v1906_v38, 0.0  ;;  %v1779_v46 = vmul.f32 %v1546_v42, %v1008_v40  ;;  %v2357_v37 = vunpack.c.h.bf16 %v2445_v17  ;;  %v1571_v40 = vpop.permute.xlu0 %1570  ;;  %v1848_v41 = vld [vmem:[%s3581_s2 + $0xd0] sm:$0xff]  ;;  %v2446_v42 = vld [vmem:[%s3580_s4 + $0x68] sm:$0xff]  }
 0x15a   :  { %v723_v47 = vpop.f32.mrf.mxu0  ;;  %v1012_v48 = vpop.f32.mrf.mxu1 }
 0x15b   :  { %v2162_v49 = vmul.f32 %v2348_v39, %v1970_v45  ;;  %v1907_v50 = vadd.f32 %v1843_v43, %v1779_v46  ;;  %v1013_v52 = vadd.f32 %v1012_v48, %v723_v47 }
 0x15c   :  { %v725_v53 = vpop.f32.mrf.mxu0  ;;  %v1014_v57 = vpop.f32.mrf.mxu1 }
 0x15d   :  { %2226 = vst [vmem:[%s3582_s5 + $0xa0] sm:$0xff] %v2162_v49  ;;  %v1971_v58 = vmax.f32 %v1907_v50, 0.0  ;;  %v1780_v59 = vmul.f32 %v1551_v54, %v1013_v52  ;;  %v2360_v50 = vunpack.c.l.bf16 %v2446_v42  ;;  %v1576_v53 = vpop.permute.xlu1 %1575  ;;  %v1849_v54 = vld [vmem:[%s3581_s2 + $0xd8] sm:$0xff] }
 0x15e   :  { %v726_v60 = vpop.f32.mrf.mxu0  ;;  %v1015_v61 = vpop.f32.mrf.mxu1 }
 0x15f   :  { %v2163_v62 = vmul.f32 %v2349_v51, %v1971_v58  ;;  %v1908_v63 = vadd.f32 %v1844_v55, %v1780_v59  ;;  %v1016_v1 = vadd.f32 %v1015_v61, %v726_v60 }
 0x160   :  { %v728_v2 = vpop.f32.mrf.mxu0  ;;  %v1017_v5 = vpop.f32.mrf.mxu1 }
 0x161   :  { %2227 = vst [vmem:[%s3582_s5 + $0xa8] sm:$0xff] %v2163_v62  ;;  %v1972_v6 = vmax.f32 %v1908_v63, 0.0  ;;  %v1781_v7 = vmul.f32 %v1556_v3, %v1016_v1  ;;  %v2361_v62 = vunpack.c.h.bf16 %v2446_v42  ;;  %v1581_v1 = vpop.permute.xlu0 %1580  ;;  %v1850_v2 = vld [vmem:[%s3581_s2 + $0xe0] sm:$0xff]  ;;  %v2447_v3 = vld [vmem:[%s3580_s4 + $0x70] sm:$0xff]  }
 0x162   :  { %v731_v8 = vpop.f32.mrf.mxu0  ;;  %v1020_v9 = vpop.f32.mrf.mxu1 }
 0x163   :  { %v2164_v10 = vmul.f32 %v2352_v0, %v1972_v6  ;;  %v1909_v11 = vadd.f32 %v1845_v4, %v1781_v7  ;;  %v1021_v13 = vadd.f32 %v1020_v9, %v731_v8 }
 0x164   :  { %v733_v14 = vpop.f32.mrf.mxu0  ;;  %v1022_v18 = vpop.f32.mrf.mxu1 }
 0x165   :  { %2228 = vst [vmem:[%s3582_s5 + $0xb0] sm:$0xff] %v2164_v10  ;;  %v1973_v19 = vmax.f32 %v1909_v11, 0.0  ;;  %v1782_v20 = vmul.f32 %v1561_v15, %v1021_v13  ;;  %v2364_v11 = vunpack.c.l.bf16 %v2447_v3  ;;  %v1586_v14 = vpop.permute.xlu1 %1585  ;;  %v1851_v15 = vld [vmem:[%s3581_s2 + $0xe8] sm:$0xff] }
 0x166   :  { %v734_v21 = vpop.f32.mrf.mxu0  ;;  %v1023_v22 = vpop.f32.mrf.mxu1 }
 0x167   :  { %v2165_v23 = vmul.f32 %v2353_v12, %v1973_v19  ;;  %v1910_v24 = vadd.f32 %v1846_v16, %v1782_v20  ;;  %v1024_v26 = vadd.f32 %v1023_v22, %v734_v21 }
 0x168   :  { %v736_v27 = vpop.f32.mrf.mxu0  ;;  %v1025_v30 = vpop.f32.mrf.mxu1 }
 0x169   :  { %2229 = vst [vmem:[%s3582_s5 + $0xb8] sm:$0xff] %v2165_v23  ;;  %v1974_v31 = vmax.f32 %v1910_v24, 0.0  ;;  %v1783_v32 = vmul.f32 %v1566_v28, %v1024_v26  ;;  %v2365_v23 = vunpack.c.h.bf16 %v2447_v3  ;;  %v1591_v26 = vpop.permute.xlu0 %1590  ;;  %v1852_v27 = vld [vmem:[%s3581_s2 + $0xf0] sm:$0xff]  ;;  %v2448_v28 = vld [vmem:[%s3580_s4 + $0x78] sm:$0xff]  }
 0x16a   :  { %v739_v33 = vpop.f32.mrf.mxu0  ;;  %v1028_v34 = vpop.f32.mrf.mxu1 }
 0x16b   :  { %v2166_v35 = vmul.f32 %v2356_v25, %v1974_v31  ;;  %v1911_v36 = vadd.f32 %v1847_v29, %v1783_v32  ;;  %v1029_v38 = vadd.f32 %v1028_v34, %v739_v33 }
 0x16c   :  { %v741_v39 = vpop.f32.mrf.mxu0  ;;  %v1030_v43 = vpop.f32.mrf.mxu1 }
 0x16d   :  { %2230 = vst [vmem:[%s3582_s5 + $0xc0] sm:$0xff] %v2166_v35  ;;  %v1975_v44 = vmax.f32 %v1911_v36, 0.0  ;;  %v1784_v45 = vmul.f32 %v1571_v40, %v1029_v38  ;;  %v2368_v36 = vunpack.c.l.bf16 %v2448_v28  ;;  %v1596_v39 = vpop.permute.xlu1 %1595  ;;  %v1853_v40 = vld [vmem:[%s3581_s2 + $0xf8] sm:$0xff] }
 0x16e   :  { %v742_v46 = vpop.f32.mrf.mxu0  ;;  %v1031_v47 = vpop.f32.mrf.mxu1 }
 0x16f   :  { %v2167_v48 = vmul.f32 %v2357_v37, %v1975_v44  ;;  %v1912_v49 = vadd.f32 %v1848_v41, %v1784_v45  ;;  %v1032_v51 = vadd.f32 %v1031_v47, %v742_v46 }
 0x170   :  { %v744_v52 = vpop.f32.mrf.mxu0  ;;  %v1033_v55 = vpop.f32.mrf.mxu1 }
 0x171   :  { %2231 = vst [vmem:[%s3582_s5 + $0xc8] sm:$0xff] %v2167_v48  ;;  %v1976_v56 = vmax.f32 %v1912_v49, 0.0  ;;  %v1785_v57 = vmul.f32 %v1576_v53, %v1032_v51  ;;  %v2369_v48 = vunpack.c.h.bf16 %v2448_v28  ;;  %v1601_v51 = vpop.permute.xlu0 %1600  ;;  %v1854_v52 = vld [vmem:[%s3581_s2 + $0x100] sm:$0xff] }
 0x172   :  { %v747_v58 = vpop.f32.mrf.mxu0  ;;  %v1036_v59 = vpop.f32.mrf.mxu1  ;;  %v2449_v53 = vld [vmem:[%s3580_s4 + $0x80] sm:$0xff]  }
 0x173   :  { %v2168_v60 = vmul.f32 %v2360_v50, %v1976_v56  ;;  %v1913_v61 = vadd.f32 %v1849_v54, %v1785_v57  ;;  %v1037_v63 = vadd.f32 %v1036_v59, %v747_v58 }
 0x174   :  { %v749_v0 = vpop.f32.mrf.mxu0  ;;  %v1038_v4 = vpop.f32.mrf.mxu1 }
 0x175   :  { %2232 = vst [vmem:[%s3582_s5 + $0xd0] sm:$0xff] %v2168_v60  ;;  %v1977_v5 = vmax.f32 %v1913_v61, 0.0  ;;  %v1786_v6 = vmul.f32 %v1581_v1, %v1037_v63  ;;  %v2372_v61 = vunpack.c.l.bf16 %v2449_v53  ;;  %v1606_v0 = vpop.permute.xlu1 %1605  ;;  %v1855_v1 = vld [vmem:[%s3581_s2 + $0x108] sm:$0xff] }
 0x176   :  { %v750_v7 = vpop.f32.mrf.mxu0  ;;  %v1039_v8 = vpop.f32.mrf.mxu1 }
 0x177   :  { %v2169_v9 = vmul.f32 %v2361_v62, %v1977_v5  ;;  %v1914_v10 = vadd.f32 %v1850_v2, %v1786_v6  ;;  %v1040_v12 = vadd.f32 %v1039_v8, %v750_v7 }
 0x178   :  { %v752_v13 = vpop.f32.mrf.mxu0  ;;  %v1041_v16 = vpop.f32.mrf.mxu1 }
 0x179   :  { %2233 = vst [vmem:[%s3582_s5 + $0xd8] sm:$0xff] %v2169_v9  ;;  %v1978_v17 = vmax.f32 %v1914_v10, 0.0  ;;  %v1787_v18 = vmul.f32 %v1586_v14, %v1040_v12  ;;  %v2373_v9 = vunpack.c.h.bf16 %v2449_v53  ;;  %v1611_v12 = vpop.permute.xlu0 %1610  ;;  %v1856_v13 = vld [vmem:[%s3581_s2 + $0x110] sm:$0xff]  ;;  %v2450_v14 = vld [vmem:[%s3580_s4 + $0x88] sm:$0xff]  }
 0x17a   :  { %v755_v19 = vpop.f32.mrf.mxu0  ;;  %v1044_v20 = vpop.f32.mrf.mxu1 }
 0x17b   :  { %v2170_v21 = vmul.f32 %v2364_v11, %v1978_v17  ;;  %v1915_v22 = vadd.f32 %v1851_v15, %v1787_v18  ;;  %v1045_v24 = vadd.f32 %v1044_v20, %v755_v19 }
 0x17c   :  { %v757_v25 = vpop.f32.mrf.mxu0  ;;  %v1046_v29 = vpop.f32.mrf.mxu1 }
 0x17d   :  { %2234 = vst [vmem:[%s3582_s5 + $0xe0] sm:$0xff] %v2170_v21  ;;  %v1979_v30 = vmax.f32 %v1915_v22, 0.0  ;;  %v1788_v31 = vmul.f32 %v1591_v26, %v1045_v24  ;;  %v2376_v22 = vunpack.c.l.bf16 %v2450_v14  ;;  %v1616_v25 = vpop.permute.xlu1 %1615  ;;  %v1857_v26 = vld [vmem:[%s3581_s2 + $0x118] sm:$0xff] }
 0x17e   :  { %v758_v32 = vpop.f32.mrf.mxu0  ;;  %v1047_v33 = vpop.f32.mrf.mxu1 }
 0x17f   :  { %v2171_v34 = vmul.f32 %v2365_v23, %v1979_v30  ;;  %v1916_v35 = vadd.f32 %v1852_v27, %v1788_v31  ;;  %v1048_v37 = vadd.f32 %v1047_v33, %v758_v32 }
 0x180   :  { %v760_v38 = vpop.f32.mrf.mxu0  ;;  %v1049_v41 = vpop.f32.mrf.mxu1 }
 0x181   :  { %2235 = vst [vmem:[%s3582_s5 + $0xe8] sm:$0xff] %v2171_v34  ;;  %v1980_v42 = vmax.f32 %v1916_v35, 0.0  ;;  %v1789_v43 = vmul.f32 %v1596_v39, %v1048_v37  ;;  %v2377_v34 = vunpack.c.h.bf16 %v2450_v14  ;;  %v1621_v37 = vpop.permute.xlu0 %1620  ;;  %v1858_v38 = vld [vmem:[%s3581_s2 + $0x120] sm:$0xff]  ;;  %v2451_v39 = vld [vmem:[%s3580_s4 + $0x90] sm:$0xff]  }
 0x182   :  { %v763_v44 = vpop.f32.mrf.mxu0  ;;  %v1052_v45 = vpop.f32.mrf.mxu1 }
 0x183   :  { %v2172_v46 = vmul.f32 %v2368_v36, %v1980_v42  ;;  %v1917_v47 = vadd.f32 %v1853_v40, %v1789_v43  ;;  %v1053_v49 = vadd.f32 %v1052_v45, %v763_v44 }
 0x184   :  { %v765_v50 = vpop.f32.mrf.mxu0  ;;  %v1054_v54 = vpop.f32.mrf.mxu1 }
 0x185   :  { %2236 = vst [vmem:[%s3582_s5 + $0xf0] sm:$0xff] %v2172_v46  ;;  %v1981_v55 = vmax.f32 %v1917_v47, 0.0  ;;  %v1790_v56 = vmul.f32 %v1601_v51, %v1053_v49  ;;  %v2380_v47 = vunpack.c.l.bf16 %v2451_v39  ;;  %v1626_v50 = vpop.permute.xlu1 %1625  ;;  %v1859_v51 = vld [vmem:[%s3581_s2 + $0x128] sm:$0xff] }
 0x186   :  { %v766_v57 = vpop.f32.mrf.mxu0  ;;  %v1055_v58 = vpop.f32.mrf.mxu1 }
 0x187   :  { %v2173_v59 = vmul.f32 %v2369_v48, %v1981_v55  ;;  %v1918_v60 = vadd.f32 %v1854_v52, %v1790_v56  ;;  %v1056_v62 = vadd.f32 %v1055_v58, %v766_v57 }
 0x188   :  { %v768_v63 = vpop.f32.mrf.mxu0  ;;  %v1057_v2 = vpop.f32.mrf.mxu1 }
 0x189   :  { %2237 = vst [vmem:[%s3582_s5 + $0xf8] sm:$0xff] %v2173_v59  ;;  %v1982_v3 = vmax.f32 %v1918_v60, 0.0  ;;  %v1791_v4 = vmul.f32 %v1606_v0, %v1056_v62  ;;  %v2381_v59 = vunpack.c.h.bf16 %v2451_v39  ;;  %v1631_v62 = vpop.permute.xlu0 %1630  ;;  %v1860_v63 = vld [vmem:[%s3581_s2 + $0x130] sm:$0xff]  ;;  %v2452_v0 = vld [vmem:[%s3580_s4 + $0x98] sm:$0xff]  }
 0x18a   :  { %v771_v5 = vpop.f32.mrf.mxu0  ;;  %v1060_v6 = vpop.f32.mrf.mxu1 }
 0x18b   :  { %v2174_v7 = vmul.f32 %v2372_v61, %v1982_v3  ;;  %v1919_v8 = vadd.f32 %v1855_v1, %v1791_v4  ;;  %v1061_v10 = vadd.f32 %v1060_v6, %v771_v5 }
 0x18c   :  { %v773_v11 = vpop.f32.mrf.mxu0  ;;  %v1062_v15 = vpop.f32.mrf.mxu1 }
 0x18d   :  { %2238 = vst [vmem:[%s3582_s5 + $0x100] sm:$0xff] %v2174_v7  ;;  %v1983_v16 = vmax.f32 %v1919_v8, 0.0  ;;  %v1792_v17 = vmul.f32 %v1611_v12, %v1061_v10  ;;  %v2384_v8 = vunpack.c.l.bf16 %v2452_v0  ;;  %v1636_v11 = vpop.permute.xlu1 %1635  ;;  %v1861_v12 = vld [vmem:[%s3581_s2 + $0x138] sm:$0xff] }
 0x18e   :  { %v774_v18 = vpop.f32.mrf.mxu0  ;;  %v1063_v19 = vpop.f32.mrf.mxu1 }
 0x18f   :  { %v2175_v20 = vmul.f32 %v2373_v9, %v1983_v16  ;;  %v1920_v21 = vadd.f32 %v1856_v13, %v1792_v17  ;;  %v1064_v23 = vadd.f32 %v1063_v19, %v774_v18 }
 0x190   :  { %v776_v24 = vpop.f32.mrf.mxu0  ;;  %v1065_v27 = vpop.f32.mrf.mxu1 }
 0x191   :  { %2239 = vst [vmem:[%s3582_s5 + $0x108] sm:$0xff] %v2175_v20  ;;  %v1984_v28 = vmax.f32 %v1920_v21, 0.0  ;;  %v1793_v29 = vmul.f32 %v1616_v25, %v1064_v23  ;;  %v2385_v20 = vunpack.c.h.bf16 %v2452_v0  ;;  %v1641_v23 = vpop.permute.xlu0 %1640  ;;  %v1862_v24 = vld [vmem:[%s3581_s2 + $0x140] sm:$0xff] }
 0x192   :  { %v779_v30 = vpop.f32.mrf.mxu0  ;;  %v1068_v31 = vpop.f32.mrf.mxu1  ;;  %v2453_v25 = vld [vmem:[%s3580_s4 + $0xa0] sm:$0xff]  }
 0x193   :  { %v2176_v32 = vmul.f32 %v2376_v22, %v1984_v28  ;;  %v1921_v33 = vadd.f32 %v1857_v26, %v1793_v29  ;;  %v1069_v35 = vadd.f32 %v1068_v31, %v779_v30 }
 0x194   :  { %v781_v36 = vpop.f32.mrf.mxu0  ;;  %v1070_v40 = vpop.f32.mrf.mxu1 }
 0x195   :  { %2240 = vst [vmem:[%s3582_s5 + $0x110] sm:$0xff] %v2176_v32  ;;  %v1985_v41 = vmax.f32 %v1921_v33, 0.0  ;;  %v1794_v42 = vmul.f32 %v1621_v37, %v1069_v35  ;;  %v2388_v33 = vunpack.c.l.bf16 %v2453_v25  ;;  %v1646_v36 = vpop.permute.xlu1 %1645  ;;  %v1863_v37 = vld [vmem:[%s3581_s2 + $0x148] sm:$0xff] }
 0x196   :  { %v782_v43 = vpop.f32.mrf.mxu0  ;;  %v1071_v44 = vpop.f32.mrf.mxu1 }
 0x197   :  { %v2177_v45 = vmul.f32 %v2377_v34, %v1985_v41  ;;  %v1922_v46 = vadd.f32 %v1858_v38, %v1794_v42  ;;  %v1072_v48 = vadd.f32 %v1071_v44, %v782_v43 }
 0x198   :  { %v784_v49 = vpop.f32.mrf.mxu0  ;;  %v1073_v52 = vpop.f32.mrf.mxu1 }
 0x199   :  { %2241 = vst [vmem:[%s3582_s5 + $0x118] sm:$0xff] %v2177_v45  ;;  %v1986_v53 = vmax.f32 %v1922_v46, 0.0  ;;  %v1795_v54 = vmul.f32 %v1626_v50, %v1072_v48  ;;  %v2389_v45 = vunpack.c.h.bf16 %v2453_v25  ;;  %v1651_v48 = vpop.permute.xlu0 %1650  ;;  %v1864_v49 = vld [vmem:[%s3581_s2 + $0x150] sm:$0xff]  ;;  %v2454_v50 = vld [vmem:[%s3580_s4 + $0xa8] sm:$0xff]  }
 0x19a   :  { %v787_v55 = vpop.f32.mrf.mxu0  ;;  %v1076_v56 = vpop.f32.mrf.mxu1 }
 0x19b   :  { %v2178_v57 = vmul.f32 %v2380_v47, %v1986_v53  ;;  %v1923_v58 = vadd.f32 %v1859_v51, %v1795_v54  ;;  %v1077_v60 = vadd.f32 %v1076_v56, %v787_v55 }
 0x19c   :  { %v789_v61 = vpop.f32.mrf.mxu0  ;;  %v1078_v1 = vpop.f32.mrf.mxu1 }
 0x19d   :  { %2242 = vst [vmem:[%s3582_s5 + $0x120] sm:$0xff] %v2178_v57  ;;  %v1987_v2 = vmax.f32 %v1923_v58, 0.0  ;;  %v1796_v3 = vmul.f32 %v1631_v62, %v1077_v60  ;;  %v2392_v58 = vunpack.c.l.bf16 %v2454_v50  ;;  %v1656_v61 = vpop.permute.xlu1 %1655  ;;  %v1865_v62 = vld [vmem:[%s3581_s2 + $0x158] sm:$0xff] }
 0x19e   :  { %v790_v4 = vpop.f32.mrf.mxu0  ;;  %v1079_v5 = vpop.f32.mrf.mxu1 }
 0x19f   :  { %v2179_v6 = vmul.f32 %v2381_v59, %v1987_v2  ;;  %v1924_v7 = vadd.f32 %v1860_v63, %v1796_v3  ;;  %v1080_v9 = vadd.f32 %v1079_v5, %v790_v4 }
 0x1a0   :  { %v792_v10 = vpop.f32.mrf.mxu0  ;;  %v1081_v13 = vpop.f32.mrf.mxu1 }
 0x1a1   :  { %2243 = vst [vmem:[%s3582_s5 + $0x128] sm:$0xff] %v2179_v6  ;;  %v1988_v14 = vmax.f32 %v1924_v7, 0.0  ;;  %v1797_v15 = vmul.f32 %v1636_v11, %v1080_v9  ;;  %v2393_v6 = vunpack.c.h.bf16 %v2454_v50  ;;  %v1661_v9 = vpop.permute.xlu0 %1660  ;;  %v1866_v10 = vld [vmem:[%s3581_s2 + $0x160] sm:$0xff]  ;;  %v2455_v11 = vld [vmem:[%s3580_s4 + $0xb0] sm:$0xff]  }
 0x1a2   :  { %v795_v16 = vpop.f32.mrf.mxu0  ;;  %v1084_v17 = vpop.f32.mrf.mxu1 }
 0x1a3   :  { %v2180_v18 = vmul.f32 %v2384_v8, %v1988_v14  ;;  %v1925_v19 = vadd.f32 %v1861_v12, %v1797_v15  ;;  %v1085_v21 = vadd.f32 %v1084_v17, %v795_v16 }
 0x1a4   :  { %v797_v22 = vpop.f32.mrf.mxu0  ;;  %v1086_v26 = vpop.f32.mrf.mxu1 }
 0x1a5   :  { %2244 = vst [vmem:[%s3582_s5 + $0x130] sm:$0xff] %v2180_v18  ;;  %v1989_v27 = vmax.f32 %v1925_v19, 0.0  ;;  %v1798_v28 = vmul.f32 %v1641_v23, %v1085_v21  ;;  %v2396_v19 = vunpack.c.l.bf16 %v2455_v11  ;;  %v1666_v22 = vpop.permute.xlu1 %1665  ;;  %v1867_v23 = vld [vmem:[%s3581_s2 + $0x168] sm:$0xff] }
 0x1a6   :  { %v798_v29 = vpop.f32.mrf.mxu0  ;;  %v1087_v30 = vpop.f32.mrf.mxu1 }
 0x1a7   :  { %v2181_v31 = vmul.f32 %v2385_v20, %v1989_v27  ;;  %v1926_v32 = vadd.f32 %v1862_v24, %v1798_v28  ;;  %v1088_v34 = vadd.f32 %v1087_v30, %v798_v29 }
 0x1a8   :  { %v800_v35 = vpop.f32.mrf.mxu0  ;;  %v1089_v38 = vpop.f32.mrf.mxu1 }
 0x1a9   :  { %2245 = vst [vmem:[%s3582_s5 + $0x138] sm:$0xff] %v2181_v31  ;;  %v1990_v39 = vmax.f32 %v1926_v32, 0.0  ;;  %v1799_v40 = vmul.f32 %v1646_v36, %v1088_v34  ;;  %v2397_v31 = vunpack.c.h.bf16 %v2455_v11  ;;  %v1671_v34 = vpop.permute.xlu0 %1670  ;;  %v1868_v35 = vld [vmem:[%s3581_s2 + $0x170] sm:$0xff]  ;;  %v2456_v36 = vld [vmem:[%s3580_s4 + $0xb8] sm:$0xff]  }
 0x1aa   :  { %v803_v41 = vpop.f32.mrf.mxu0  ;;  %v1092_v42 = vpop.f32.mrf.mxu1 }
 0x1ab   :  { %v2182_v43 = vmul.f32 %v2388_v33, %v1990_v39  ;;  %v1927_v44 = vadd.f32 %v1863_v37, %v1799_v40  ;;  %v1093_v46 = vadd.f32 %v1092_v42, %v803_v41 }
 0x1ac   :  { %v805_v47 = vpop.f32.mrf.mxu0  ;;  %v1094_v51 = vpop.f32.mrf.mxu1 }
 0x1ad   :  { %2246 = vst [vmem:[%s3582_s5 + $0x140] sm:$0xff] %v2182_v43  ;;  %v1991_v52 = vmax.f32 %v1927_v44, 0.0  ;;  %v1800_v53 = vmul.f32 %v1651_v48, %v1093_v46  ;;  %v2400_v44 = vunpack.c.l.bf16 %v2456_v36  ;;  %v1676_v47 = vpop.permute.xlu1 %1675  ;;  %v1869_v48 = vld [vmem:[%s3581_s2 + $0x178] sm:$0xff] }
 0x1ae   :  { %v806_v54 = vpop.f32.mrf.mxu0  ;;  %v1095_v55 = vpop.f32.mrf.mxu1 }
 0x1af   :  { %v2183_v56 = vmul.f32 %v2389_v45, %v1991_v52  ;;  %v1928_v57 = vadd.f32 %v1864_v49, %v1800_v53  ;;  %v1096_v59 = vadd.f32 %v1095_v55, %v806_v54 }
 0x1b0   :  { %v808_v60 = vpop.f32.mrf.mxu0  ;;  %v1097_v63 = vpop.f32.mrf.mxu1 }
 0x1b1   :  { %2247 = vst [vmem:[%s3582_s5 + $0x148] sm:$0xff] %v2183_v56  ;;  %v1992_v0 = vmax.f32 %v1928_v57, 0.0  ;;  %v1801_v1 = vmul.f32 %v1656_v61, %v1096_v59  ;;  %v2401_v56 = vunpack.c.h.bf16 %v2456_v36  ;;  %v1681_v59 = vpop.permute.xlu0 %1680  ;;  %v1870_v60 = vld [vmem:[%s3581_s2 + $0x180] sm:$0xff] }
 0x1b2   :  { %v811_v2 = vpop.f32.mrf.mxu0  ;;  %v1100_v3 = vpop.f32.mrf.mxu1  ;;  %v2457_v61 = vld [vmem:[%s3580_s4 + $0xc0] sm:$0xff]  }
 0x1b3   :  { %v2184_v4 = vmul.f32 %v2392_v58, %v1992_v0  ;;  %v1929_v5 = vadd.f32 %v1865_v62, %v1801_v1  ;;  %v1101_v7 = vadd.f32 %v1100_v3, %v811_v2 }
 0x1b4   :  { %v813_v8 = vpop.f32.mrf.mxu0  ;;  %v1102_v12 = vpop.f32.mrf.mxu1 }
 0x1b5   :  { %2248 = vst [vmem:[%s3582_s5 + $0x150] sm:$0xff] %v2184_v4  ;;  %v1993_v13 = vmax.f32 %v1929_v5, 0.0  ;;  %v1802_v14 = vmul.f32 %v1661_v9, %v1101_v7  ;;  %v2404_v5 = vunpack.c.l.bf16 %v2457_v61  ;;  %v1686_v8 = vpop.permute.xlu1 %1685  ;;  %v1871_v9 = vld [vmem:[%s3581_s2 + $0x188] sm:$0xff] }
 0x1b6   :  { %v814_v15 = vpop.f32.mrf.mxu0  ;;  %v1103_v16 = vpop.f32.mrf.mxu1 }
 0x1b7   :  { %v2185_v17 = vmul.f32 %v2393_v6, %v1993_v13  ;;  %v1930_v18 = vadd.f32 %v1866_v10, %v1802_v14  ;;  %v1104_v20 = vadd.f32 %v1103_v16, %v814_v15 }
 0x1b8   :  { %v816_v21 = vpop.f32.mrf.mxu0  ;;  %v1105_v24 = vpop.f32.mrf.mxu1 }
 0x1b9   :  { %2249 = vst [vmem:[%s3582_s5 + $0x158] sm:$0xff] %v2185_v17  ;;  %v1994_v25 = vmax.f32 %v1930_v18, 0.0  ;;  %v1803_v26 = vmul.f32 %v1666_v22, %v1104_v20  ;;  %v2405_v17 = vunpack.c.h.bf16 %v2457_v61  ;;  %v1691_v20 = vpop.permute.xlu0 %1690  ;;  %v1872_v21 = vld [vmem:[%s3581_s2 + $0x190] sm:$0xff]  ;;  %v2458_v22 = vld [vmem:[%s3580_s4 + $0xc8] sm:$0xff]  }
 0x1ba   :  { %v819_v27 = vpop.f32.mrf.mxu0  ;;  %v1108_v28 = vpop.f32.mrf.mxu1 }
 0x1bb   :  { %v2186_v29 = vmul.f32 %v2396_v19, %v1994_v25  ;;  %v1931_v30 = vadd.f32 %v1867_v23, %v1803_v26  ;;  %v1109_v32 = vadd.f32 %v1108_v28, %v819_v27 }
 0x1bc   :  { %v821_v33 = vpop.f32.mrf.mxu0  ;;  %v1110_v37 = vpop.f32.mrf.mxu1 }
 0x1bd   :  { %2250 = vst [vmem:[%s3582_s5 + $0x160] sm:$0xff] %v2186_v29  ;;  %v1995_v38 = vmax.f32 %v1931_v30, 0.0  ;;  %v1804_v39 = vmul.f32 %v1671_v34, %v1109_v32  ;;  %v2408_v30 = vunpack.c.l.bf16 %v2458_v22  ;;  %v1696_v33 = vpop.permute.xlu1 %1695  ;;  %v1873_v34 = vld [vmem:[%s3581_s2 + $0x198] sm:$0xff] }
 0x1be   :  { %v822_v40 = vpop.f32.mrf.mxu0  ;;  %v1111_v41 = vpop.f32.mrf.mxu1 }
 0x1bf   :  { %v2187_v42 = vmul.f32 %v2397_v31, %v1995_v38  ;;  %v1932_v43 = vadd.f32 %v1868_v35, %v1804_v39  ;;  %v1112_v45 = vadd.f32 %v1111_v41, %v822_v40 }
 0x1c0   :  { %v824_v46 = vpop.f32.mrf.mxu0  ;;  %v1113_v49 = vpop.f32.mrf.mxu1 }
 0x1c1   :  { %2251 = vst [vmem:[%s3582_s5 + $0x168] sm:$0xff] %v2187_v42  ;;  %v1996_v50 = vmax.f32 %v1932_v43, 0.0  ;;  %v1805_v51 = vmul.f32 %v1676_v47, %v1112_v45  ;;  %v2409_v42 = vunpack.c.h.bf16 %v2458_v22  ;;  %v1701_v45 = vpop.permute.xlu0 %1700  ;;  %v1874_v46 = vld [vmem:[%s3581_s2 + $0x1a0] sm:$0xff]  ;;  %v2459_v47 = vld [vmem:[%s3580_s4 + $0xd0] sm:$0xff]  }
 0x1c2   :  { %v827_v52 = vpop.f32.mrf.mxu0  ;;  %v1116_v53 = vpop.f32.mrf.mxu1 }
 0x1c3   :  { %v2188_v54 = vmul.f32 %v2400_v44, %v1996_v50  ;;  %v1933_v55 = vadd.f32 %v1869_v48, %v1805_v51  ;;  %v1117_v57 = vadd.f32 %v1116_v53, %v827_v52 }
 0x1c4   :  { %v829_v58 = vpop.f32.mrf.mxu0  ;;  %v1118_v62 = vpop.f32.mrf.mxu1 }
 0x1c5   :  { %2252 = vst [vmem:[%s3582_s5 + $0x170] sm:$0xff] %v2188_v54  ;;  %v1997_v63 = vmax.f32 %v1933_v55, 0.0  ;;  %v1806_v0 = vmul.f32 %v1681_v59, %v1117_v57  ;;  %v2412_v55 = vunpack.c.l.bf16 %v2459_v47  ;;  %v1706_v58 = vpop.permute.xlu1 %1705  ;;  %v1875_v59 = vld [vmem:[%s3581_s2 + $0x1a8] sm:$0xff] }
 0x1c6   :  { %v830_v1 = vpop.f32.mrf.mxu0  ;;  %v1119_v2 = vpop.f32.mrf.mxu1 }
 0x1c7   :  { %v2189_v3 = vmul.f32 %v2401_v56, %v1997_v63  ;;  %v1934_v4 = vadd.f32 %v1870_v60, %v1806_v0  ;;  %v1120_v6 = vadd.f32 %v1119_v2, %v830_v1 }
 0x1c8   :  { %v832_v7 = vpop.f32.mrf.mxu0  ;;  %v1121_v10 = vpop.f32.mrf.mxu1 }
 0x1c9   :  { %2253 = vst [vmem:[%s3582_s5 + $0x178] sm:$0xff] %v2189_v3  ;;  %v1998_v11 = vmax.f32 %v1934_v4, 0.0  ;;  %v1807_v12 = vmul.f32 %v1686_v8, %v1120_v6  ;;  %v2413_v3 = vunpack.c.h.bf16 %v2459_v47  ;;  %v1711_v6 = vpop.permute.xlu0 %1710  ;;  %v1876_v7 = vld [vmem:[%s3581_s2 + $0x1b0] sm:$0xff]  ;;  %v2460_v8 = vld [vmem:[%s3580_s4 + $0xd8] sm:$0xff]  }
 0x1ca   :  { %v835_v13 = vpop.f32.mrf.mxu0  ;;  %v1124_v14 = vpop.f32.mrf.mxu1 }
 0x1cb   :  { %v2190_v15 = vmul.f32 %v2404_v5, %v1998_v11  ;;  %v1935_v16 = vadd.f32 %v1871_v9, %v1807_v12  ;;  %v1125_v18 = vadd.f32 %v1124_v14, %v835_v13 }
 0x1cc   :  { %v837_v19 = vpop.f32.mrf.mxu0  ;;  %v1126_v23 = vpop.f32.mrf.mxu1 }
 0x1cd   :  { %2254 = vst [vmem:[%s3582_s5 + $0x180] sm:$0xff] %v2190_v15  ;;  %v1999_v24 = vmax.f32 %v1935_v16, 0.0  ;;  %v1808_v25 = vmul.f32 %v1691_v20, %v1125_v18  ;;  %v2416_v16 = vunpack.c.l.bf16 %v2460_v8  ;;  %v1716_v19 = vpop.permute.xlu1 %1715  ;;  %v1877_v20 = vld [vmem:[%s3581_s2 + $0x1b8] sm:$0xff] }
 0x1ce   :  { %v838_v26 = vpop.f32.mrf.mxu0  ;;  %v1127_v27 = vpop.f32.mrf.mxu1 }
 0x1cf   :  { %v2191_v28 = vmul.f32 %v2405_v17, %v1999_v24  ;;  %v1936_v29 = vadd.f32 %v1872_v21, %v1808_v25  ;;  %v1128_v31 = vadd.f32 %v1127_v27, %v838_v26 }
 0x1d0   :  { %v840_v32 = vpop.f32.mrf.mxu0  ;;  %v1129_v35 = vpop.f32.mrf.mxu1 }
 0x1d1   :  { %2255 = vst [vmem:[%s3582_s5 + $0x188] sm:$0xff] %v2191_v28  ;;  %v2000_v36 = vmax.f32 %v1936_v29, 0.0  ;;  %v1809_v37 = vmul.f32 %v1696_v33, %v1128_v31  ;;  %v2417_v28 = vunpack.c.h.bf16 %v2460_v8  ;;  %v1721_v31 = vpop.permute.xlu0 %1720  ;;  %v1878_v32 = vld [vmem:[%s3581_s2 + $0x1c0] sm:$0xff] }
 0x1d2   :  { %v843_v38 = vpop.f32.mrf.mxu0  ;;  %v1132_v39 = vpop.f32.mrf.mxu1  ;;  %v2461_v33 = vld [vmem:[%s3580_s4 + $0xe0] sm:$0xff]  }
 0x1d3   :  { %v2192_v40 = vmul.f32 %v2408_v30, %v2000_v36  ;;  %v1937_v41 = vadd.f32 %v1873_v34, %v1809_v37  ;;  %v1133_v43 = vadd.f32 %v1132_v39, %v843_v38 }
 0x1d4   :  { %v845_v44 = vpop.f32.mrf.mxu0  ;;  %v1134_v48 = vpop.f32.mrf.mxu1 }
 0x1d5   :  { %2256 = vst [vmem:[%s3582_s5 + $0x190] sm:$0xff] %v2192_v40  ;;  %v2001_v49 = vmax.f32 %v1937_v41, 0.0  ;;  %v1810_v50 = vmul.f32 %v1701_v45, %v1133_v43  ;;  %v2420_v41 = vunpack.c.l.bf16 %v2461_v33  ;;  %v1726_v44 = vpop.permute.xlu1 %1725  ;;  %v1879_v45 = vld [vmem:[%s3581_s2 + $0x1c8] sm:$0xff] }
 0x1d6   :  { %v846_v51 = vpop.f32.mrf.mxu0  ;;  %v1135_v52 = vpop.f32.mrf.mxu1 }
 0x1d7   :  { %v2193_v53 = vmul.f32 %v2409_v42, %v2001_v49  ;;  %v1938_v54 = vadd.f32 %v1874_v46, %v1810_v50  ;;  %v1136_v56 = vadd.f32 %v1135_v52, %v846_v51 }
 0x1d8   :  { %v848_v57 = vpop.f32.mrf.mxu0  ;;  %v1137_v60 = vpop.f32.mrf.mxu1 }
 0x1d9   :  { %2257 = vst [vmem:[%s3582_s5 + $0x198] sm:$0xff] %v2193_v53  ;;  %v2002_v61 = vmax.f32 %v1938_v54, 0.0  ;;  %v1811_v62 = vmul.f32 %v1706_v58, %v1136_v56  ;;  %v2421_v53 = vunpack.c.h.bf16 %v2461_v33  ;;  %v1731_v56 = vpop.permute.xlu0 %1730  ;;  %v1880_v57 = vld [vmem:[%s3581_s2 + $0x1d0] sm:$0xff]  ;;  %v2462_v58 = vld [vmem:[%s3580_s4 + $0xe8] sm:$0xff]  }
 0x1da   :  { %v851_v63 = vpop.f32.mrf.mxu0  ;;  %v1140_v0 = vpop.f32.mrf.mxu1 }
 0x1db   :  { %v2194_v1 = vmul.f32 %v2412_v55, %v2002_v61  ;;  %v1939_v2 = vadd.f32 %v1875_v59, %v1811_v62  ;;  %v1141_v4 = vadd.f32 %v1140_v0, %v851_v63 }
 0x1dc   :  { %v853_v5 = vpop.f32.mrf.mxu0  ;;  %v1142_v9 = vpop.f32.mrf.mxu1 }
 0x1dd   :  { %2258 = vst [vmem:[%s3582_s5 + $0x1a0] sm:$0xff] %v2194_v1  ;;  %v2003_v10 = vmax.f32 %v1939_v2, 0.0  ;;  %v1812_v11 = vmul.f32 %v1711_v6, %v1141_v4  ;;  %v2424_v2 = vunpack.c.l.bf16 %v2462_v58  ;;  %v1736_v5 = vpop.permute.xlu1 %1735  ;;  %v1881_v6 = vld [vmem:[%s3581_s2 + $0x1d8] sm:$0xff] }
 0x1de   :  { %v854_v12 = vpop.f32.mrf.mxu0  ;;  %v1143_v13 = vpop.f32.mrf.mxu1 }
 0x1df   :  { %v2195_v14 = vmul.f32 %v2413_v3, %v2003_v10  ;;  %v1940_v15 = vadd.f32 %v1876_v7, %v1812_v11  ;;  %v1144_v17 = vadd.f32 %v1143_v13, %v854_v12 }
 0x1e0   :  { %v856_v18 = vpop.f32.mrf.mxu0  ;;  %v1145_v21 = vpop.f32.mrf.mxu1 }
 0x1e1   :  { %2259 = vst [vmem:[%s3582_s5 + $0x1a8] sm:$0xff] %v2195_v14  ;;  %v2004_v22 = vmax.f32 %v1940_v15, 0.0  ;;  %v1813_v23 = vmul.f32 %v1716_v19, %v1144_v17  ;;  %v2425_v14 = vunpack.c.h.bf16 %v2462_v58  ;;  %v1741_v17 = vpop.permute.xlu0 %1740  ;;  %v1882_v18 = vld [vmem:[%s3581_s2 + $0x1e0] sm:$0xff]  ;;  %v2463_v19 = vld [vmem:[%s3580_s4 + $0xf0] sm:$0xff]  }
 0x1e2   :  { %v859_v24 = vpop.f32.mrf.mxu0  ;;  %v1148_v25 = vpop.f32.mrf.mxu1 }
 0x1e3   :  { %v2196_v26 = vmul.f32 %v2416_v16, %v2004_v22  ;;  %v1941_v27 = vadd.f32 %v1877_v20, %v1813_v23  ;;  %v1149_v29 = vadd.f32 %v1148_v25, %v859_v24 }
 0x1e4   :  { %v861_v30 = vpop.f32.mrf.mxu0  ;;  %v1150_v34 = vpop.f32.mrf.mxu1 }
 0x1e5   :  { %2260 = vst [vmem:[%s3582_s5 + $0x1b0] sm:$0xff] %v2196_v26  ;;  %v2005_v35 = vmax.f32 %v1941_v27, 0.0  ;;  %v1814_v36 = vmul.f32 %v1721_v31, %v1149_v29  ;;  %v2428_v27 = vunpack.c.l.bf16 %v2463_v19  ;;  %v1746_v30 = vpop.permute.xlu1 %1745  ;;  %v1883_v31 = vld [vmem:[%s3581_s2 + $0x1e8] sm:$0xff] }
 0x1e6   :  { %v862_v37 = vpop.f32.mrf.mxu0  ;;  %v1151_v38 = vpop.f32.mrf.mxu1 }
 0x1e7   :  { %v2197_v39 = vmul.f32 %v2417_v28, %v2005_v35  ;;  %v1942_v40 = vadd.f32 %v1878_v32, %v1814_v36  ;;  %v1152_v42 = vadd.f32 %v1151_v38, %v862_v37 }
 0x1e8   :  { %v864_v43 = vpop.f32.mrf.mxu0  ;;  %v1153_v46 = vpop.f32.mrf.mxu1 }
 0x1e9   :  { %2261 = vst [vmem:[%s3582_s5 + $0x1b8] sm:$0xff] %v2197_v39  ;;  %v2006_v47 = vmax.f32 %v1942_v40, 0.0  ;;  %v1815_v48 = vmul.f32 %v1726_v44, %v1152_v42  ;;  %v2429_v39 = vunpack.c.h.bf16 %v2463_v19  ;;  %v1751_v42 = vpop.permute.xlu0 %1750  ;;  %v1884_v43 = vld [vmem:[%s3581_s2 + $0x1f0] sm:$0xff]  ;;  %v2464_v44 = vld [vmem:[%s3580_s4 + $0xf8] sm:$0xff]  }
 0x1ea   :  { %v867_v49 = vpop.f32.mrf.mxu0  ;;  %v1156_v50 = vpop.f32.mrf.mxu1 }
 0x1eb   :  { %v2198_v51 = vmul.f32 %v2420_v41, %v2006_v47  ;;  %v1943_v52 = vadd.f32 %v1879_v45, %v1815_v48  ;;  %v1157_v54 = vadd.f32 %v1156_v50, %v867_v49 }
 0x1ec   :  { %v869_v55 = vpop.f32.mrf.mxu0  ;;  %v1158_v59 = vpop.f32.mrf.mxu1 }
 0x1ed   :  { %2262 = vst [vmem:[%s3582_s5 + $0x1c0] sm:$0xff] %v2198_v51  ;;  %v2007_v60 = vmax.f32 %v1943_v52, 0.0  ;;  %v1816_v61 = vmul.f32 %v1731_v56, %v1157_v54  ;;  %v2432_v52 = vunpack.c.l.bf16 %v2464_v44  ;;  %v1756_v55 = vpop.permute.xlu1 %1755  ;;  %v1885_v56 = vld [vmem:[%s3581_s2 + $0x1f8] sm:$0xff] }
 0x1ee   :  { %v870_v62 = vpop.f32.mrf.mxu0  ;;  %v1159_v63 = vpop.f32.mrf.mxu1 }
 0x1ef   :  { %v2199_v0 = vmul.f32 %v2421_v53, %v2007_v60  ;;  %v1944_v1 = vadd.f32 %v1880_v57, %v1816_v61  ;;  %v1160_v3 = vadd.f32 %v1159_v63, %v870_v62  ;;  %v2433_v62 = vunpack.c.h.bf16 %v2464_v44 }
 0x1f0   :  { %v872_v4 = vpop.f32.mrf.mxu0  ;;  %v1161_v7 = vpop.f32.mrf.mxu1 }
 0x1f1   :  { %2263 = vst [vmem:[%s3582_s5 + $0x1c8] sm:$0xff] %v2199_v0  ;;  %v2008_v8 = vmax.f32 %v1944_v1, 0.0  ;;  %v1817_v9 = vmul.f32 %v1736_v5, %v1160_v3 }
 0x1f2   :  { %v875_v10 = vpop.f32.mrf.mxu0  ;;  %v1164_v11 = vpop.f32.mrf.mxu1 }
 0x1f3   :  { %v2200_v12 = vmul.f32 %v2424_v2, %v2008_v8  ;;  %v1945_v13 = vadd.f32 %v1881_v6, %v1817_v9  ;;  %v1165_v15 = vadd.f32 %v1164_v11, %v875_v10 }
 0x1f4   :  { %v877_v16 = vpop.f32.mrf.mxu0  ;;  %v1166_v20 = vpop.f32.mrf.mxu1 }
 0x1f5   :  { %2264 = vst [vmem:[%s3582_s5 + $0x1d0] sm:$0xff] %v2200_v12  ;;  %v2009_v21 = vmax.f32 %v1945_v13, 0.0  ;;  %v1818_v22 = vmul.f32 %v1741_v17, %v1165_v15 }
 0x1f6   :  { %v878_v23 = vpop.f32.mrf.mxu0  ;;  %v1167_v24 = vpop.f32.mrf.mxu1 }
 0x1f7   :  { %v2201_v25 = vmul.f32 %v2425_v14, %v2009_v21  ;;  %v1946_v26 = vadd.f32 %v1882_v18, %v1818_v22  ;;  %v1168_v28 = vadd.f32 %v1167_v24, %v878_v23 }
 0x1f8   :  { %v880_v29 = vpop.f32.mrf.mxu0  ;;  %v1169_v32 = vpop.f32.mrf.mxu1 }
 0x1f9   :  { %2265 = vst [vmem:[%s3582_s5 + $0x1d8] sm:$0xff] %v2201_v25  ;;  %v2010_v33 = vmax.f32 %v1946_v26, 0.0  ;;  %v1819_v34 = vmul.f32 %v1746_v30, %v1168_v28 }
 0x1fa   :  { %v883_v35 = vpop.f32.mrf.mxu0  ;;  %v1172_v36 = vpop.f32.mrf.mxu1 }
 0x1fb   :  { %v2202_v37 = vmul.f32 %v2428_v27, %v2010_v33  ;;  %v1947_v38 = vadd.f32 %v1883_v31, %v1819_v34  ;;  %v1173_v40 = vadd.f32 %v1172_v36, %v883_v35 }
 0x1fc   :  { %v885_v41 = vpop.f32.mrf.mxu0  ;;  %v1174_v45 = vpop.f32.mrf.mxu1 }
 0x1fd   :  { %2266 = vst [vmem:[%s3582_s5 + $0x1e0] sm:$0xff] %v2202_v37  ;;  %v2011_v46 = vmax.f32 %v1947_v38, 0.0  ;;  %v1820_v47 = vmul.f32 %v1751_v42, %v1173_v40 }
 0x1fe   :  { %v886_v48 = vpop.f32.mrf.mxu0  ;;  %v1175_v49 = vpop.f32.mrf.mxu1 }
 0x1ff   :  { %v2203_v50 = vmul.f32 %v2429_v39, %v2011_v46  ;;  %v1948_v51 = vadd.f32 %v1884_v43, %v1820_v47  ;;  %v1176_v53 = vadd.f32 %v1175_v49, %v886_v48 }
 0x200   :  { %v888_v54 = vpop.f32.mrf.mxu0  ;;  %v1177_v57 = vpop.f32.mrf.mxu1 }
 0x201   :  { %2267 = vst [vmem:[%s3582_s5 + $0x1e8] sm:$0xff] %v2203_v50  ;;  %v2012_v58 = vmax.f32 %v1948_v51, 0.0  ;;  %v1821_v59 = vmul.f32 %v1756_v55, %v1176_v53 }
 0x203   :  { %v2204_v60 = vmul.f32 %v2432_v52, %v2012_v58  ;;  %v1949_v61 = vadd.f32 %v1885_v56, %v1821_v59 }
 0x205   :  { %2268 = vst [vmem:[%s3582_s5 + $0x1f0] sm:$0xff] %v2204_v60  ;;  %v2013_v63 = vmax.f32 %v1949_v61, 0.0 }
 0x207   :  { %v2205_v0 = vmul.f32 %v2433_v62, %v2013_v63 }
 0x209   :  { %2269 = vst [vmem:[%s3582_s5 + $0x1f8] sm:$0xff] %v2205_v0 }

</bundles_post_ra>
